<compile_context>
chip_gen: v7x
topology: tpu7x:2x2x1
jax: 0.10.0
libtpu: 0.0.40
codegen_flags: <defaults>
</compile_context>

<pallas_src>
import functools
import math

import numpy as np

import jax
import jax.numpy as jnp
from jax import lax
from jax.experimental import pallas as pl
from jax.experimental.pallas import tpu as pltpu  # noqa: F401  (TPU backend)


# -----------------------------------------------------------------------------
# Fused kernel
# -----------------------------------------------------------------------------
def _row_norm(x, inv_sqrt_d, eps):
    # mmpose ScaleNorm without the learnable gain (gain folded into the next
    # Linear weight):  x / clamp(||x|| * d^-0.5, eps)
    nrm = jnp.sqrt(jnp.sum(x * x, axis=-1, keepdims=True)) * inv_sqrt_d
    return x / jnp.maximum(nrm, eps)


def _rtmpose_fused_kernel(x_ref, w1_ref, b1_ref, w2_ref, b2_ref, wf_ref, bf_ref,
                          mlp_w_ref, mlp_b_ref, uvqk_w_ref, uvqk_b_ref,
                          cls_w_ref, o_cls_w_ref, cls_b_ref, mask_ref, out_ref,
                          *, batch, num_kpts, p_tok, hidden, s, eps,
                          inv_sqrt_tok, inv_sqrt_hidden, inv_sqrt_s):
    f32 = jnp.float32
    bf16 = jnp.bfloat16

    # ---- conv stack as dense GEMMs (im2col / stride / padding / token
    #      transpose all folded into the precomputed weight matrices). -------
    x = x_ref[...].astype(bf16)                                     # (B, C*H*W)
    h1 = jnp.dot(x, w1_ref[...], preferred_element_type=f32) + b1_ref[...]
    h1 = jnp.maximum(h1, 0.0)                                       # (B, P1*C1)
    h2 = jnp.dot(h1.astype(bf16), w2_ref[...],
                 preferred_element_type=f32) + b2_ref[...]
    h2 = jnp.maximum(h2, 0.0)                                       # (B, P2*C2)
    feat = jnp.dot(h2.astype(bf16), wf_ref[...],
                   preferred_element_type=f32) + bf_ref[...]        # (B, K*P)

    # (B, K*P) -> (B*K, P) token matrix via static slices + sublane concat
    # (keeps Mosaic lowering simple; column layout is already k-major).
    rows = [feat[b:b + 1, k * p_tok:(k + 1) * p_tok]
            for b in range(batch) for k in range(num_kpts)]
    tok = jnp.concatenate(rows, axis=0)                             # (B*K, P)

    # ---- head: ScaleNorm -> mlp -> ScaleNorm -> merged u|v|q|k -> GAU ------
    xn = _row_norm(tok, inv_sqrt_tok, eps)
    emb = jnp.dot(xn, mlp_w_ref[...],
                  preferred_element_type=f32) + mlp_b_ref[...]      # (B*K, e)

    en = _row_norm(emb, inv_sqrt_hidden, eps)
    uvqk = jnp.dot(en, uvqk_w_ref[...],
                   preferred_element_type=f32) + uvqk_b_ref[...]    # (B*K, 2e+2s)
    u = uvqk[:, :hidden]
    v = uvqk[:, hidden:2 * hidden]
    q = uvqk[:, 2 * hidden:2 * hidden + s]
    k = uvqk[:, 2 * hidden + s:2 * hidden + 2 * s]

    # relu(q k^T / sqrt(s))^2 kernel attention; block-diagonal mask keeps the
    # attention strictly within each batch element (exactly per-batch GAU).
    qk = lax.dot_general(q, k, (((1,), (1,)), ((), ())),
                         preferred_element_type=f32) * inv_sqrt_s
    kern = jnp.maximum(qk, 0.0)
    kern = kern * kern * mask_ref[...]
    attn = u * jnp.dot(kern, v, preferred_element_type=f32)         # (B*K, e)

    # cls heads with the GAU output projection pre-folded in; 128-lane output.
    out_ref[...] = (jnp.dot(emb, cls_w_ref[...], preferred_element_type=f32)
                    + jnp.dot(attn, o_cls_w_ref[...], preferred_element_type=f32)
                    + cls_b_ref[...])                                # (B*K, 128)


# -----------------------------------------------------------------------------
# Forward (returns (simcc_x, simcc_y), like the PyTorch module)
# -----------------------------------------------------------------------------
def rtmpose_with_decode_forward(prep, x, *, simcc_x_bins=32, simcc_y_bins=32):
    B = x.shape[0]
    p_tok = prep["mlp_w"].shape[0]
    hidden = prep["mlp_w"].shape[1]
    s = (prep["uvqk_w"].shape[1] - 2 * hidden) // 2
    num_kpts = prep["wf_d"].shape[1] // p_tok
    nlanes = prep["cls_w"].shape[1]

    x_flat = x.reshape(B, -1).astype(jnp.float32)          # NCHW flatten (free)
    # block-diagonal per-batch attention mask (trace-time constant)
    mask = jnp.asarray(np.kron(np.eye(B, dtype=np.float32),
                               np.ones((num_kpts, num_kpts), np.float32)))

    kernel = functools.partial(
        _rtmpose_fused_kernel,
        batch=B, num_kpts=num_kpts, p_tok=p_tok, hidden=hidden, s=s, eps=1e-5,
        inv_sqrt_tok=1.0 / math.sqrt(p_tok),
        inv_sqrt_hidden=1.0 / math.sqrt(hidden),
        inv_sqrt_s=1.0 / math.sqrt(s))

    out = pl.pallas_call(
        kernel,
        out_shape=jax.ShapeDtypeStruct((B * num_kpts, nlanes), jnp.float32),
    )(x_flat, prep["w1_d"], prep["b1_d"], prep["w2_d"], prep["b2_d"],
      prep["wf_d"], prep["bf_d"], prep["mlp_w"], prep["mlp_b"],
      prep["uvqk_w"], prep["uvqk_b"], prep["cls_w"], prep["o_cls_w"],
      prep["cls_b"], mask)

    r = out.reshape(B, num_kpts, nlanes)
    return (r[..., :simcc_x_bins],
            r[..., simcc_x_bins:simcc_x_bins + simcc_y_bins])


# -----------------------------------------------------------------------------
# One-time parameter preparation (call OUTSIDE the jitted hot path)
# -----------------------------------------------------------------------------
def _conv_to_dense(w, b, in_h, in_w, *, stride, pad, in_is_nchw):
    """3x3 conv -> dense (Cin*H*W, OH*OW*Cout) GEMM weight (NHWC-flat output)."""
    cout, cin, kh, kw = w.shape
    oh = (in_h + 2 * pad - kh) // stride + 1
    ow = (in_w + 2 * pad - kw) // stride + 1
    wd = np.zeros((cin * in_h * in_w, oh * ow * cout), np.float32)
    for r in range(oh):
        for c in range(ow):
            p = r * ow + c
            for i in range(kh):
                hh = r * stride + i - pad
                if hh < 0 or hh >= in_h:
                    continue
                for j in range(kw):
                    ww = c * stride + j - pad
                    if ww < 0 or ww >= in_w:
                        continue
                    for ci in range(cin):
                        if in_is_nchw:
                            in_idx = ci * in_h * in_w + hh * in_w + ww
                        else:
                            in_idx = (hh * in_w + ww) * cin + ci
                        wd[in_idx, p * cout:(p + 1) * cout] = w[:, ci, i, j]
    bd = np.tile(b, oh * ow)[None, :]
    return wd, bd, oh, ow


def prepare_params(p, *, in_h=16, in_w=16):
    f32 = np.float32
    conv1_w = np.asarray(p["conv1_w"], f32)
    conv1_b = np.asarray(p["conv1_b"], f32)
    conv2_w = np.asarray(p["conv2_w"], f32)
    conv2_b = np.asarray(p["conv2_b"], f32)

    w1_d, b1_d, oh1, ow1 = _conv_to_dense(conv1_w, conv1_b, in_h, in_w,
                                          stride=2, pad=1, in_is_nchw=True)
    w2_d, b2_d, oh2, ow2 = _conv_to_dense(conv2_w, conv2_b, oh1, ow1,
                                          stride=2, pad=1, in_is_nchw=False)
    p_tok = oh2 * ow2
    c2 = conv2_w.shape[0]

    # 1x1 final conv with the (P,K)->(K,P) token transpose folded into the
    # output column ordering (k-major, position-minor).
    final_w = np.asarray(p["final_w"], f32).reshape(-1, c2)        # (K, C2)
    final_b = np.asarray(p["final_b"], f32)
    num_kpts = final_w.shape[0]
    wf_d = np.zeros((p_tok * c2, num_kpts * p_tok), f32)
    for pos in range(p_tok):
        for k in range(num_kpts):
            wf_d[pos * c2:(pos + 1) * c2, k * p_tok + pos] = final_w[k]
    bf_d = np.repeat(final_b, p_tok)[None, :]

    # ---- head folds: ScaleNorm gains + gamma/beta into following Linears ----
    e = int(np.asarray(p["mlp_w"]).shape[1])
    mlp_w = np.asarray(p["mlp_ln_g"], f32) * np.asarray(p["mlp_w"], f32)
    gau_uv_w = np.asarray(p["gau_uv_w"], f32)
    gau_uv_b = np.asarray(p["gau_uv_b"], f32)
    W_u, W_v, W_b = gau_uv_w[:, :e], gau_uv_w[:, e:2 * e], gau_uv_w[:, 2 * e:]
    b_u, b_v, b_b = gau_uv_b[:e], gau_uv_b[e:2 * e], gau_uv_b[2 * e:]
    gq = np.asarray(p["gau_gamma_q"], f32)
    bq = np.asarray(p["gau_beta_q"], f32)
    gk = np.asarray(p["gau_gamma_k"], f32)
    bk = np.asarray(p["gau_beta_k"], f32)
    g_gau = np.asarray(p["gau_ln_g"], f32)
    uvqk_w = g_gau * np.concatenate([W_u, W_v, W_b * gq, W_b * gk], axis=1)
    uvqk_b = np.concatenate([b_u, b_v, b_b * gq + bq, b_b * gk + bk], axis=0)

    # merged cls heads, GAU output projection folded in, zero-padded to 128
    # lanes for unmasked (lane-dense) stores.
    cls_w = np.concatenate([np.asarray(p["cls_x_w"], f32),
                            np.asarray(p["cls_y_w"], f32)], axis=1)  # (e, 64)
    cls_b = np.concatenate([np.asarray(p["cls_x_b"], f32),
                            np.asarray(p["cls_y_b"], f32)], axis=0)  # (64,)
    o_w = np.asarray(p["gau_o_w"], f32)
    o_b = np.asarray(p["gau_o_b"], f32)
    o_cls_w = o_w @ cls_w                       # emb + attn@o_w + o_b, then @cls
    cls_b_tot = o_b @ cls_w + cls_b
    lanes = 128
    padc = lanes - cls_w.shape[1]
    cls_w = np.pad(cls_w, ((0, 0), (0, padc)))
    o_cls_w = np.pad(o_cls_w, ((0, 0), (0, padc)))
    cls_b_tot = np.pad(cls_b_tot, (0, padc))[None, :]

    as_f32 = lambda a: jnp.asarray(a, jnp.float32)
    as_bf16 = lambda a: jnp.asarray(a, jnp.bfloat16)
    return {
        # bf16 MXU inputs for the big dense conv GEMMs (f32 accumulation)
        "w1_d": as_bf16(w1_d), "b1_d": as_f32(b1_d),
        "w2_d": as_bf16(w2_d), "b2_d": as_f32(b2_d),
        "wf_d": as_bf16(wf_d), "bf_d": as_f32(bf_d),
        # head weights stay f32 (tiny; surrounding VPU math is f32 everywhere)
        "mlp_w": as_f32(mlp_w), "mlp_b": as_f32(np.asarray(p["mlp_b"], f32)[None, :]),
        "uvqk_w": as_f32(uvqk_w), "uvqk_b": as_f32(uvqk_b[None, :]),
        "cls_w": as_f32(cls_w), "o_cls_w": as_f32(o_cls_w), "cls_b": as_f32(cls_b_tot),
    }


# -----------------------------------------------------------------------------
# Deterministic synthetic parameters (stand-in for init_model(config, ckpt))
# -----------------------------------------------------------------------------
def make_params(key, *, cin=3, c1=16, c2=32, num_kpts=8, feat_hw=16,
                hidden=32, s=16, simcc_x_bins=32, simcc_y_bins=32):
    keys = jax.random.split(key, 16)
    n = lambda k, shape, sc=0.05: (sc * jax.random.normal(k, shape)).astype(jnp.float32)
    z = lambda shape: jnp.zeros(shape, jnp.float32)
    return {
        "conv1_w": n(keys[0], (c1, cin, 3, 3)), "conv1_b": z((c1,)),
        "conv2_w": n(keys[1], (c2, c1, 3, 3)), "conv2_b": z((c2,)),
        "final_w": n(keys[2], (num_kpts, c2, 1, 1)), "final_b": z((num_kpts,)),
        "mlp_ln_g": jnp.asarray(math.sqrt(feat_hw), jnp.float32),
        "mlp_w": n(keys[3], (feat_hw, hidden)), "mlp_b": z((hidden,)),
        "gau_ln_g": jnp.asarray(math.sqrt(hidden), jnp.float32),
        "gau_uv_w": n(keys[4], (hidden, 2 * hidden + s)),
        "gau_uv_b": z((2 * hidden + s,)),
        "gau_gamma_q": 1.0 + n(keys[5], (s,)), "gau_beta_q": n(keys[6], (s,)),
        "gau_gamma_k": 1.0 + n(keys[7], (s,)), "gau_beta_k": n(keys[8], (s,)),
        "gau_o_w": n(keys[9], (hidden, hidden)), "gau_o_b": z((hidden,)),
        "cls_x_w": n(keys[10], (hidden, simcc_x_bins)), "cls_x_b": z((simcc_x_bins,)),
        "cls_y_w": n(keys[11], (hidden, simcc_y_bins)), "cls_y_b": z((simcc_y_bins,)),
    }


if __name__ == "__main__":
    key = jax.random.PRNGKey(0)
    k_param, k_input = jax.random.split(key)

    # small shapes: batch=2, channels=3, spatial=16x16, K=8 keypoints,
    # simcc_x: (2, 8, 32), simcc_y: (2, 8, 32)
    params = make_params(k_param)
    prep = prepare_params(params)            # one-time, outside the hot path
    x = jax.random.normal(k_input, (2, 3, 16, 16), dtype=jnp.float32)  # NCHW

    fwd = jax.jit(rtmpose_with_decode_forward)
    simcc_x, simcc_y = fwd(prep, x)
    jax.block_until_ready((simcc_x, simcc_y))

    assert simcc_x.shape == (2, 8, 32) and simcc_y.shape == (2, 8, 32)
    assert simcc_x.dtype == jnp.float32 and simcc_y.dtype == jnp.float32
    assert bool(jnp.all(jnp.isfinite(simcc_x))) and bool(jnp.all(jnp.isfinite(simcc_y)))
    print("KERNEL_OK")
</pallas_src>

<mosaic_0001>
module attributes {stable_mosaic.version = 11 : i64} {
  func.func @_rtmpose_fused_kernel(%arg0: memref<2x768xf32, #tpu.memory_space<vmem>>, %arg1: memref<768x1024xbf16, #tpu.memory_space<vmem>>, %arg2: memref<1x1024xf32, #tpu.memory_space<vmem>>, %arg3: memref<1024x512xbf16, #tpu.memory_space<vmem>>, %arg4: memref<1x512xf32, #tpu.memory_space<vmem>>, %arg5: memref<512x128xbf16, #tpu.memory_space<vmem>>, %arg6: memref<1x128xf32, #tpu.memory_space<vmem>>, %arg7: memref<16x32xf32, #tpu.memory_space<vmem>>, %arg8: memref<1x32xf32, #tpu.memory_space<vmem>>, %arg9: memref<32x96xf32, #tpu.memory_space<vmem>>, %arg10: memref<1x96xf32, #tpu.memory_space<vmem>>, %arg11: memref<32x128xf32, #tpu.memory_space<vmem>>, %arg12: memref<32x128xf32, #tpu.memory_space<vmem>>, %arg13: memref<1x128xf32, #tpu.memory_space<vmem>>, %arg14: memref<16x16xf32, #tpu.memory_space<vmem>>, %arg15: memref<16x128xf32, #tpu.memory_space<vmem>>) attributes {dimension_semantics = [], scalar_prefetch = 0 : i64, scratch_operands = 0 : i64, tpu.core_type = #tpu.core_type<tc>} {
    %c0 = arith.constant 0 : index
    %c0_0 = arith.constant 0 : index
    %0 = vector.load %arg0[%c0, %c0_0] : memref<2x768xf32, #tpu.memory_space<vmem>>, vector<2x768xf32>
    %1 = arith.truncf %0 : vector<2x768xf32> to vector<2x768xbf16>
    %c0_1 = arith.constant 0 : index
    %c0_2 = arith.constant 0 : index
    %2 = vector.load %arg1[%c0_1, %c0_2] : memref<768x1024xbf16, #tpu.memory_space<vmem>>, vector<768x1024xbf16>
    %cst = arith.constant dense<0.000000e+00> : vector<2x1024xf32>
    %3 = tpu.matmul %1, %2, %cst {dimension_numbers = #tpu.dot_dimension_numbers<[1], [0], [0], [1], [0, 0, 1, 1], [], []>} : vector<2x768xbf16>, vector<768x1024xbf16>, vector<2x1024xf32> -> vector<2x1024xf32>
    %c0_3 = arith.constant 0 : index
    %c0_4 = arith.constant 0 : index
    %4 = vector.load %arg2[%c0_3, %c0_4] : memref<1x1024xf32, #tpu.memory_space<vmem>>, vector<1x1024xf32>
    %5 = vector.broadcast %4 : vector<1x1024xf32> to vector<2x1024xf32>
    %6 = arith.addf %3, %5 : vector<2x1024xf32>
    %cst_5 = arith.constant 0.000000e+00 : f32
    %7 = vector.broadcast %cst_5 : f32 to vector<2x1024xf32>
    %8 = arith.maximumf %6, %7 : vector<2x1024xf32>
    %9 = arith.truncf %8 : vector<2x1024xf32> to vector<2x1024xbf16>
    %c0_6 = arith.constant 0 : index
    %c0_7 = arith.constant 0 : index
    %10 = vector.load %arg3[%c0_6, %c0_7] : memref<1024x512xbf16, #tpu.memory_space<vmem>>, vector<1024x512xbf16>
    %cst_8 = arith.constant dense<0.000000e+00> : vector<2x512xf32>
    %11 = tpu.matmul %9, %10, %cst_8 {dimension_numbers = #tpu.dot_dimension_numbers<[1], [0], [0], [1], [0, 0, 1, 1], [], []>} : vector<2x1024xbf16>, vector<1024x512xbf16>, vector<2x512xf32> -> vector<2x512xf32>
    %c0_9 = arith.constant 0 : index
    %c0_10 = arith.constant 0 : index
    %12 = vector.load %arg4[%c0_9, %c0_10] : memref<1x512xf32, #tpu.memory_space<vmem>>, vector<1x512xf32>
    %13 = vector.broadcast %12 : vector<1x512xf32> to vector<2x512xf32>
    %14 = arith.addf %11, %13 : vector<2x512xf32>
    %cst_11 = arith.constant 0.000000e+00 : f32
    %15 = vector.broadcast %cst_11 : f32 to vector<2x512xf32>
    %16 = arith.maximumf %14, %15 : vector<2x512xf32>
    %17 = arith.truncf %16 : vector<2x512xf32> to vector<2x512xbf16>
    %c0_12 = arith.constant 0 : index
    %c0_13 = arith.constant 0 : index
    %18 = vector.load %arg5[%c0_12, %c0_13] : memref<512x128xbf16, #tpu.memory_space<vmem>>, vector<512x128xbf16>
    %cst_14 = arith.constant dense<0.000000e+00> : vector<2x128xf32>
    %19 = tpu.matmul %17, %18, %cst_14 {dimension_numbers = #tpu.dot_dimension_numbers<[1], [0], [0], [1], [0, 0, 1, 1], [], []>} : vector<2x512xbf16>, vector<512x128xbf16>, vector<2x128xf32> -> vector<2x128xf32>
    %c0_15 = arith.constant 0 : index
    %c0_16 = arith.constant 0 : index
    %20 = vector.load %arg6[%c0_15, %c0_16] : memref<1x128xf32, #tpu.memory_space<vmem>>, vector<1x128xf32>
    %21 = vector.broadcast %20 : vector<1x128xf32> to vector<2x128xf32>
    %22 = arith.addf %19, %21 : vector<2x128xf32>
    %23 = vector.extract_strided_slice %22 {offsets = [0, 0], sizes = [1, 16], strides = [1, 1]} : vector<2x128xf32> to vector<1x16xf32>
    %24 = vector.extract_strided_slice %22 {offsets = [0, 16], sizes = [1, 16], strides = [1, 1]} : vector<2x128xf32> to vector<1x16xf32>
    %25 = vector.extract_strided_slice %22 {offsets = [0, 32], sizes = [1, 16], strides = [1, 1]} : vector<2x128xf32> to vector<1x16xf32>
    %26 = vector.extract_strided_slice %22 {offsets = [0, 48], sizes = [1, 16], strides = [1, 1]} : vector<2x128xf32> to vector<1x16xf32>
    %27 = vector.extract_strided_slice %22 {offsets = [0, 64], sizes = [1, 16], strides = [1, 1]} : vector<2x128xf32> to vector<1x16xf32>
    %28 = vector.extract_strided_slice %22 {offsets = [0, 80], sizes = [1, 16], strides = [1, 1]} : vector<2x128xf32> to vector<1x16xf32>
    %29 = vector.extract_strided_slice %22 {offsets = [0, 96], sizes = [1, 16], strides = [1, 1]} : vector<2x128xf32> to vector<1x16xf32>
    %30 = vector.extract_strided_slice %22 {offsets = [0, 112], sizes = [1, 16], strides = [1, 1]} : vector<2x128xf32> to vector<1x16xf32>
    %31 = vector.extract_strided_slice %22 {offsets = [1, 0], sizes = [1, 16], strides = [1, 1]} : vector<2x128xf32> to vector<1x16xf32>
    %32 = vector.extract_strided_slice %22 {offsets = [1, 16], sizes = [1, 16], strides = [1, 1]} : vector<2x128xf32> to vector<1x16xf32>
    %33 = vector.extract_strided_slice %22 {offsets = [1, 32], sizes = [1, 16], strides = [1, 1]} : vector<2x128xf32> to vector<1x16xf32>
    %34 = vector.extract_strided_slice %22 {offsets = [1, 48], sizes = [1, 16], strides = [1, 1]} : vector<2x128xf32> to vector<1x16xf32>
    %35 = vector.extract_strided_slice %22 {offsets = [1, 64], sizes = [1, 16], strides = [1, 1]} : vector<2x128xf32> to vector<1x16xf32>
    %36 = vector.extract_strided_slice %22 {offsets = [1, 80], sizes = [1, 16], strides = [1, 1]} : vector<2x128xf32> to vector<1x16xf32>
    %37 = vector.extract_strided_slice %22 {offsets = [1, 96], sizes = [1, 16], strides = [1, 1]} : vector<2x128xf32> to vector<1x16xf32>
    %38 = vector.extract_strided_slice %22 {offsets = [1, 112], sizes = [1, 16], strides = [1, 1]} : vector<2x128xf32> to vector<1x16xf32>
    %39 = tpu.concatenate %23, %24, %25, %26, %27, %28, %29, %30, %31, %32, %33, %34, %35, %36, %37, %38 in 0 : vector<1x16xf32>, vector<1x16xf32>, vector<1x16xf32>, vector<1x16xf32>, vector<1x16xf32>, vector<1x16xf32>, vector<1x16xf32>, vector<1x16xf32>, vector<1x16xf32>, vector<1x16xf32>, vector<1x16xf32>, vector<1x16xf32>, vector<1x16xf32>, vector<1x16xf32>, vector<1x16xf32>, vector<1x16xf32> -> vector<16x16xf32>
    %40 = arith.mulf %39, %39 : vector<16x16xf32>
    %cst_17 = arith.constant dense<0.000000e+00> : vector<16xf32>
    %41 = vector.multi_reduction <add>, %40, %cst_17 [1] : vector<16x16xf32> to vector<16xf32>
    %42 = vector.shape_cast %41 : vector<16xf32> to vector<16x1xf32>
    %43 = math.sqrt %42 : vector<16x1xf32>
    %cst_18 = arith.constant 2.500000e-01 : f32
    %44 = vector.broadcast %cst_18 : f32 to vector<16x1xf32>
    %45 = arith.mulf %43, %44 : vector<16x1xf32>
    %cst_19 = arith.constant 9.99999974E-6 : f32
    %46 = vector.broadcast %cst_19 : f32 to vector<16x1xf32>
    %47 = arith.maximumf %45, %46 : vector<16x1xf32>
    %48 = vector.broadcast %47 : vector<16x1xf32> to vector<16x16xf32>
    %49 = arith.divf %39, %48 : vector<16x16xf32>
    %c0_20 = arith.constant 0 : index
    %c0_21 = arith.constant 0 : index
    %50 = vector.load %arg7[%c0_20, %c0_21] : memref<16x32xf32, #tpu.memory_space<vmem>>, vector<16x32xf32>
    %cst_22 = arith.constant dense<0.000000e+00> : vector<16x32xf32>
    %51 = tpu.matmul %49, %50, %cst_22 {dimension_numbers = #tpu.dot_dimension_numbers<[1], [0], [0], [1], [0, 0, 1, 1], [], []>} : vector<16x16xf32>, vector<16x32xf32>, vector<16x32xf32> -> vector<16x32xf32>
    %c0_23 = arith.constant 0 : index
    %c0_24 = arith.constant 0 : index
    %52 = vector.load %arg8[%c0_23, %c0_24] : memref<1x32xf32, #tpu.memory_space<vmem>>, vector<1x32xf32>
    %53 = vector.broadcast %52 : vector<1x32xf32> to vector<16x32xf32>
    %54 = arith.addf %51, %53 : vector<16x32xf32>
    %55 = arith.mulf %54, %54 : vector<16x32xf32>
    %cst_25 = arith.constant dense<0.000000e+00> : vector<16xf32>
    %56 = vector.multi_reduction <add>, %55, %cst_25 [1] : vector<16x32xf32> to vector<16xf32>
    %57 = vector.shape_cast %56 : vector<16xf32> to vector<16x1xf32>
    %58 = math.sqrt %57 : vector<16x1xf32>
    %cst_26 = arith.constant 0.176776692 : f32
    %59 = vector.broadcast %cst_26 : f32 to vector<16x1xf32>
    %60 = arith.mulf %58, %59 : vector<16x1xf32>
    %cst_27 = arith.constant 9.99999974E-6 : f32
    %61 = vector.broadcast %cst_27 : f32 to vector<16x1xf32>
    %62 = arith.maximumf %60, %61 : vector<16x1xf32>
    %63 = vector.broadcast %62 : vector<16x1xf32> to vector<16x32xf32>
    %64 = arith.divf %54, %63 : vector<16x32xf32>
    %c0_28 = arith.constant 0 : index
    %c0_29 = arith.constant 0 : index
    %65 = vector.load %arg9[%c0_28, %c0_29] : memref<32x96xf32, #tpu.memory_space<vmem>>, vector<32x96xf32>
    %cst_30 = arith.constant dense<0.000000e+00> : vector<16x96xf32>
    %66 = tpu.matmul %64, %65, %cst_30 {dimension_numbers = #tpu.dot_dimension_numbers<[1], [0], [0], [1], [0, 0, 1, 1], [], []>} : vector<16x32xf32>, vector<32x96xf32>, vector<16x96xf32> -> vector<16x96xf32>
    %c0_31 = arith.constant 0 : index
    %c0_32 = arith.constant 0 : index
    %67 = vector.load %arg10[%c0_31, %c0_32] : memref<1x96xf32, #tpu.memory_space<vmem>>, vector<1x96xf32>
    %68 = vector.broadcast %67 : vector<1x96xf32> to vector<16x96xf32>
    %69 = arith.addf %66, %68 : vector<16x96xf32>
    %70 = vector.extract_strided_slice %69 {offsets = [0, 0], sizes = [16, 32], strides = [1, 1]} : vector<16x96xf32> to vector<16x32xf32>
    %71 = vector.extract_strided_slice %69 {offsets = [0, 32], sizes = [16, 32], strides = [1, 1]} : vector<16x96xf32> to vector<16x32xf32>
    %72 = vector.extract_strided_slice %69 {offsets = [0, 64], sizes = [16, 16], strides = [1, 1]} : vector<16x96xf32> to vector<16x16xf32>
    %73 = vector.extract_strided_slice %69 {offsets = [0, 80], sizes = [16, 16], strides = [1, 1]} : vector<16x96xf32> to vector<16x16xf32>
    %cst_33 = arith.constant dense<0.000000e+00> : vector<16x16xf32>
    %74 = tpu.matmul %72, %73, %cst_33 {dimension_numbers = #tpu.dot_dimension_numbers<[1], [1], [0], [0], [0, 0, 1, 0], [], []>} : vector<16x16xf32>, vector<16x16xf32>, vector<16x16xf32> -> vector<16x16xf32>
    %cst_34 = arith.constant 2.500000e-01 : f32
    %75 = vector.broadcast %cst_34 : f32 to vector<16x16xf32>
    %76 = arith.mulf %74, %75 : vector<16x16xf32>
    %cst_35 = arith.constant 0.000000e+00 : f32
    %77 = vector.broadcast %cst_35 : f32 to vector<16x16xf32>
    %78 = arith.maximumf %76, %77 : vector<16x16xf32>
    %79 = arith.mulf %78, %78 : vector<16x16xf32>
    %c0_36 = arith.constant 0 : index
    %c0_37 = arith.constant 0 : index
    %80 = vector.load %arg14[%c0_36, %c0_37] : memref<16x16xf32, #tpu.memory_space<vmem>>, vector<16x16xf32>
    %81 = arith.mulf %79, %80 : vector<16x16xf32>
    %cst_38 = arith.constant dense<0.000000e+00> : vector<16x32xf32>
    %82 = tpu.matmul %81, %71, %cst_38 {dimension_numbers = #tpu.dot_dimension_numbers<[1], [0], [0], [1], [0, 0, 1, 1], [], []>} : vector<16x16xf32>, vector<16x32xf32>, vector<16x32xf32> -> vector<16x32xf32>
    %83 = arith.mulf %70, %82 : vector<16x32xf32>
    %c0_39 = arith.constant 0 : index
    %c0_40 = arith.constant 0 : index
    %84 = vector.load %arg11[%c0_39, %c0_40] : memref<32x128xf32, #tpu.memory_space<vmem>>, vector<32x128xf32>
    %cst_41 = arith.constant dense<0.000000e+00> : vector<16x128xf32>
    %85 = tpu.matmul %54, %84, %cst_41 {dimension_numbers = #tpu.dot_dimension_numbers<[1], [0], [0], [1], [0, 0, 1, 1], [], []>} : vector<16x32xf32>, vector<32x128xf32>, vector<16x128xf32> -> vector<16x128xf32>
    %c0_42 = arith.constant 0 : index
    %c0_43 = arith.constant 0 : index
    %86 = vector.load %arg12[%c0_42, %c0_43] : memref<32x128xf32, #tpu.memory_space<vmem>>, vector<32x128xf32>
    %cst_44 = arith.constant dense<0.000000e+00> : vector<16x128xf32>
    %87 = tpu.matmul %83, %86, %cst_44 {dimension_numbers = #tpu.dot_dimension_numbers<[1], [0], [0], [1], [0, 0, 1, 1], [], []>} : vector<16x32xf32>, vector<32x128xf32>, vector<16x128xf32> -> vector<16x128xf32>
    %88 = arith.addf %85, %87 : vector<16x128xf32>
    %c0_45 = arith.constant 0 : index
    %c0_46 = arith.constant 0 : index
    %89 = vector.load %arg13[%c0_45, %c0_46] : memref<1x128xf32, #tpu.memory_space<vmem>>, vector<1x128xf32>
    %90 = vector.broadcast %89 : vector<1x128xf32> to vector<16x128xf32>
    %91 = arith.addf %88, %90 : vector<16x128xf32>
    %c0_47 = arith.constant 0 : index
    %c0_48 = arith.constant 0 : index
    %92 = vector.load %arg15[%c0_47, %c0_48] : memref<16x128xf32, #tpu.memory_space<vmem>>, vector<16x128xf32>
    tpu.vector_store %arg15[%c0_47, %c0_48], %91 {strides = array<i32>} : memref<16x128xf32, #tpu.memory_space<vmem>>, vector<16x128xf32>,
    return
  }
}

</mosaic_0001>

<bundles_post_ra>
// kernel: rtmpose_with_decode_forward.1
= control target key start
LH: loop header
LB: loop body
LE: loop exit
PB: predicated region body
PF: predicated region fallthrough
CT: control target
= control target key end

     0   :  { %20 = vsyncpa [#allocation3], 0  ;;  %s8259_s0 = inlined_call_operand.vmem [shape: f32[2,768], index: 0, kind: input, shape index: {}]   ;;  %s8260_s1 = inlined_call_operand.hbm [shape: bf16[768,1024], index: 1, kind: input, shape index: {}]   ;;  %s8261_s2 = inlined_call_operand.hbm [shape: f32[1,1024], index: 2, kind: input, shape index: {}]   ;;  %s8262_s3 = inlined_call_operand.hbm [shape: bf16[1024,512], index: 3, kind: input, shape index: {}]   ;;  %s8263_s4 = inlined_call_operand.hbm [shape: f32[1,512], index: 4, kind: input, shape index: {}]   ;;  %s8264_s5 = inlined_call_operand.hbm [shape: bf16[512,128], index: 5, kind: input, shape index: {}]   ;;  %s8265_s6 = inlined_call_operand.hbm [shape: f32[1,128], index: 6, kind: input, shape index: {}]   ;;  %s8266_s7 = inlined_call_operand.hbm [shape: f32[16,32], index: 7, kind: input, shape index: {}]   ;;  %s8267_s8 = inlined_call_operand.hbm [shape: f32[1,32], index: 8, kind: input, shape index: {}]   ;;  %s8268_s9 = inlined_call_operand.hbm [shape: f32[32,96], index: 9, kind: input, shape index: {}]   ;;  %s8269_s10 = inlined_call_operand.hbm [shape: f32[1,96], index: 10, kind: input, shape index: {}]   ;;  %s8270_s11 = inlined_call_operand.hbm [shape: f32[32,128], index: 11, kind: input, shape index: {}]   ;;  %s8271_s12 = inlined_call_operand.hbm [shape: f32[32,128], index: 12, kind: input, shape index: {}]   ;;  %s8272_s13 = inlined_call_operand.hbm [shape: f32[1,128], index: 13, kind: input, shape index: {}]   ;;  %s8273_s14 = inlined_call_operand.hbm [shape: f32[16,16], index: 14, kind: input, shape index: {}]   ;;  %s8274_s15 = inlined_call_operand.vmem [shape: f32[16,128], index: 15, kind: output, shape index: {}]  }
   0x1   :  { %21 = vsyncpa [#allocation5], 0 }
   0x2   :  { %22 = vsyncpa [#allocation8], 0 }
   0x3   :  { %23 = vsyncpa [#allocation11], 0 }
   0x4   :  { %24 = vsyncpa [#allocation14], 0 }
   0x5   :  { %25 = vsyncpa [#allocation17], 0 }
   0x6   :  { %26 = vsyncpa [#allocation20], 0 }
   0x7   :  { %27 = vsyncpa [#allocation23], 0  ;;  %s7784_s18 = smov [#allocation4]   ;;  %s7785_s20 = smov [#allocation7]  }
   0x8   :  { %s48_s19 = sshll.u32 %s7784_s18, 4  ;;  %s70_s21 = sshll.u32 %s7785_s20, 4  ;;  %s49_s19 = int_to_ptr.vmem [resolvable:$true] %s48_s19  ;;  %s71_s21 = int_to_ptr.vmem [resolvable:$true] %s70_s21 }
   0x9   :  { %s7460_s24 = scalar_lea.hbm %s8261_s2, 128 }
   0xa   :  { %p7461_p0 = scmp.ne.s32.totalorder %s8261_s2, %s7460_s24  ;;  %p7464_p1 = scmp.lt.u32.totalorder %s7460_s24, %s8261_s2 }
   0xc   :  { %p7466_p2 = pnand %p7464_p1, %p7461_p0 }
   0xe   :  { %7469 = shalt.err (!%p7466_p2)
}
   0xf   :  { %s7470_s29 = scalar_lea.vmem %s49_s19, 128  ;;  %p7475_p4 = scmp.lt.s32.totalorder %s49_s19, %s49_s19 }
  0x10   :  { %p7471_p3 = scmp.ne.s32.totalorder %s49_s19, %s7470_s29  ;;  %p7476_p5 = scmp.lt.s32.totalorder %s7470_s29, %s7470_s29 }
  0x12   :  { %p7477_p6 = por %p7476_p5, %p7475_p4 }
  0x14   :  { %p7478_p7 = pnand %p7477_p6, %p7471_p3 }
  0x16   :  { %7481 = shalt.err (!%p7478_p7)
}
  0x17   :  { %51 = dma.hbm_to_vmem [thread:$0]  %s8261_s2, 128, %s49_s19, [#allocation5]  }
  0x18   :  { %s7482_s20 = scalar_lea.hbm %s8263_s4, 64 }
  0x19   :  { %p7483_p8 = scmp.ne.s32.totalorder %s8263_s4, %s7482_s20  ;;  %p7486_p9 = scmp.lt.u32.totalorder %s7482_s20, %s8263_s4 }
  0x1b   :  { %p7488_p10 = pnand %p7486_p9, %p7483_p8 }
  0x1d   :  { %7491 = shalt.err (!%p7488_p10)
}
  0x1e   :  { %s7492_s26 = scalar_lea.vmem %s71_s21, 64  ;;  %p7497_p12 = scmp.lt.s32.totalorder %s71_s21, %s71_s21 }
  0x1f   :  { %p7493_p11 = scmp.ne.s32.totalorder %s71_s21, %s7492_s26  ;;  %p7498_p13 = scmp.lt.s32.totalorder %s7492_s26, %s7492_s26 }
  0x21   :  { %p7499_p0 = por %p7498_p13, %p7497_p12 }
  0x23   :  { %p7500_p1 = pnand %p7499_p0, %p7493_p11 }
  0x25   :  { %7503 = shalt.err (!%p7500_p1)
}
  0x26   :  { %73 = dma.hbm_to_vmem [thread:$0]  %s8263_s4, 64, %s71_s21, [#allocation8]  }
  0x27   :  { %s7786_s27 = smov [#allocation10]   ;;  %s7787_s29 = smov [#allocation13]  }
  0x28   :  { %s92_s28 = sshll.u32 %s7786_s27, 4  ;;  %s114_s30 = sshll.u32 %s7787_s29, 4  ;;  %s93_s28 = int_to_ptr.vmem [resolvable:$true] %s92_s28  ;;  %s115_s30 = int_to_ptr.vmem [resolvable:$true] %s114_s30 }
  0x29   :  { %s7504_s18 = scalar_lea.hbm %s8265_s6, 16 }
  0x2a   :  { %p7505_p2 = scmp.ne.s32.totalorder %s8265_s6, %s7504_s18  ;;  %p7508_p3 = scmp.lt.u32.totalorder %s7504_s18, %s8265_s6 }
  0x2c   :  { %p7510_p4 = pnand %p7508_p3, %p7505_p2 }
  0x2e   :  { %7513 = shalt.err (!%p7510_p4)
}
  0x2f   :  { %s7514_s4 = scalar_lea.vmem %s93_s28, 16  ;;  %s7518_s21 = scalar_lea.vmem %s93_s28, 32 }
  0x30   :  { %p7515_p5 = scmp.ne.s32.totalorder %s93_s28, %s7514_s4  ;;  %p7519_p6 = scmp.lt.s32.totalorder %s93_s28, %s93_s28 }
  0x31   :  { %p7520_p7 = scmp.lt.s32.totalorder %s7518_s21, %s7514_s4 }
  0x33   :  { %p7521_p8 = por %p7520_p7, %p7519_p6 }
  0x35   :  { %p7522_p9 = pnand %p7521_p8, %p7515_p5 }
  0x37   :  { %7525 = shalt.err (!%p7522_p9)
}
  0x38   :  { %95 = dma.hbm_to_vmem [thread:$0]  %s8265_s6, 16, %s93_s28, [#allocation11]  }
  0x39   :  { %s7526_s27 = scalar_lea.hbm %s8267_s8, 16 }
  0x3a   :  { %p7527_p10 = scmp.ne.s32.totalorder %s8267_s8, %s7526_s27  ;;  %p7530_p11 = scmp.lt.u32.totalorder %s7526_s27, %s8267_s8 }
  0x3c   :  { %p7532_p12 = pnand %p7530_p11, %p7527_p10 }
  0x3e   :  { %7535 = shalt.err (!%p7532_p12)
}
  0x3f   :  { %s7536_s20 = scalar_lea.vmem %s115_s30, 16  ;;  %s7540_s22 = scalar_lea.vmem %s115_s30, 32 }
  0x40   :  { %p7537_p13 = scmp.ne.s32.totalorder %s115_s30, %s7536_s20  ;;  %p7541_p0 = scmp.lt.s32.totalorder %s115_s30, %s115_s30 }
  0x41   :  { %p7542_p1 = scmp.lt.s32.totalorder %s7540_s22, %s7536_s20 }
  0x43   :  { %p7543_p2 = por %p7542_p1, %p7541_p0 }
  0x45   :  { %p7544_p3 = pnand %p7543_p2, %p7537_p13 }
  0x47   :  { %7547 = shalt.err (!%p7544_p3)
}
  0x48   :  { %117 = dma.hbm_to_vmem [thread:$0]  %s8267_s8, 16, %s115_s30, [#allocation14]  }
  0x49   :  { %s7788_s23 = smov [#allocation16]   ;;  %s7548_s25 = scalar_lea.hbm %s8269_s10, 16 }
  0x4a   :  { %s136_s24 = sshll.u32 %s7788_s23, 4  ;;  %p7549_p4 = scmp.ne.s32.totalorder %s8269_s10, %s7548_s25  ;;  %s137_s24 = int_to_ptr.vmem [resolvable:$true] %s136_s24 }
  0x4b   :  { %p7552_p5 = scmp.lt.u32.totalorder %s7548_s25, %s8269_s10 }
  0x4d   :  { %p7554_p6 = pnand %p7552_p5, %p7549_p4 }
  0x4f   :  { %7557 = shalt.err (!%p7554_p6)
}
  0x50   :  { %s7558_s29 = scalar_lea.vmem %s137_s24, 16  ;;  %s7562_s8 = scalar_lea.vmem %s137_s24, 32 }
  0x51   :  { %p7559_p7 = scmp.ne.s32.totalorder %s137_s24, %s7558_s29  ;;  %p7563_p8 = scmp.lt.s32.totalorder %s137_s24, %s137_s24 }
  0x52   :  { %p7564_p9 = scmp.lt.s32.totalorder %s7562_s8, %s7558_s29 }
  0x54   :  { %p7565_p10 = por %p7564_p9, %p7563_p8 }
  0x56   :  { %p7566_p11 = pnand %p7565_p10, %p7559_p7 }
  0x58   :  { %7569 = shalt.err (!%p7566_p11)
}
  0x59   :  { %139 = dma.hbm_to_vmem [thread:$0]  %s8269_s10, 16, %s137_s24, [#allocation17]  }
  0x5a   :  { %s7789_s17 = smov [#allocation19]   ;;  %s7790_s20 = smov [#allocation2]  }
  0x5b   :  { %s157_s18 = sshll.u32 %s7789_s17, 4  ;;  %s35_s22 = sshll.u32 %s7790_s20, 4  ;;  %s158_s18 = int_to_ptr.vmem [resolvable:$true] %s157_s18  ;;  %s36_s22 = int_to_ptr.vmem [resolvable:$true] %s35_s22 }
  0x5c   :  { %s7570_s23 = scalar_lea.hbm %s8271_s12, 512 }
  0x5d   :  { %p7571_p12 = scmp.ne.s32.totalorder %s8271_s12, %s7570_s23  ;;  %p7574_p13 = scmp.lt.u32.totalorder %s7570_s23, %s8271_s12 }
  0x5f   :  { %p7576_p0 = pnand %p7574_p13, %p7571_p12 }
  0x61   :  { %7579 = shalt.err (!%p7576_p0)
}
  0x62   :  { %s7580_s10 = scalar_lea.vmem %s158_s18, 512  ;;  %p7585_p2 = scmp.lt.s32.totalorder %s158_s18, %s158_s18 }
  0x63   :  { %p7581_p1 = scmp.ne.s32.totalorder %s158_s18, %s7580_s10  ;;  %p7586_p3 = scmp.lt.s32.totalorder %s7580_s10, %s7580_s10 }
  0x65   :  { %p7587_p4 = por %p7586_p3, %p7585_p2 }
  0x67   :  { %p7588_p5 = pnand %p7587_p4, %p7581_p1 }
  0x69   :  { %7591 = shalt.err (!%p7588_p5)
}
  0x6a   :  { %s7791_s24 = smov 128   ;;  %s7792_s2 = smov 8  }
  0x6b   :  { %163 = dma.hbm_to_vmem [thread:$0]  %s8271_s12, 512, %s158_s18, [#allocation20], %s7791_s24, %s7791_s24, %s7792_s2  }
  0x6c   :  { %s7592_s30 = scalar_lea.hbm %s8260_s1, 49152 }
  0x6d   :  { %p7593_p6 = scmp.ne.s32.totalorder %s8260_s1, %s7592_s30  ;;  %p7596_p7 = scmp.lt.u32.totalorder %s7592_s30, %s8260_s1 }
  0x6f   :  { %p7598_p8 = pnand %p7596_p7, %p7593_p6 }
  0x71   :  { %7601 = shalt.err (!%p7598_p8)
}
  0x72   :  { %s7602_s28 = scalar_lea.vmem %s36_s22, 49152  ;;  %p7607_p10 = scmp.lt.s32.totalorder %s36_s22, %s36_s22 }
  0x73   :  { %p7603_p9 = scmp.ne.s32.totalorder %s36_s22, %s7602_s28  ;;  %p7608_p11 = scmp.lt.s32.totalorder %s7602_s28, %s7602_s28 }
  0x75   :  { %p7609_p12 = por %p7608_p11, %p7607_p10 }
  0x77   :  { %p7610_p13 = pnand %p7609_p12, %p7603_p9 }
  0x79   :  { %7613 = shalt.err (!%p7610_p13)
}
  0x7a   :  { %s7793_s12 = smov 512   ;;  %s7794_s18 = smov 32  }
  0x7b   :  { %41 = dma.hbm_to_vmem [thread:$0]  %s8260_s1, 49152, %s36_s22, [#allocation3], %s7793_s12, %s7793_s12, %s7794_s18  }
  0x7c   :  { %s7795_s21 = smov [#allocation6]   ;;  %s7614_s19 = scalar_lea.hbm %s8262_s3, 32768 }
  0x7d   :  { %s57_s25 = sshll.u32 %s7795_s21, 4  ;;  %p7615_p0 = scmp.ne.s32.totalorder %s8262_s3, %s7614_s19  ;;  %s58_s25 = int_to_ptr.vmem [resolvable:$true] %s57_s25 }
  0x7e   :  { %p7618_p1 = scmp.lt.u32.totalorder %s7614_s19, %s8262_s3 }
  0x80   :  { %p7620_p2 = pnand %p7618_p1, %p7615_p0 }
  0x82   :  { %7623 = shalt.err (!%p7620_p2)
}
  0x83   :  { %s7624_s16 = scalar_lea.vmem %s58_s25, 32768  ;;  %p7629_p4 = scmp.lt.s32.totalorder %s58_s25, %s58_s25 }
  0x84   :  { %p7625_p3 = scmp.ne.s32.totalorder %s58_s25, %s7624_s16  ;;  %p7630_p5 = scmp.lt.s32.totalorder %s7624_s16, %s7624_s16 }
  0x86   :  { %p7631_p6 = por %p7630_p5, %p7629_p4 }
  0x88   :  { %p7632_p7 = pnand %p7631_p6, %p7625_p3 }
  0x8a   :  { %7635 = shalt.err (!%p7632_p7)
}
  0x8b   :  { %s7796_s1 = smov 256   ;;  %s7797_s22 = smov 16  }
  0x8c   :  { %63 = dma.hbm_to_vmem [thread:$0]  %s8262_s3, 32768, %s58_s25, [#allocation5], %s7796_s1, %s7796_s1, %s7797_s22  }
  0x8d   :  { %s7798_s6 = smov [#allocation9]   ;;  %s7636_s4 = scalar_lea.hbm %s8264_s5, 4096 }
  0x8e   :  { %s79_s28 = sshll.u32 %s7798_s6, 4  ;;  %p7637_p8 = scmp.ne.s32.totalorder %s8264_s5, %s7636_s4  ;;  %s80_s28 = int_to_ptr.vmem [resolvable:$true] %s79_s28 }
  0x8f   :  { %p7640_p9 = scmp.lt.u32.totalorder %s7636_s4, %s8264_s5 }
  0x91   :  { %p7642_p10 = pnand %p7640_p9, %p7637_p8 }
  0x93   :  { %7645 = shalt.err (!%p7642_p10)
}
  0x94   :  { %s7646_s27 = scalar_lea.vmem %s80_s28, 4096  ;;  %p7651_p12 = scmp.lt.s32.totalorder %s80_s28, %s80_s28 }
  0x95   :  { %p7647_p11 = scmp.ne.s32.totalorder %s80_s28, %s7646_s27  ;;  %p7652_p13 = scmp.lt.s32.totalorder %s7646_s27, %s7646_s27 }
  0x97   :  { %p7653_p0 = por %p7652_p13, %p7651_p12 }
  0x99   :  { %p7654_p1 = pnand %p7653_p0, %p7647_p11 }
  0x9b   :  { %7657 = shalt.err (!%p7654_p1)
}
  0x9c   :  { %s7799_s3 = smov 64   ;;  %s7800_s25 = smov 4  }
  0x9d   :  { %85 = dma.hbm_to_vmem [thread:$0]  %s8264_s5, 4096, %s80_s28, [#allocation8], %s7799_s3, %s7799_s3, %s7800_s25  }
  0x9e   :  { %s7801_s30 = smov [#allocation12]   ;;  %s7802_s1 = smov [#allocation15]  }
  0x9f   :  { %s101_s16 = sshll.u32 %s7801_s30, 4  ;;  %s123_s17 = sshll.u32 %s7802_s1, 4  ;;  %s102_s16 = int_to_ptr.vmem [resolvable:$true] %s101_s16  ;;  %s124_s17 = int_to_ptr.vmem [resolvable:$true] %s123_s17 }
  0xa0   :  { %s7658_s12 = scalar_lea.hbm %s8266_s7, 256 }
  0xa1   :  { %p7659_p2 = scmp.ne.s32.totalorder %s8266_s7, %s7658_s12  ;;  %p7662_p3 = scmp.lt.u32.totalorder %s7658_s12, %s8266_s7 }
  0xa3   :  { %p7664_p4 = pnand %p7662_p3, %p7659_p2 }
  0xa5   :  { %7667 = shalt.err (!%p7664_p4)
}
  0xa6   :  { %s7668_s5 = scalar_lea.vmem %s102_s16, 256  ;;  %p7673_p6 = scmp.lt.s32.totalorder %s102_s16, %s102_s16 }
  0xa7   :  { %p7669_p5 = scmp.ne.s32.totalorder %s102_s16, %s7668_s5  ;;  %p7674_p7 = scmp.lt.s32.totalorder %s7668_s5, %s7668_s5 }
  0xa9   :  { %p7675_p8 = por %p7674_p7, %p7673_p6 }
  0xab   :  { %p7676_p9 = pnand %p7675_p8, %p7669_p5 }
  0xad   :  { %7679 = shalt.err (!%p7676_p9)
}
  0xae   :  { %107 = dma.hbm_to_vmem [thread:$0]  %s8266_s7, 256, %s102_s16, [#allocation11], %s7791_s24, %s7791_s24, %s7792_s2  }
  0xaf   :  { %s7680_s25 = scalar_lea.hbm %s8268_s9, 512 }
  0xb0   :  { %p7681_p10 = scmp.ne.s32.totalorder %s8268_s9, %s7680_s25  ;;  %p7684_p11 = scmp.lt.u32.totalorder %s7680_s25, %s8268_s9 }
  0xb2   :  { %p7686_p12 = pnand %p7684_p11, %p7681_p10 }
  0xb4   :  { %7689 = shalt.err (!%p7686_p12)
}
  0xb5   :  { %s7690_s20 = scalar_lea.vmem %s124_s17, 512  ;;  %p7695_p0 = scmp.lt.s32.totalorder %s124_s17, %s124_s17 }
  0xb6   :  { %p7691_p13 = scmp.ne.s32.totalorder %s124_s17, %s7690_s20  ;;  %p7696_p1 = scmp.lt.s32.totalorder %s7690_s20, %s7690_s20 }
  0xb8   :  { %p7697_p2 = por %p7696_p1, %p7695_p0 }
  0xba   :  { %p7698_p3 = pnand %p7697_p2, %p7691_p13 }
  0xbc   :  { %7701 = shalt.err (!%p7698_p3)
}
  0xbd   :  { %129 = dma.hbm_to_vmem [thread:$0]  %s8268_s9, 512, %s124_s17, [#allocation14], %s7791_s24, %s7791_s24, %s7792_s2  }
  0xbe   :  { %s7803_s6 = smov [#allocation18]   ;;  %s7804_s23 = smov [#allocation21]  }
  0xbf   :  { %s145_s12 = sshll.u32 %s7803_s6, 4  ;;  %s170_s4 = sshll.u32 %s7804_s23, 4  ;;  %s146_s12 = int_to_ptr.vmem [resolvable:$true] %s145_s12  ;;  %s171_s4 = int_to_ptr.vmem [resolvable:$true] %s170_s4 }
  0xc0   :  { %s7702_s5 = scalar_lea.hbm %s8270_s11, 512 }
  0xc1   :  { %p7703_p4 = scmp.ne.s32.totalorder %s8270_s11, %s7702_s5  ;;  %p7706_p5 = scmp.lt.u32.totalorder %s7702_s5, %s8270_s11 }
  0xc3   :  { %p7708_p6 = pnand %p7706_p5, %p7703_p4 }
  0xc5   :  { %7711 = shalt.err (!%p7708_p6)
}
  0xc6   :  { %s7712_s9 = scalar_lea.vmem %s146_s12, 512  ;;  %p7717_p8 = scmp.lt.s32.totalorder %s146_s12, %s146_s12 }
  0xc7   :  { %p7713_p7 = scmp.ne.s32.totalorder %s146_s12, %s7712_s9  ;;  %p7718_p9 = scmp.lt.s32.totalorder %s7712_s9, %s7712_s9 }
  0xc9   :  { %p7719_p10 = por %p7718_p9, %p7717_p8 }
  0xcb   :  { %p7720_p11 = pnand %p7719_p10, %p7713_p7 }
  0xcd   :  { %7723 = shalt.err (!%p7720_p11)
}
  0xce   :  { %151 = dma.hbm_to_vmem [thread:$0]  %s8270_s11, 512, %s146_s12, [#allocation17], %s7791_s24, %s7791_s24, %s7792_s2  }
  0xcf   :  { %s7724_s30 = scalar_lea.hbm %s8272_s13, 16 }
  0xd0   :  { %p7725_p12 = scmp.ne.s32.totalorder %s8272_s13, %s7724_s30  ;;  %p7728_p13 = scmp.lt.u32.totalorder %s7724_s30, %s8272_s13 }
  0xd2   :  { %p7730_p0 = pnand %p7728_p13, %p7725_p12 }
  0xd4   :  { %7733 = shalt.err (!%p7730_p0)
}
  0xd5   :  { %s7734_s6 = scalar_lea.vmem %s171_s4, 16  ;;  %s7738_s23 = scalar_lea.vmem %s171_s4, 32 }
  0xd6   :  { %p7735_p1 = scmp.ne.s32.totalorder %s171_s4, %s7734_s6  ;;  %p7739_p2 = scmp.lt.s32.totalorder %s171_s4, %s171_s4 }
  0xd7   :  { %p7740_p3 = scmp.lt.s32.totalorder %s7738_s23, %s7734_s6 }
  0xd9   :  { %p7741_p4 = por %p7740_p3, %p7739_p2 }
  0xdb   :  { %p7742_p5 = pnand %p7741_p4, %p7735_p1 }
  0xdd   :  { %7745 = shalt.err (!%p7742_p5)
}
  0xde   :  { %173 = dma.hbm_to_vmem [thread:$0]  %s8272_s13, 16, %s171_s4, [#allocation20]  }
  0xdf   :  { %s7805_s21 = smov [#allocation22]   ;;  %s7746_s10 = scalar_lea.hbm %s8273_s14, 256 }
  0xe0   :  { %s179_s26 = sshll.u32 %s7805_s21, 4  ;;  %p7747_p6 = scmp.ne.s32.totalorder %s8273_s14, %s7746_s10  ;;  %s180_s26 = int_to_ptr.vmem [resolvable:$true] %s179_s26 }
  0xe1   :  { %p7750_p7 = scmp.lt.u32.totalorder %s7746_s10, %s8273_s14 }
  0xe3   :  { %p7752_p8 = pnand %p7750_p7, %p7747_p6 }
  0xe5   :  { %7755 = shalt.err (!%p7752_p8)
}
  0xe6   :  { %s7756_s25 = scalar_lea.vmem %s180_s26, 256  ;;  %p7761_p10 = scmp.lt.s32.totalorder %s180_s26, %s180_s26 }
  0xe7   :  { %p7757_p9 = scmp.ne.s32.totalorder %s180_s26, %s7756_s25  ;;  %p7762_p11 = scmp.lt.s32.totalorder %s7756_s25, %s7756_s25 }
  0xe9   :  { %p7763_p12 = por %p7762_p11, %p7761_p10 }
  0xeb   :  { %p7764_p13 = pnand %p7763_p12, %p7757_p9 }
  0xed   :  { %7767 = shalt.err (!%p7764_p13)
}
  0xee   :  { %185 = dma.hbm_to_vmem [thread:$0]  %s8273_s14, 256, %s180_s26, [#allocation23], %s7791_s24, %s7791_s24, %s7792_s2  }
  0xef   :  { %7768 = dma.done.wait [#allocation3], 49152  }
  0xf0   :  { %7769 = vsyncadd [#allocation3], 4294918144 }
  0xf1   :  { %7770 = dma.done.wait [#allocation5], 32896  }
  0xf2   :  { %7771 = vsyncadd [#allocation5], 4294934400 }
  0xf3   :  { %7772 = dma.done.wait [#allocation8], 4160  }
  0xf4   :  { %7773 = vsyncadd [#allocation8], 4294963136 }
  0xf5   :  { %7774 = dma.done.wait [#allocation11], 272  }
  0xf6   :  { %7775 = vsyncadd [#allocation11], 4294967024 }
  0xf7   :  { %7776 = dma.done.wait [#allocation14], 528  }
  0xf8   :  { %7777 = vsyncadd [#allocation14], 4294966768 }
  0xf9   :  { %7778 = dma.done.wait [#allocation17], 528  }
  0xfa   :  { %7779 = vsyncadd [#allocation17], 4294966768 }
  0xfb   :  { %7780 = dma.done.wait [#allocation20], 528  }
  0xfc   :  { %7781 = vsyncadd [#allocation20], 4294966768 }
  0xfd   :  { %7782 = dma.done.wait [#allocation23], 256  }
  0xfe   :  { %7783 = vsyncadd [#allocation23], 4294967040  ;;  %v270_v0 = vld [vmem:[#allocation2] sm:$0xff]  ;;  %v271_v2 = vld [vmem:[#allocation2 + $0x8] sm:$0xff]  ;;  %v7806_v32 = vmov 1983009808   ;;  %v237_v34 = vlaneseq }
  0xff   :  { %v274_v1 = vld [vmem:[#allocation2 + $0x20] sm:$0xff]  ;;  %v275_v4 = vld [vmem:[#allocation2 + $0x28] sm:$0xff]  ;;  %v235_v33 = vunpack.c.l.s4 %v7806_v32  ;;  %s7808_s8 = smov 80   ;;  %s7809_s30 = smov 96   ;;  %vm5414_vm0 = vcmask 1041408   ;;  %vm5412_vm1 = vcmask 1040384  }
 0x100   :  { %v6064_v3 = vcombine.high %v270_v0, %v274_v1  ;;  %v6063_v5 = vcombine.low %v270_v0, %v274_v1  ;;  %v278_v6 = vld [vmem:[#allocation2 + $0x40] sm:$0xff]  ;;  %v6066_v8 = vcombine.high %v271_v2, %v275_v4  ;;  %v6065_v9 = vcombine.low %v271_v2, %v275_v4  ;;  %v279_v11 = vld [vmem:[#allocation2 + $0x48] sm:$0xff]  ;;  %s7810_s1 = smov 48  }
 0x101   :  { %v282_v7 = vld [vmem:[#allocation2 + $0x60] sm:$0xff]  ;;  %v283_v12 = vld [vmem:[#allocation2 + $0x68] sm:$0xff]  ;;  %v236_v43 = vunpack.c.0.s8 %v235_v33  ;;  %v8078_v44 = vshrl.u32 %v237_v34, 7  ;;  %vm5416_vm2 = vcmask 1042432   ;;  %vm5418_vm3 = vcmask 1043456  }
 0x102   :  { %v6072_v10 = vcombine.high %v278_v6, %v282_v7  ;;  %v286_v13 = vld [vmem:[#allocation2 + $0x80] sm:$0xff]  ;;  %2616 = vmatprep.subr.bf16.mxu0 %v6064_v3  ;;  %v6074_v14 = vcombine.high %v279_v11, %v283_v12  ;;  %v287_v16 = vld [vmem:[#allocation2 + $0x88] sm:$0xff]  ;;  %2739 = vmatprep.subr.bf16.mxu1 %v6066_v8  ;;  %v6071_v18 = vcombine.low %v278_v6, %v282_v7  ;;  %vm5420_vm4 = vcmask 1044480  }
 0x103   :  { %v290_v15 = vld [vmem:[#allocation2 + $0xa0] sm:$0xff]  ;;  %v291_v17 = vld [vmem:[#allocation2 + $0xa8] sm:$0xff]  ;;  %2617 = vmatpush1.bf16.msra.mxu0 %v6063_v5  ;;  %2740 = vmatpush1.bf16.msra.mxu1 %v6065_v9  ;;  %v6073_v19 = vcombine.low %v279_v11, %v283_v12  ;;  %v8081_v53 = vsub.s32 %v236_v43, %v8078_v44  ;;  %vm5422_vm5 = vcmask 1045504   ;;  %vm5424_vm6 = vcmask 1046528  }
 0x104   :  { %2618 = vmatprep.subr.bf16.mxu0 %v6072_v10  ;;  %v6080_v20 = vcombine.high %v286_v13, %v290_v15  ;;  %2741 = vmatprep.subr.bf16.mxu1 %v6074_v14  ;;  %v6082_v21 = vcombine.high %v287_v16, %v291_v17  ;;  %v294_v22 = vld [vmem:[#allocation2 + $0xc0] sm:$0xff]  ;;  %v295_v24 = vld [vmem:[#allocation2 + $0xc8] sm:$0xff]  ;;  %v6079_v26 = vcombine.low %v286_v13, %v290_v15  ;;  %vm5435_vm7 = vcmask 130048  }
 0x105   :  { %v298_v23 = vld [vmem:[#allocation2 + $0xe0] sm:$0xff]  ;;  %v299_v25 = vld [vmem:[#allocation2 + $0xe8] sm:$0xff]  ;;  %v6081_v27 = vcombine.low %v287_v16, %v291_v17  ;;  %vm5556_vm12 = vcmask 261120  }
 0x106   :  { %v6088_v28 = vcombine.high %v294_v22, %v298_v23  ;;  %v6090_v29 = vcombine.high %v295_v24, %v299_v25  ;;  %v302_v30 = vld [vmem:[#allocation2 + $0x100] sm:$0xff]  ;;  %v303_v35 = vld [vmem:[#allocation2 + $0x108] sm:$0xff]  ;;  %v6087_v37 = vcombine.low %v294_v22, %v298_v23  ;;  %v6089_v38 = vcombine.low %v295_v24, %v299_v25 }
 0x107   :  { %2619 = vmatpush1.bf16.msra.mxu0 %v6071_v18  ;;  %2742 = vmatpush1.bf16.msra.mxu1 %v6073_v19  ;;  %v306_v31 = vld [vmem:[#allocation2 + $0x120] sm:$0xff]  ;;  %v307_v36 = vld [vmem:[#allocation2 + $0x128] sm:$0xff] }
 0x108   :  { %2620 = vmatprep.subr.bf16.mxu0 %v6080_v20  ;;  %2743 = vmatprep.subr.bf16.mxu1 %v6082_v21  ;;  %v6096_v39 = vcombine.high %v302_v30, %v306_v31  ;;  %v6098_v40 = vcombine.high %v303_v35, %v307_v36  ;;  %v310_v41 = vld [vmem:[#allocation2 + $0x140] sm:$0xff]  ;;  %v311_v45 = vld [vmem:[#allocation2 + $0x148] sm:$0xff]  ;;  %v6095_v47 = vcombine.low %v302_v30, %v306_v31 }
 0x109   :  { %v314_v42 = vld [vmem:[#allocation2 + $0x160] sm:$0xff]  ;;  %v315_v46 = vld [vmem:[#allocation2 + $0x168] sm:$0xff]  ;;  %v6097_v48 = vcombine.low %v303_v35, %v307_v36 }
 0x10a   :  { %v6104_v49 = vcombine.high %v310_v41, %v314_v42  ;;  %v6106_v50 = vcombine.high %v311_v45, %v315_v46  ;;  %v318_v51 = vld [vmem:[#allocation2 + $0x180] sm:$0xff]  ;;  %v319_v54 = vld [vmem:[#allocation2 + $0x188] sm:$0xff]  ;;  %v6103_v56 = vcombine.low %v310_v41, %v314_v42  ;;  %v6105_v57 = vcombine.low %v311_v45, %v315_v46 }
 0x10b   :  { %2621 = vmatpush1.bf16.msra.mxu0 %v6079_v26  ;;  %2744 = vmatpush1.bf16.msra.mxu1 %v6081_v27  ;;  %v322_v52 = vld [vmem:[#allocation2 + $0x1a0] sm:$0xff]  ;;  %v323_v55 = vld [vmem:[#allocation2 + $0x1a8] sm:$0xff] }
 0x10c   :  { %2622 = vmatprep.subr.bf16.mxu0 %v6088_v28  ;;  %2745 = vmatprep.subr.bf16.mxu1 %v6090_v29  ;;  %v6112_v58 = vcombine.high %v318_v51, %v322_v52  ;;  %v8086_v59 = vld [vmem:[%s8259_s0] sm:$0xff]  ;;  %v6114_v60 = vcombine.high %v319_v54, %v323_v55  ;;  %v327_v0 = vld [vmem:[#allocation2 + $0x1c8] sm:$0xff]  ;;  %v6111_v2 = vcombine.low %v318_v51, %v322_v52 }
 0x10d   :  { %v326_v61 = vld [vmem:[#allocation2 + $0x1c0] sm:$0xff]  ;;  %v8090_v63 = vrot.slane %v8086_v59, %v8081_v53  ;;  %v331_v1 = vld [vmem:[#allocation2 + $0x1e8] sm:$0xff]  ;;  %v6113_v4 = vcombine.low %v319_v54, %v323_v55 }
 0x10e   :  { %v330_v62 = vld [vmem:[#allocation2 + $0x1e0] sm:$0xff]  ;;  %v6122_v6 = vcombine.high %v327_v0, %v331_v1  ;;  %v335_v10 = vld [vmem:[#allocation2 + $0x208] sm:$0xff]  ;;  %v6121_v13 = vcombine.low %v327_v0, %v331_v1 }
 0x10f   :  { %2623 = vmatpush1.bf16.msra.mxu0 %v6087_v37  ;;  %2746 = vmatpush1.bf16.msra.mxu1 %v6089_v38  ;;  %v248_v3 = vcombine.high %v8090_v63, %v8090_v63  ;;  %v6120_v5 = vcombine.high %v326_v61, %v330_v62  ;;  %v334_v7 = vld [vmem:[#allocation2 + $0x200] sm:$0xff]  ;;  %v339_v11 = vld [vmem:[#allocation2 + $0x228] sm:$0xff]  ;;  %v6119_v12 = vcombine.low %v326_v61, %v330_v62 }
 0x110   :  { %2624 = vmatprep.subr.bf16.mxu0 %v6096_v39  ;;  %2747 = vmatprep.subr.bf16.mxu1 %v6098_v40  ;;  %v338_v8 = vld [vmem:[#allocation2 + $0x220] sm:$0xff]  ;;  %v6130_v15 = vcombine.high %v335_v10, %v339_v11  ;;  %v343_v18 = vld [vmem:[#allocation2 + $0x248] sm:$0xff]  ;;  %v6129_v21 = vcombine.low %v335_v10, %v339_v11 }
 0x111   :  { %v8094_v9 = vpack.c.bf16 %v248_v3, %v248_v3  ;;  %v6128_v14 = vcombine.high %v334_v7, %v338_v8  ;;  %v342_v16 = vld [vmem:[#allocation2 + $0x240] sm:$0xff]  ;;  %v347_v19 = vld [vmem:[#allocation2 + $0x268] sm:$0xff]  ;;  %v6127_v20 = vcombine.low %v334_v7, %v338_v8 }
 0x112   :  { %v346_v17 = vld [vmem:[#allocation2 + $0x260] sm:$0xff]  ;;  %v6138_v23 = vcombine.high %v343_v18, %v347_v19  ;;  %v351_v26 = vld [vmem:[#allocation2 + $0x288] sm:$0xff]  ;;  %v6137_v29 = vcombine.low %v343_v18, %v347_v19 }
 0x113   :  { %2625 = vmatpush1.bf16.msra.mxu0 %v6095_v47  ;;  %2748 = vmatpush1.bf16.msra.mxu1 %v6097_v48  ;;  %v6136_v22 = vcombine.high %v342_v16, %v346_v17  ;;  %v350_v24 = vld [vmem:[#allocation2 + $0x280] sm:$0xff]  ;;  %v355_v27 = vld [vmem:[#allocation2 + $0x2a8] sm:$0xff]  ;;  %v6135_v28 = vcombine.low %v342_v16, %v346_v17 }
 0x114   :  { %2626 = vmatprep.subr.bf16.mxu0 %v6104_v49  ;;  %2749 = vmatprep.subr.bf16.mxu1 %v6106_v50  ;;  %v354_v25 = vld [vmem:[#allocation2 + $0x2a0] sm:$0xff]  ;;  %v6146_v31 = vcombine.high %v351_v26, %v355_v27  ;;  %v359_v34 = vld [vmem:[#allocation2 + $0x2c8] sm:$0xff]  ;;  %v6145_v37 = vcombine.low %v351_v26, %v355_v27 }
 0x115   :  { %2648 = vmatprep.mubr.bf16.mxu0 %v8094_v9  ;;  %2771 = vmatprep.mubr.bf16.mxu1 %v8094_v9  ;;  %v6144_v30 = vcombine.high %v350_v24, %v354_v25  ;;  %v358_v32 = vld [vmem:[#allocation2 + $0x2c0] sm:$0xff]  ;;  %v363_v35 = vld [vmem:[#allocation2 + $0x2e8] sm:$0xff]  ;;  %v6143_v36 = vcombine.low %v350_v24, %v354_v25  ;;  %v8107_v25 = vpack.c.bf16 %v8090_v63, %v8090_v63 }
 0x116   :  { %v362_v33 = vld [vmem:[#allocation2 + $0x2e0] sm:$0xff]  ;;  %v6154_v39 = vcombine.high %v359_v34, %v363_v35  ;;  %v367_v42 = vld [vmem:[#allocation2 + $0x308] sm:$0xff]  ;;  %v6153_v46 = vcombine.low %v359_v34, %v363_v35 }
 0x117   :  { %2627 = vmatpush1.bf16.msra.mxu0 %v6103_v56  ;;  %2750 = vmatpush1.bf16.msra.mxu1 %v6105_v57  ;;  %v6152_v38 = vcombine.high %v358_v32, %v362_v33  ;;  %v366_v40 = vld [vmem:[#allocation2 + $0x300] sm:$0xff]  ;;  %v371_v43 = vld [vmem:[#allocation2 + $0x328] sm:$0xff]  ;;  %v6151_v45 = vcombine.low %v358_v32, %v362_v33 }
 0x118   :  { %2628 = vmatprep.subr.bf16.mxu0 %v6112_v58  ;;  %2751 = vmatprep.subr.bf16.mxu1 %v6114_v60  ;;  %v370_v41 = vld [vmem:[#allocation2 + $0x320] sm:$0xff]  ;;  %v6162_v48 = vcombine.high %v367_v42, %v371_v43  ;;  %v375_v51 = vld [vmem:[#allocation2 + $0x348] sm:$0xff]  ;;  %v6161_v55 = vcombine.low %v367_v42, %v371_v43 }
 0x119   :  { %v6160_v47 = vcombine.high %v366_v40, %v370_v41  ;;  %v374_v49 = vld [vmem:[#allocation2 + $0x340] sm:$0xff]  ;;  %v379_v52 = vld [vmem:[#allocation2 + $0x368] sm:$0xff]  ;;  %v6159_v54 = vcombine.low %v366_v40, %v370_v41 }
 0x11a   :  { %v378_v50 = vld [vmem:[#allocation2 + $0x360] sm:$0xff]  ;;  %v6170_v57 = vcombine.high %v375_v51, %v379_v52  ;;  %v383_v61 = vld [vmem:[#allocation2 + $0x388] sm:$0xff]  ;;  %v6169_v1 = vcombine.low %v375_v51, %v379_v52 }
 0x11b   :  { %2629 = vmatpush1.bf16.msra.mxu0 %v6111_v2  ;;  %2752 = vmatpush1.bf16.msra.mxu1 %v6113_v4  ;;  %v6168_v56 = vcombine.high %v374_v49, %v378_v50  ;;  %v382_v58 = vld [vmem:[#allocation2 + $0x380] sm:$0xff]  ;;  %v387_v62 = vld [vmem:[#allocation2 + $0x3a8] sm:$0xff]  ;;  %v6167_v0 = vcombine.low %v374_v49, %v378_v50 }
 0x11c   :  { %2630 = vmatprep.subr.bf16.mxu0 %v6120_v5  ;;  %2753 = vmatprep.subr.bf16.mxu1 %v6122_v6  ;;  %v386_v60 = vld [vmem:[#allocation2 + $0x3a0] sm:$0xff]  ;;  %v6178_v3 = vcombine.high %v383_v61, %v387_v62  ;;  %v233_v6 = vcombine.high %v8086_v59, %v8086_v59  ;;  %v391_v7 = vld [vmem:[#allocation2 + $0x3c8] sm:$0xff]  ;;  %v6177_v11 = vcombine.low %v383_v61, %v387_v62 }
 0x11d   :  { %v6176_v2 = vcombine.high %v382_v58, %v386_v60  ;;  %v390_v4 = vld [vmem:[#allocation2 + $0x3c0] sm:$0xff]  ;;  %v395_v8 = vld [vmem:[#allocation2 + $0x3e8] sm:$0xff]  ;;  %v6175_v10 = vcombine.low %v382_v58, %v386_v60 }
 0x11e   :  { %v394_v5 = vld [vmem:[#allocation2 + $0x3e0] sm:$0xff]  ;;  %v8101_v16 = vrot.slane %v233_v6, %v8081_v53  ;;  %v399_v17 = vld [vmem:[#allocation2 + $0x408] sm:$0xff]  ;;  %v6185_v59 = vcombine.low %v391_v7, %v395_v8 }
 0x11f   :  { %2631 = vmatpush1.bf16.msra.mxu0 %v6119_v12  ;;  %2754 = vmatpush1.bf16.msra.mxu1 %v6121_v13  ;;  %v6184_v12 = vcombine.high %v390_v4, %v394_v5  ;;  %v6186_v13 = vcombine.high %v391_v7, %v395_v8  ;;  %v403_v18 = vld [vmem:[#allocation2 + $0x428] sm:$0xff]  ;;  %v6183_v19 = vcombine.low %v390_v4, %v394_v5 }
 0x120   :  { %2632 = vmatprep.subr.bf16.mxu0 %v6128_v14  ;;  %2755 = vmatprep.subr.bf16.mxu1 %v6130_v15  ;;  %v398_v14 = vld [vmem:[#allocation2 + $0x400] sm:$0xff]  ;;  %v249_v24 = vcombine.high %v8101_v16, %v8101_v16  ;;  %v407_v53 = vld [vmem:[#allocation2 + $0x448] sm:$0xff] }
 0x121   :  { %v402_v15 = vld [vmem:[#allocation2 + $0x420] sm:$0xff]  ;;  %v411_v26 = vld [vmem:[#allocation2 + $0x468] sm:$0xff] }
 0x122   :  { %v6191_v27 = vcombine.low %v398_v14, %v402_v15  ;;  %v415_v32 = vld [vmem:[#allocation2 + $0x488] sm:$0xff]  ;;  %v6202_v33 = vcombine.high %v407_v53, %v411_v26  ;;  %v8109_v35 = vpack.c.bf16 %v249_v24, %v249_v24 }
 0x123   :  { %2633 = vmatpush1.bf16.msra.mxu0 %v6127_v20  ;;  %2756 = vmatpush1.bf16.msra.mxu1 %v6129_v21  ;;  %v6192_v20 = vcombine.high %v398_v14, %v402_v15  ;;  %v6194_v21 = vcombine.high %v399_v17, %v403_v18  ;;  %v419_v34 = vld [vmem:[#allocation2 + $0x4a8] sm:$0xff] }
 0x124   :  { %2634 = vmatprep.subr.bf16.mxu0 %v6136_v22  ;;  %2757 = vmatprep.subr.bf16.mxu1 %v6138_v23  ;;  %v406_v22 = vld [vmem:[#allocation2 + $0x440] sm:$0xff]  ;;  %v423_v40 = vld [vmem:[#allocation2 + $0x4c8] sm:$0xff]  ;;  %v6210_v41 = vcombine.high %v415_v32, %v419_v34 }
 0x125   :  { %v410_v23 = vld [vmem:[#allocation2 + $0x460] sm:$0xff]  ;;  %v427_v42 = vld [vmem:[#allocation2 + $0x4e8] sm:$0xff] }
 0x126   :  { %v6199_v63 = vcombine.low %v406_v22, %v410_v23  ;;  %v431_v49 = vld [vmem:[#allocation2 + $0x508] sm:$0xff]  ;;  %v6218_v50 = vcombine.high %v423_v40, %v427_v42 }
 0x127   :  { %2635 = vmatpush1.bf16.msra.mxu0 %v6135_v28  ;;  %2758 = vmatpush1.bf16.msra.mxu1 %v6137_v29  ;;  %v6193_v28 = vcombine.low %v399_v17, %v403_v18  ;;  %v6200_v29 = vcombine.high %v406_v22, %v410_v23  ;;  %v435_v51 = vld [vmem:[#allocation2 + $0x528] sm:$0xff] }
 0x128   :  { %2636 = vmatprep.subr.bf16.mxu0 %v6144_v30  ;;  %2759 = vmatprep.subr.bf16.mxu1 %v6146_v31  ;;  %v414_v30 = vld [vmem:[#allocation2 + $0x480] sm:$0xff]  ;;  %v439_v58 = vld [vmem:[#allocation2 + $0x548] sm:$0xff]  ;;  %v6226_v60 = vcombine.high %v431_v49, %v435_v51 }
 0x129   :  { %v418_v31 = vld [vmem:[#allocation2 + $0x4a0] sm:$0xff]  ;;  %v443_v61 = vld [vmem:[#allocation2 + $0x568] sm:$0xff] }
 0x12a   :  { %v6207_v43 = vcombine.low %v414_v30, %v418_v31  ;;  %v447_v4 = vld [vmem:[#allocation2 + $0x588] sm:$0xff]  ;;  %v6234_v5 = vcombine.high %v439_v58, %v443_v61  ;;  %v6233_v8 = vcombine.low %v439_v58, %v443_v61 }
 0x12b   :  { %2637 = vmatpush1.bf16.msra.mxu0 %v6143_v36  ;;  %2760 = vmatpush1.bf16.msra.mxu1 %v6145_v37  ;;  %v6201_v36 = vcombine.low %v407_v53, %v411_v26  ;;  %v6208_v37 = vcombine.high %v414_v30, %v418_v31  ;;  %v451_v6 = vld [vmem:[#allocation2 + $0x5a8] sm:$0xff] }
 0x12c   :  { %2638 = vmatprep.subr.bf16.mxu0 %v6152_v38  ;;  %2761 = vmatprep.subr.bf16.mxu1 %v6154_v39  ;;  %v422_v38 = vld [vmem:[#allocation2 + $0x4c0] sm:$0xff]  ;;  %v6242_v14 = vcombine.high %v447_v4, %v451_v6  ;;  %v459_v15 = vld [vmem:[#allocation2 + $0x5e8] sm:$0xff]  ;;  %v6241_v18 = vcombine.low %v447_v4, %v451_v6 }
 0x12d   :  { %v426_v39 = vld [vmem:[#allocation2 + $0x4e0] sm:$0xff]  ;;  %v467_v23 = vld [vmem:[#allocation2 + $0x628] sm:$0xff] }
 0x12e   :  { %v6215_v52 = vcombine.low %v422_v38, %v426_v39  ;;  %v475_v31 = vld [vmem:[#allocation2 + $0x668] sm:$0xff] }
 0x12f   :  { %2639 = vmatpush1.bf16.msra.mxu0 %v6151_v45  ;;  %2762 = vmatpush1.bf16.msra.mxu1 %v6153_v46  ;;  %v6209_v45 = vcombine.low %v415_v32, %v419_v34  ;;  %v6216_v46 = vcombine.high %v422_v38, %v426_v39  ;;  %v483_v39 = vld [vmem:[#allocation2 + $0x6a8] sm:$0xff] }
 0x130   :  { %2640 = vmatprep.subr.bf16.mxu0 %v6160_v47  ;;  %2763 = vmatprep.subr.bf16.mxu1 %v6162_v48  ;;  %v430_v47 = vld [vmem:[#allocation2 + $0x500] sm:$0xff] }
 0x131   :  { %v434_v48 = vld [vmem:[#allocation2 + $0x520] sm:$0xff] }
 0x132   :  { %v6223_v62 = vcombine.low %v430_v47, %v434_v48 }
 0x133   :  { %2641 = vmatpush1.bf16.msra.mxu0 %v6159_v54  ;;  %2764 = vmatpush1.bf16.msra.mxu1 %v6161_v55  ;;  %v6217_v54 = vcombine.low %v423_v40, %v427_v42  ;;  %v6224_v55 = vcombine.high %v430_v47, %v434_v48  ;;  %v491_v48 = vld [vmem:[#allocation2 + $0x6e8] sm:$0xff] }
 0x134   :  { %2642 = vmatprep.subr.bf16.mxu0 %v6168_v56  ;;  %2765 = vmatprep.subr.bf16.mxu1 %v6170_v57  ;;  %v438_v56 = vld [vmem:[#allocation2 + $0x540] sm:$0xff] }
 0x135   :  { %v442_v57 = vld [vmem:[#allocation2 + $0x560] sm:$0xff] }
 0x136   :  { %v6231_v7 = vcombine.low %v438_v56, %v442_v57 }
 0x137   :  { %2643 = vmatpush1.bf16.msra.mxu0 %v6167_v0  ;;  %2766 = vmatpush1.bf16.msra.mxu1 %v6169_v1  ;;  %v6225_v0 = vcombine.low %v431_v49, %v435_v51  ;;  %v6232_v1 = vcombine.high %v438_v56, %v442_v57  ;;  %v499_v57 = vld [vmem:[#allocation2 + $0x728] sm:$0xff] }
 0x138   :  { %2644 = vmatprep.subr.bf16.mxu0 %v6176_v2  ;;  %2767 = vmatprep.subr.bf16.mxu1 %v6178_v3  ;;  %v446_v2 = vld [vmem:[#allocation2 + $0x580] sm:$0xff] }
 0x139   :  { %v450_v3 = vld [vmem:[#allocation2 + $0x5a0] sm:$0xff] }
 0x13a   :  { %v6239_v17 = vcombine.low %v446_v2, %v450_v3 }
 0x13b   :  { %2645 = vmatpush1.bf16.msra.mxu0 %v6175_v10  ;;  %2768 = vmatpush1.bf16.msra.mxu1 %v6177_v11  ;;  %v6240_v10 = vcombine.high %v446_v2, %v450_v3  ;;  %v454_v11 = vld [vmem:[#allocation2 + $0x5c0] sm:$0xff]  ;;  %v507_v3 = vld [vmem:[#allocation2 + $0x768] sm:$0xff] }
 0x13c   :  { %2646 = vmatprep.subr.bf16.mxu0 %v6184_v12  ;;  %2769 = vmatprep.subr.bf16.mxu1 %v6186_v13  ;;  %v458_v12 = vld [vmem:[#allocation2 + $0x5e0] sm:$0xff]  ;;  %v455_v13 = vld [vmem:[#allocation2 + $0x5c8] sm:$0xff] }
 0x13d   :  { %v6250_v22 = vcombine.high %v455_v13, %v459_v15  ;;  %v6247_v24 = vcombine.low %v454_v11, %v458_v12  ;;  %v6249_v53 = vcombine.low %v455_v13, %v459_v15 }
 0x13f   :  { %2647 = vmatpush1.bf16.msra.mxu0 %v6183_v19  ;;  %2770 = vmatpush1.bf16.msra.mxu1 %v6185_v59  ;;  %v6248_v19 = vcombine.high %v454_v11, %v458_v12  ;;  %v462_v59 = vld [vmem:[#allocation2 + $0x600] sm:$0xff]  ;;  %v515_v12 = vld [vmem:[#allocation2 + $0x7a8] sm:$0xff] }
 0x140   :  { %2657 = vmatprep.subr.bf16.mxu0 %v6192_v20  ;;  %2780 = vmatprep.subr.bf16.mxu1 %v6194_v21  ;;  %v466_v20 = vld [vmem:[#allocation2 + $0x620] sm:$0xff]  ;;  %v463_v21 = vld [vmem:[#allocation2 + $0x608] sm:$0xff] }
 0x141   :  { %v6256_v26 = vcombine.high %v462_v59, %v466_v20  ;;  %v6258_v30 = vcombine.high %v463_v21, %v467_v23  ;;  %v6255_v32 = vcombine.low %v462_v59, %v466_v20  ;;  %v523_v20 = vld [vmem:[#allocation2 + $0x7e8] sm:$0xff] }
 0x142   :  { %2649 = vmatmul.mubr.bf16.vlgmr.msra.gmra.mrb[0].mxu0 %v8107_v25  ;;  %2772 = vmatmul.mubr.bf16.vlgmr.msra.gmra.mrb[0].mxu1 %v8107_v25 }
 0x143   :  { %2658 = vmatpush1.bf16.msra.mxu0 %v6191_v27  ;;  %2781 = vmatpush1.bf16.msra.mxu1 %v6193_v28  ;;  %v470_v27 = vld [vmem:[#allocation2 + $0x640] sm:$0xff] }
 0x144   :  { %2659 = vmatprep.subr.bf16.mxu0 %v6200_v29  ;;  %2782 = vmatprep.subr.bf16.mxu1 %v6202_v33  ;;  %v474_v28 = vld [vmem:[#allocation2 + $0x660] sm:$0xff]  ;;  %v471_v29 = vld [vmem:[#allocation2 + $0x648] sm:$0xff]  ;;  %v6257_v33 = vcombine.low %v463_v21, %v467_v23 }
 0x145   :  { %2689 = vmatprep.mubr.bf16.mxu0 %v8109_v35  ;;  %2812 = vmatprep.mubr.bf16.mxu1 %v8109_v35  ;;  %v6264_v34 = vcombine.high %v470_v27, %v474_v28  ;;  %v6266_v38 = vcombine.high %v471_v29, %v475_v31  ;;  %v6263_v40 = vcombine.low %v470_v27, %v474_v28  ;;  %v531_v27 = vld [vmem:[#allocation2 + $0x828] sm:$0xff] }
 0x147   :  { %2660 = vmatpush1.bf16.msra.mxu0 %v6199_v63  ;;  %2783 = vmatpush1.bf16.msra.mxu1 %v6201_v36  ;;  %v478_v63 = vld [vmem:[#allocation2 + $0x680] sm:$0xff] }
 0x148   :  { %2661 = vmatprep.subr.bf16.mxu0 %v6208_v37  ;;  %2784 = vmatprep.subr.bf16.mxu1 %v6210_v41  ;;  %v482_v36 = vld [vmem:[#allocation2 + $0x6a0] sm:$0xff]  ;;  %v479_v37 = vld [vmem:[#allocation2 + $0x688] sm:$0xff]  ;;  %v6265_v41 = vcombine.low %v471_v29, %v475_v31 }
 0x149   :  { %v6272_v42 = vcombine.high %v478_v63, %v482_v36  ;;  %v6274_v47 = vcombine.high %v479_v37, %v483_v39  ;;  %v6271_v49 = vcombine.low %v478_v63, %v482_v36  ;;  %v8118_v29 = vld.sshfl [vmem:[%s8259_s0 + $0x8] sm:$0x33 pattern:$0x76325410]  ;;  %s7807_s0 = smov 112  }
 0x14a   :  { %v535_v63 = vld [vmem:[#allocation2 + $0x848] sm:$0xff] }
 0x14b   :  { %2662 = vmatpush1.bf16.msra.mxu0 %v6207_v43  ;;  %2785 = vmatpush1.bf16.msra.mxu1 %v6209_v45  ;;  %v486_v43 = vld [vmem:[#allocation2 + $0x6c0] sm:$0xff] }
 0x14c   :  { %2663 = vmatprep.subr.bf16.mxu0 %v6216_v46  ;;  %2786 = vmatprep.subr.bf16.mxu1 %v6218_v50  ;;  %v490_v45 = vld [vmem:[#allocation2 + $0x6e0] sm:$0xff]  ;;  %v487_v46 = vld [vmem:[#allocation2 + $0x6c8] sm:$0xff]  ;;  %v6273_v50 = vcombine.low %v479_v37, %v483_v39  ;;  %v8124_v39 = vpack.c.bf16 %v8101_v16, %v8101_v16 }
 0x14d   :  { %v6280_v51 = vcombine.high %v486_v43, %v490_v45  ;;  %v6282_v56 = vcombine.high %v487_v46, %v491_v48  ;;  %v6279_v58 = vcombine.low %v486_v43, %v490_v45  ;;  %v539_v37 = vld [vmem:[#allocation2 + $0x868] sm:$0xff]  ;;  %v542_v43 = vld [vmem:[#allocation2 + $0x880] sm:$0xff] }
 0x14e   :  { %v546_v45 = vld [vmem:[#allocation2 + $0x8a0] sm:$0xff] }
 0x14f   :  { %2664 = vmatpush1.bf16.msra.mxu0 %v6215_v52  ;;  %2787 = vmatpush1.bf16.msra.mxu1 %v6217_v54  ;;  %v494_v52 = vld [vmem:[#allocation2 + $0x700] sm:$0xff] }
 0x150   :  { %2665 = vmatprep.subr.bf16.mxu0 %v6224_v55  ;;  %2788 = vmatprep.subr.bf16.mxu1 %v6226_v60  ;;  %v498_v54 = vld [vmem:[#allocation2 + $0x720] sm:$0xff]  ;;  %v495_v55 = vld [vmem:[#allocation2 + $0x708] sm:$0xff]  ;;  %v6281_v60 = vcombine.low %v487_v46, %v491_v48 }
 0x151   :  { %v6288_v61 = vcombine.high %v494_v52, %v498_v54  ;;  %v6290_v2 = vcombine.high %v495_v55, %v499_v57  ;;  %v6287_v4 = vcombine.low %v494_v52, %v498_v54  ;;  %v543_v46 = vld [vmem:[#allocation2 + $0x888] sm:$0xff]  ;;  %v550_v52 = vld [vmem:[#allocation2 + $0x8c0] sm:$0xff] }
 0x152   :  { %v547_v48 = vld [vmem:[#allocation2 + $0x8a8] sm:$0xff]  ;;  %v554_v54 = vld [vmem:[#allocation2 + $0x8e0] sm:$0xff] }
 0x153   :  { %2666 = vmatpush1.bf16.msra.mxu0 %v6223_v62  ;;  %2789 = vmatpush1.bf16.msra.mxu1 %v6225_v0  ;;  %v502_v62 = vld [vmem:[#allocation2 + $0x740] sm:$0xff] }
 0x154   :  { %2667 = vmatprep.subr.bf16.mxu0 %v6232_v1  ;;  %2790 = vmatprep.subr.bf16.mxu1 %v6234_v5  ;;  %v506_v0 = vld [vmem:[#allocation2 + $0x760] sm:$0xff]  ;;  %v503_v1 = vld [vmem:[#allocation2 + $0x748] sm:$0xff]  ;;  %v6289_v5 = vcombine.low %v495_v55, %v499_v57 }
 0x155   :  { %v6296_v6 = vcombine.high %v502_v62, %v506_v0  ;;  %v6298_v11 = vcombine.high %v503_v1, %v507_v3  ;;  %v6295_v13 = vcombine.low %v502_v62, %v506_v0  ;;  %v551_v55 = vld [vmem:[#allocation2 + $0x8c8] sm:$0xff]  ;;  %v558_v62 = vld [vmem:[#allocation2 + $0x900] sm:$0xff] }
 0x156   :  { %v555_v57 = vld [vmem:[#allocation2 + $0x8e8] sm:$0xff]  ;;  %v562_v0 = vld [vmem:[#allocation2 + $0x920] sm:$0xff] }
 0x157   :  { %2668 = vmatpush1.bf16.msra.mxu0 %v6231_v7  ;;  %2791 = vmatpush1.bf16.msra.mxu1 %v6233_v8  ;;  %v510_v7 = vld [vmem:[#allocation2 + $0x780] sm:$0xff] }
 0x158   :  { %2669 = vmatprep.subr.bf16.mxu0 %v6240_v10  ;;  %2792 = vmatprep.subr.bf16.mxu1 %v6242_v14  ;;  %v514_v8 = vld [vmem:[#allocation2 + $0x7a0] sm:$0xff]  ;;  %v511_v10 = vld [vmem:[#allocation2 + $0x788] sm:$0xff]  ;;  %v6297_v14 = vcombine.low %v503_v1, %v507_v3 }
 0x159   :  { %v6304_v15 = vcombine.high %v510_v7, %v514_v8  ;;  %v6306_v59 = vcombine.high %v511_v10, %v515_v12  ;;  %v6303_v21 = vcombine.low %v510_v7, %v514_v8  ;;  %v6305_v23 = vcombine.low %v511_v10, %v515_v12  ;;  %v559_v1 = vld [vmem:[#allocation2 + $0x908] sm:$0xff]  ;;  %v566_v7 = vld [vmem:[#allocation2 + $0x940] sm:$0xff] }
 0x15a   :  { %v563_v3 = vld [vmem:[#allocation2 + $0x928] sm:$0xff]  ;;  %v570_v8 = vld [vmem:[#allocation2 + $0x960] sm:$0xff] }
 0x15b   :  { %2670 = vmatpush1.bf16.msra.mxu0 %v6239_v17  ;;  %2793 = vmatpush1.bf16.msra.mxu1 %v6241_v18  ;;  %v518_v17 = vld [vmem:[#allocation2 + $0x7c0] sm:$0xff]  ;;  %v567_v10 = vld [vmem:[#allocation2 + $0x948] sm:$0xff] }
 0x15c   :  { %2671 = vmatprep.subr.bf16.mxu0 %v6248_v19  ;;  %2794 = vmatprep.subr.bf16.mxu1 %v6250_v22  ;;  %v522_v18 = vld [vmem:[#allocation2 + $0x7e0] sm:$0xff]  ;;  %v519_v19 = vld [vmem:[#allocation2 + $0x7c8] sm:$0xff] }
 0x15d   :  { %v526_v22 = vld [vmem:[#allocation2 + $0x800] sm:$0xff]  ;;  %v6314_v28 = vcombine.high %v519_v19, %v523_v20  ;;  %v6313_v31 = vcombine.low %v519_v19, %v523_v20  ;;  %v571_v12 = vld [vmem:[#allocation2 + $0x968] sm:$0xff] }
 0x15e   :  { %v575_v19 = vld [vmem:[#allocation2 + $0x988] sm:$0xff] }
 0x15f   :  { %2672 = vmatpush1.bf16.msra.mxu0 %v6247_v24  ;;  %2795 = vmatpush1.bf16.msra.mxu1 %v6249_v53  ;;  %v6312_v24 = vcombine.high %v518_v17, %v522_v18  ;;  %v530_v53 = vld [vmem:[#allocation2 + $0x820] sm:$0xff]  ;;  %v579_v20 = vld [vmem:[#allocation2 + $0x9a8] sm:$0xff] }
 0x160   :  { %2673 = vmatprep.subr.bf16.mxu0 %v6256_v26  ;;  %2796 = vmatprep.subr.bf16.mxu1 %v6258_v30  ;;  %v527_v26 = vld [vmem:[#allocation2 + $0x808] sm:$0xff]  ;;  %v6311_v30 = vcombine.low %v518_v17, %v522_v18  ;;  %v574_v17 = vld [vmem:[#allocation2 + $0x980] sm:$0xff] }
 0x161   :  { %v6322_v36 = vcombine.high %v527_v26, %v531_v27  ;;  %v578_v18 = vld [vmem:[#allocation2 + $0x9a0] sm:$0xff] }
 0x163   :  { %2674 = vmatpush1.bf16.msra.mxu0 %v6255_v32  ;;  %2797 = vmatpush1.bf16.msra.mxu1 %v6257_v33  ;;  %v6320_v32 = vcombine.high %v526_v22, %v530_v53  ;;  %v534_v33 = vld [vmem:[#allocation2 + $0x840] sm:$0xff] }
 0x164   :  { %2675 = vmatprep.subr.bf16.mxu0 %v6264_v34  ;;  %2798 = vmatprep.subr.bf16.mxu1 %v6266_v38  ;;  %v538_v34 = vld [vmem:[#allocation2 + $0x860] sm:$0xff]  ;;  %v257_v38 = vcombine.high %v8118_v29, %v8118_v29 }
 0x165   :  { %v6327_v16 = vcombine.low %v534_v33, %v538_v34 }
 0x167   :  { %2676 = vmatpush1.bf16.msra.mxu0 %v6263_v40  ;;  %2799 = vmatpush1.bf16.msra.mxu1 %v6265_v41  ;;  %v6319_v40 = vcombine.low %v526_v22, %v530_v53  ;;  %v6321_v41 = vcombine.low %v527_v26, %v531_v27  ;;  %v6361_v22 = vcombine.low %v567_v10, %v571_v12  ;;  %v586_v53 = vld [vmem:[#allocation2 + $0x9e0] sm:$0xff]  ;;  %v583_v26 = vld [vmem:[#allocation2 + $0x9c8] sm:$0xff] }
 0x168   :  { %2677 = vmatprep.subr.bf16.mxu0 %v6272_v42  ;;  %2800 = vmatprep.subr.bf16.mxu1 %v6274_v47  ;;  %v6328_v42 = vcombine.high %v534_v33, %v538_v34  ;;  %v6330_v47 = vcombine.high %v535_v63, %v539_v37  ;;  %v6370_v27 = vcombine.high %v575_v19, %v579_v20  ;;  %v590_v33 = vld [vmem:[#allocation2 + $0xa00] sm:$0xff] }
 0x169   :  { %v594_v34 = vld [vmem:[#allocation2 + $0xa20] sm:$0xff] }
 0x16b   :  { %2678 = vmatpush1.bf16.msra.mxu0 %v6271_v49  ;;  %2801 = vmatpush1.bf16.msra.mxu1 %v6273_v50  ;;  %v8126_v49 = vpack.c.bf16 %v257_v38, %v257_v38  ;;  %v6329_v50 = vcombine.low %v535_v63, %v539_v37  ;;  %v591_v63 = vld [vmem:[#allocation2 + $0xa08] sm:$0xff] }
 0x16c   :  { %2679 = vmatprep.subr.bf16.mxu0 %v6280_v51  ;;  %2802 = vmatprep.subr.bf16.mxu1 %v6282_v56  ;;  %v6336_v51 = vcombine.high %v542_v43, %v546_v45  ;;  %v6338_v56 = vcombine.high %v543_v46, %v547_v48  ;;  %v595_v37 = vld [vmem:[#allocation2 + $0xa28] sm:$0xff] }
 0x16f   :  { %2680 = vmatpush1.bf16.msra.mxu0 %v6279_v58  ;;  %2803 = vmatpush1.bf16.msra.mxu1 %v6281_v60  ;;  %v6335_v58 = vcombine.low %v542_v43, %v546_v45  ;;  %v6337_v60 = vcombine.low %v543_v46, %v547_v48  ;;  %v602_v43 = vld [vmem:[#allocation2 + $0xa60] sm:$0xff]  ;;  %v599_v45 = vld [vmem:[#allocation2 + $0xa48] sm:$0xff]  ;;  %v6386_v46 = vcombine.high %v591_v63, %v595_v37 }
 0x170   :  { %2681 = vmatprep.subr.bf16.mxu0 %v6288_v61  ;;  %2804 = vmatprep.subr.bf16.mxu1 %v6290_v2  ;;  %v6344_v61 = vcombine.high %v550_v52, %v554_v54  ;;  %v6346_v2 = vcombine.high %v551_v55, %v555_v57  ;;  %v6383_v48 = vcombine.low %v590_v33, %v594_v34 }
 0x173   :  { %2682 = vmatpush1.bf16.msra.mxu0 %v6287_v4  ;;  %2805 = vmatpush1.bf16.msra.mxu1 %v6289_v5  ;;  %v6343_v4 = vcombine.low %v550_v52, %v554_v54  ;;  %v6345_v5 = vcombine.low %v551_v55, %v555_v57  ;;  %v610_v52 = vld [vmem:[#allocation2 + $0xaa0] sm:$0xff]  ;;  %v607_v54 = vld [vmem:[#allocation2 + $0xa88] sm:$0xff] }
 0x174   :  { %2683 = vmatprep.subr.bf16.mxu0 %v6296_v6  ;;  %2806 = vmatprep.subr.bf16.mxu1 %v6298_v11  ;;  %v6352_v6 = vcombine.high %v558_v62, %v562_v0  ;;  %v6354_v11 = vcombine.high %v559_v1, %v563_v3 }
 0x177   :  { %2684 = vmatpush1.bf16.msra.mxu0 %v6295_v13  ;;  %2807 = vmatpush1.bf16.msra.mxu1 %v6297_v14  ;;  %v6351_v13 = vcombine.low %v558_v62, %v562_v0  ;;  %v6353_v14 = vcombine.low %v559_v1, %v563_v3  ;;  %v618_v62 = vld [vmem:[#allocation2 + $0xae0] sm:$0xff]  ;;  %v615_v0 = vld [vmem:[#allocation2 + $0xac8] sm:$0xff] }
 0x178   :  { %2685 = vmatprep.subr.bf16.mxu0 %v6304_v15  ;;  %2808 = vmatprep.subr.bf16.mxu1 %v6306_v59  ;;  %v6360_v15 = vcombine.high %v566_v7, %v570_v8  ;;  %v6362_v59 = vcombine.high %v567_v10, %v571_v12 }
 0x17b   :  { %2686 = vmatpush1.bf16.msra.mxu0 %v6303_v21  ;;  %2809 = vmatpush1.bf16.msra.mxu1 %v6305_v23  ;;  %v6359_v21 = vcombine.low %v566_v7, %v570_v8  ;;  %v6368_v23 = vcombine.high %v574_v17, %v578_v18  ;;  %v626_v7 = vld [vmem:[#allocation2 + $0xb20] sm:$0xff]  ;;  %v623_v8 = vld [vmem:[#allocation2 + $0xb08] sm:$0xff] }
 0x17c   :  { %2687 = vmatprep.subr.bf16.mxu0 %v6312_v24  ;;  %2810 = vmatprep.subr.bf16.mxu1 %v6314_v28  ;;  %v582_v24 = vld [vmem:[#allocation2 + $0x9c0] sm:$0xff]  ;;  %v587_v28 = vld [vmem:[#allocation2 + $0x9e8] sm:$0xff] }
 0x17d   :  { %v6375_v38 = vcombine.low %v582_v24, %v586_v53 }
 0x17f   :  { %2688 = vmatpush1.bf16.msra.mxu0 %v6311_v30  ;;  %2811 = vmatpush1.bf16.msra.mxu1 %v6313_v31  ;;  %v6367_v30 = vcombine.low %v574_v17, %v578_v18  ;;  %v6369_v31 = vcombine.low %v575_v19, %v579_v20  ;;  %v634_v17 = vld [vmem:[#allocation2 + $0xb60] sm:$0xff]  ;;  %v631_v18 = vld [vmem:[#allocation2 + $0xb48] sm:$0xff] }
 0x180   :  { %2698 = vmatprep.subr.bf16.mxu0 %v6320_v32  ;;  %2821 = vmatprep.subr.bf16.mxu1 %v6322_v36  ;;  %v6376_v32 = vcombine.high %v582_v24, %v586_v53  ;;  %v6378_v36 = vcombine.high %v583_v26, %v587_v28  ;;  %v642_v24 = vld [vmem:[#allocation2 + $0xba0] sm:$0xff]  ;;  %v639_v53 = vld [vmem:[#allocation2 + $0xb88] sm:$0xff] }
 0x182   :  { %2690 = vmatmul.mubr.bf16.vlgmr.msra.gmra.mrb[0].mxu0 %v8124_v39  ;;  %2813 = vmatmul.mubr.bf16.vlgmr.msra.gmra.mrb[0].mxu1 %v8124_v39 }
 0x183   :  { %2699 = vmatpush1.bf16.msra.mxu0 %v6319_v40  ;;  %2822 = vmatpush1.bf16.msra.mxu1 %v6321_v41  ;;  %v6377_v40 = vcombine.low %v583_v26, %v587_v28  ;;  %v6384_v41 = vcombine.high %v590_v33, %v594_v34  ;;  %v650_v33 = vld [vmem:[#allocation2 + $0xbe0] sm:$0xff]  ;;  %v647_v34 = vld [vmem:[#allocation2 + $0xbc8] sm:$0xff] }
 0x184   :  { %2700 = vmatprep.subr.bf16.mxu0 %v6328_v42  ;;  %2823 = vmatprep.subr.bf16.mxu1 %v6330_v47  ;;  %v598_v42 = vld [vmem:[#allocation2 + $0xa40] sm:$0xff]  ;;  %v603_v47 = vld [vmem:[#allocation2 + $0xa68] sm:$0xff] }
 0x185   :  { %2730 = vmatprep.mubr.bf16.mxu0 %v8126_v49  ;;  %2853 = vmatprep.mubr.bf16.mxu1 %v8126_v49  ;;  %v6394_v55 = vcombine.high %v599_v45, %v603_v47  ;;  %v6391_v57 = vcombine.low %v598_v42, %v602_v43 }
 0x187   :  { %2701 = vmatpush1.bf16.msra.mxu0 %v6327_v16  ;;  %2824 = vmatpush1.bf16.msra.mxu1 %v6329_v50  ;;  %v6385_v16 = vcombine.low %v591_v63, %v595_v37  ;;  %v6392_v50 = vcombine.high %v598_v42, %v602_v43  ;;  %v276_v42 = vld [vmem:[#allocation2 + $0x30] sm:$0xff]  ;;  %v273_v43 = vld [vmem:[#allocation2 + $0x18] sm:$0xff] }
 0x188   :  { %2702 = vmatprep.subr.bf16.mxu0 %v6336_v51  ;;  %2825 = vmatprep.subr.bf16.mxu1 %v6338_v56  ;;  %v606_v51 = vld [vmem:[#allocation2 + $0xa80] sm:$0xff]  ;;  %v611_v56 = vld [vmem:[#allocation2 + $0xaa8] sm:$0xff] }
 0x189   :  { %v6402_v1 = vcombine.high %v607_v54, %v611_v56  ;;  %v6399_v3 = vcombine.low %v606_v51, %v610_v52 }
 0x18b   :  { %2703 = vmatpush1.bf16.msra.mxu0 %v6335_v58  ;;  %2826 = vmatpush1.bf16.msra.mxu1 %v6337_v60  ;;  %v6393_v58 = vcombine.low %v599_v45, %v603_v47  ;;  %v6400_v60 = vcombine.high %v606_v51, %v610_v52  ;;  %v284_v51 = vld [vmem:[#allocation2 + $0x70] sm:$0xff]  ;;  %v281_v52 = vld [vmem:[#allocation2 + $0x58] sm:$0xff] }
 0x18c   :  { %2704 = vmatprep.subr.bf16.mxu0 %v6344_v61  ;;  %2827 = vmatprep.subr.bf16.mxu1 %v6346_v2  ;;  %v614_v61 = vld [vmem:[#allocation2 + $0xac0] sm:$0xff]  ;;  %v619_v2 = vld [vmem:[#allocation2 + $0xae8] sm:$0xff] }
 0x18d   :  { %v6410_v10 = vcombine.high %v615_v0, %v619_v2  ;;  %v6407_v12 = vcombine.low %v614_v61, %v618_v62 }
 0x18f   :  { %2705 = vmatpush1.bf16.msra.mxu0 %v6343_v4  ;;  %2828 = vmatpush1.bf16.msra.mxu1 %v6345_v5  ;;  %v6401_v4 = vcombine.low %v607_v54, %v611_v56  ;;  %v6408_v5 = vcombine.high %v614_v61, %v618_v62  ;;  %v8134_v56 = vpack.c.bf16 %v8118_v29, %v8118_v29  ;;  %v288_v61 = vld [vmem:[#allocation2 + $0x90] sm:$0xff] }
 0x190   :  { %2706 = vmatprep.subr.bf16.mxu0 %v6352_v6  ;;  %2829 = vmatprep.subr.bf16.mxu1 %v6354_v11  ;;  %v622_v6 = vld [vmem:[#allocation2 + $0xb00] sm:$0xff]  ;;  %v627_v11 = vld [vmem:[#allocation2 + $0xb28] sm:$0xff]  ;;  %v292_v62 = vld [vmem:[#allocation2 + $0xb0] sm:$0xff] }
 0x191   :  { %v6418_v19 = vcombine.high %v623_v8, %v627_v11  ;;  %v6415_v20 = vcombine.low %v622_v6, %v626_v7 }
 0x193   :  { %2707 = vmatpush1.bf16.msra.mxu0 %v6351_v13  ;;  %2830 = vmatpush1.bf16.msra.mxu1 %v6353_v14  ;;  %v6409_v13 = vcombine.low %v615_v0, %v619_v2  ;;  %v6416_v14 = vcombine.high %v622_v6, %v626_v7  ;;  %v289_v0 = vld [vmem:[#allocation2 + $0x98] sm:$0xff]  ;;  %v300_v6 = vld [vmem:[#allocation2 + $0xf0] sm:$0xff] }
 0x194   :  { %2708 = vmatprep.subr.bf16.mxu0 %v6360_v15  ;;  %2831 = vmatprep.subr.bf16.mxu1 %v6362_v59  ;;  %v630_v15 = vld [vmem:[#allocation2 + $0xb40] sm:$0xff]  ;;  %v635_v59 = vld [vmem:[#allocation2 + $0xb68] sm:$0xff]  ;;  %v293_v2 = vld [vmem:[#allocation2 + $0xb8] sm:$0xff] }
 0x195   :  { %v6426_v26 = vcombine.high %v631_v18, %v635_v59  ;;  %v6423_v28 = vcombine.low %v630_v15, %v634_v17  ;;  %v297_v7 = vld [vmem:[#allocation2 + $0xd8] sm:$0xff] }
 0x197   :  { %2709 = vmatpush1.bf16.msra.mxu0 %v6359_v21  ;;  %2832 = vmatpush1.bf16.msra.mxu1 %v6361_v22  ;;  %v6417_v21 = vcombine.low %v623_v8, %v627_v11  ;;  %v6424_v22 = vcombine.high %v630_v15, %v634_v17  ;;  %v6086_v8 = vcombine.high %v289_v0, %v293_v2  ;;  %v308_v15 = vld [vmem:[#allocation2 + $0x130] sm:$0xff]  ;;  %v305_v17 = vld [vmem:[#allocation2 + $0x118] sm:$0xff] }
 0x198   :  { %2710 = vmatprep.subr.bf16.mxu0 %v6368_v23  ;;  %2833 = vmatprep.subr.bf16.mxu1 %v6370_v27  ;;  %v638_v23 = vld [vmem:[#allocation2 + $0xb80] sm:$0xff]  ;;  %v643_v27 = vld [vmem:[#allocation2 + $0xba8] sm:$0xff]  ;;  %v6083_v11 = vcombine.low %v288_v61, %v292_v62 }
 0x199   :  { %v6434_v63 = vcombine.high %v639_v53, %v643_v27  ;;  %v6431_v37 = vcombine.low %v638_v23, %v642_v24 }
 0x19b   :  { %2711 = vmatpush1.bf16.msra.mxu0 %v6367_v30  ;;  %2834 = vmatpush1.bf16.msra.mxu1 %v6369_v31  ;;  %v6425_v30 = vcombine.low %v631_v18, %v635_v59  ;;  %v6432_v31 = vcombine.high %v638_v23, %v642_v24  ;;  %v313_v23 = vld [vmem:[#allocation2 + $0x158] sm:$0xff] }
 0x19c   :  { %2712 = vmatprep.subr.bf16.mxu0 %v6376_v32  ;;  %2835 = vmatprep.subr.bf16.mxu1 %v6378_v36  ;;  %v646_v32 = vld [vmem:[#allocation2 + $0xbc0] sm:$0xff]  ;;  %v651_v36 = vld [vmem:[#allocation2 + $0xbe8] sm:$0xff] }
 0x19d   :  { %v6442_v45 = vcombine.high %v647_v34, %v651_v36  ;;  %v6439_v47 = vcombine.low %v646_v32, %v650_v33 }
 0x19f   :  { %2713 = vmatpush1.bf16.msra.mxu0 %v6375_v38  ;;  %2836 = vmatpush1.bf16.msra.mxu1 %v6377_v40  ;;  %v6433_v38 = vcombine.low %v639_v53, %v643_v27  ;;  %v6440_v40 = vcombine.high %v646_v32, %v650_v33  ;;  %v317_v53 = vld [vmem:[#allocation2 + $0x178] sm:$0xff] }
 0x1a0   :  { %2714 = vmatprep.subr.bf16.mxu0 %v6384_v41  ;;  %2837 = vmatprep.subr.bf16.mxu1 %v6386_v46  ;;  %v272_v41 = vld [vmem:[#allocation2 + $0x10] sm:$0xff]  ;;  %v277_v46 = vld [vmem:[#allocation2 + $0x38] sm:$0xff]  ;;  %v6110_v33 = vcombine.high %v313_v23, %v317_v53 }
 0x1a1   :  { %v6070_v54 = vcombine.high %v273_v43, %v277_v46  ;;  %v321_v32 = vld [vmem:[#allocation2 + $0x198] sm:$0xff] }
 0x1a3   :  { %2715 = vmatpush1.bf16.msra.mxu0 %v6383_v48  ;;  %2838 = vmatpush1.bf16.msra.mxu1 %v6385_v16  ;;  %v6441_v48 = vcombine.low %v647_v34, %v651_v36  ;;  %v6068_v16 = vcombine.high %v272_v41, %v276_v42  ;;  %v325_v34 = vld [vmem:[#allocation2 + $0x1b8] sm:$0xff]  ;;  %v6109_v36 = vcombine.low %v313_v23, %v317_v53 }
 0x1a4   :  { %2716 = vmatprep.subr.bf16.mxu0 %v6392_v50  ;;  %2839 = vmatprep.subr.bf16.mxu1 %v6394_v55  ;;  %v280_v50 = vld [vmem:[#allocation2 + $0x50] sm:$0xff]  ;;  %v285_v55 = vld [vmem:[#allocation2 + $0x78] sm:$0xff] }
 0x1a5   :  { %v6077_v29 = vcombine.low %v281_v52, %v285_v55  ;;  %v373_v23 = vld [vmem:[#allocation2 + $0x338] sm:$0xff] }
 0x1a7   :  { %2717 = vmatpush1.bf16.msra.mxu0 %v6391_v57  ;;  %2840 = vmatpush1.bf16.msra.mxu1 %v6393_v58  ;;  %v6067_v57 = vcombine.low %v272_v41, %v276_v42  ;;  %v6069_v58 = vcombine.low %v273_v43, %v277_v46  ;;  %v329_v41 = vld [vmem:[#allocation2 + $0x1d8] sm:$0xff]  ;;  %v6118_v42 = vcombine.high %v321_v32, %v325_v34 }
 0x1a8   :  { %2718 = vmatprep.subr.bf16.mxu0 %v6400_v60  ;;  %2841 = vmatprep.subr.bf16.mxu1 %v6402_v1  ;;  %v6076_v60 = vcombine.high %v280_v50, %v284_v51  ;;  %v6078_v1 = vcombine.high %v281_v52, %v285_v55  ;;  %v333_v43 = vld [vmem:[#allocation2 + $0x1f8] sm:$0xff]  ;;  %v6117_v46 = vcombine.low %v321_v32, %v325_v34 }
 0x1a9   :  { %v341_v52 = vld [vmem:[#allocation2 + $0x238] sm:$0xff]  ;;  %v6125_v55 = vcombine.low %v329_v41, %v333_v43 }
 0x1aa   :  { %v381_v32 = vld [vmem:[#allocation2 + $0x378] sm:$0xff] }
 0x1ab   :  { %2719 = vmatpush1.bf16.msra.mxu0 %v6399_v3  ;;  %2842 = vmatpush1.bf16.msra.mxu1 %v6401_v4  ;;  %v6075_v3 = vcombine.low %v280_v50, %v284_v51  ;;  %v6084_v4 = vcombine.high %v288_v61, %v292_v62  ;;  %v337_v50 = vld [vmem:[#allocation2 + $0x218] sm:$0xff]  ;;  %v6126_v51 = vcombine.high %v329_v41, %v333_v43 }
 0x1ac   :  { %2720 = vmatprep.subr.bf16.mxu0 %v6408_v5  ;;  %2843 = vmatprep.subr.bf16.mxu1 %v6410_v10  ;;  %v296_v5 = vld [vmem:[#allocation2 + $0xd0] sm:$0xff]  ;;  %v301_v10 = vld [vmem:[#allocation2 + $0xf8] sm:$0xff]  ;;  %v6134_v62 = vcombine.high %v337_v50, %v341_v52 }
 0x1ad   :  { %v6094_v18 = vcombine.high %v297_v7, %v301_v10  ;;  %v6091_v59 = vcombine.low %v296_v5, %v300_v6  ;;  %v345_v61 = vld [vmem:[#allocation2 + $0x258] sm:$0xff] }
 0x1ae   :  { %v389_v41 = vld [vmem:[#allocation2 + $0x3b8] sm:$0xff] }
 0x1af   :  { %2721 = vmatpush1.bf16.msra.mxu0 %v6407_v12  ;;  %2844 = vmatpush1.bf16.msra.mxu1 %v6409_v13  ;;  %v6085_v12 = vcombine.low %v289_v0, %v293_v2  ;;  %v6092_v13 = vcombine.high %v296_v5, %v300_v6  ;;  %v349_v0 = vld [vmem:[#allocation2 + $0x278] sm:$0xff]  ;;  %v6133_v2 = vcombine.low %v337_v50, %v341_v52  ;;  %v356_v5 = vld [vmem:[#allocation2 + $0x2b0] sm:$0xff] }
 0x1b0   :  { %2722 = vmatprep.subr.bf16.mxu0 %v6416_v14  ;;  %2845 = vmatprep.subr.bf16.mxu1 %v6418_v19  ;;  %v304_v14 = vld [vmem:[#allocation2 + $0x110] sm:$0xff]  ;;  %v309_v19 = vld [vmem:[#allocation2 + $0x138] sm:$0xff] }
 0x1b1   :  { %v6102_v24 = vcombine.high %v305_v17, %v309_v19  ;;  %v6101_v27 = vcombine.low %v305_v17, %v309_v19  ;;  %v353_v6 = vld [vmem:[#allocation2 + $0x298] sm:$0xff] }
 0x1b2   :  { %v365_v17 = vld [vmem:[#allocation2 + $0x2f8] sm:$0xff] }
 0x1b3   :  { %2723 = vmatpush1.bf16.msra.mxu0 %v6415_v20  ;;  %2846 = vmatpush1.bf16.msra.mxu1 %v6417_v21  ;;  %v6093_v20 = vcombine.low %v297_v7, %v301_v10  ;;  %v6100_v21 = vcombine.high %v304_v14, %v308_v15  ;;  %v357_v7 = vld [vmem:[#allocation2 + $0x2b8] sm:$0xff]  ;;  %v6141_v10 = vcombine.low %v345_v61, %v349_v0 }
 0x1b4   :  { %2724 = vmatprep.subr.bf16.mxu0 %v6424_v22  ;;  %2847 = vmatprep.subr.bf16.mxu1 %v6426_v26  ;;  %v312_v22 = vld [vmem:[#allocation2 + $0x150] sm:$0xff]  ;;  %v6099_v26 = vcombine.low %v304_v14, %v308_v15  ;;  %v361_v15 = vld [vmem:[#allocation2 + $0x2d8] sm:$0xff]  ;;  %v6149_v19 = vcombine.low %v353_v6, %v357_v7 }
 0x1b5   :  { %v364_v14 = vld [vmem:[#allocation2 + $0x2f0] sm:$0xff]  ;;  %v6157_v53 = vcombine.low %v361_v15, %v365_v17  ;;  %v397_v50 = vld [vmem:[#allocation2 + $0x3f8] sm:$0xff] }
 0x1b7   :  { %2725 = vmatpush1.bf16.msra.mxu0 %v6423_v28  ;;  %2848 = vmatpush1.bf16.msra.mxu1 %v6425_v30  ;;  %v320_v30 = vld [vmem:[#allocation2 + $0x190] sm:$0xff] }
 0x1b8   :  { %2726 = vmatprep.subr.bf16.mxu0 %v6432_v31  ;;  %2849 = vmatprep.subr.bf16.mxu1 %v6434_v63  ;;  %v324_v31 = vld [vmem:[#allocation2 + $0x1b0] sm:$0xff] }
 0x1bb   :  { %2727 = vmatpush1.bf16.msra.mxu0 %v6431_v37  ;;  %2850 = vmatpush1.bf16.msra.mxu1 %v6433_v38  ;;  %v6116_v37 = vcombine.high %v320_v30, %v324_v31  ;;  %v328_v38 = vld [vmem:[#allocation2 + $0x1d0] sm:$0xff] }
 0x1bc   :  { %2728 = vmatprep.subr.bf16.mxu0 %v6440_v40  ;;  %2851 = vmatprep.subr.bf16.mxu1 %v6442_v45  ;;  %v332_v40 = vld [vmem:[#allocation2 + $0x1f0] sm:$0xff]  ;;  %v6115_v45 = vcombine.low %v320_v30, %v324_v31  ;;  %v377_v31 = vld [vmem:[#allocation2 + $0x358] sm:$0xff] }
 0x1bd   :  { %v380_v30 = vld [vmem:[#allocation2 + $0x370] sm:$0xff]  ;;  %v6173_v43 = vcombine.low %v377_v31, %v381_v32 }
 0x1bf   :  { %2729 = vmatpush1.bf16.msra.mxu0 %v6439_v47  ;;  %2852 = vmatpush1.bf16.msra.mxu1 %v6441_v48  ;;  %v6124_v47 = vcombine.high %v328_v38, %v332_v40  ;;  %v336_v48 = vld [vmem:[#allocation2 + $0x210] sm:$0xff] }
 0x1c0   :  { %2862 = vmatprep.subr.bf16.mxu0 %v6068_v16  ;;  %2985 = vmatprep.subr.bf16.mxu1 %v6070_v54  ;;  %v340_v16 = vld [vmem:[#allocation2 + $0x230] sm:$0xff]  ;;  %v6123_v54 = vcombine.low %v328_v38, %v332_v40  ;;  %v385_v40 = vld [vmem:[#allocation2 + $0x398] sm:$0xff] }
 0x1c1   :  { %v388_v38 = vld [vmem:[#allocation2 + $0x3b0] sm:$0xff]  ;;  %v6181_v52 = vcombine.low %v385_v40, %v389_v41 }
 0x1c2   :  { %2731 = vmatmul.mubr.bf16.vlgmr.msra.gmra.mrb[0].mxu0 %v8134_v56  ;;  %2854 = vmatmul.mubr.bf16.vlgmr.msra.gmra.mrb[0].mxu1 %v8134_v56 }
 0x1c3   :  { %2863 = vmatpush1.bf16.msra.mxu0 %v6067_v57  ;;  %2986 = vmatpush1.bf16.msra.mxu1 %v6069_v58  ;;  %v6132_v57 = vcombine.high %v336_v48, %v340_v16  ;;  %v344_v58 = vld [vmem:[#allocation2 + $0x250] sm:$0xff] }
 0x1c4   :  { %2864 = vmatprep.subr.bf16.mxu0 %v6076_v60  ;;  %2987 = vmatprep.subr.bf16.mxu1 %v6078_v1  ;;  %v348_v60 = vld [vmem:[#allocation2 + $0x270] sm:$0xff]  ;;  %v6131_v1 = vcombine.low %v336_v48, %v340_v16  ;;  %v393_v16 = vld [vmem:[#allocation2 + $0x3d8] sm:$0xff] }
 0x1c5   :  { %2894 = vmatprep.mubr.bf16.mxu0 %v8094_v9  ;;  %3017 = vmatprep.mubr.bf16.mxu1 %v8094_v9  ;;  %v316_v9 = vld [vmem:[#allocation2 + $0x170] sm:$0xff] }
 0x1c6   :  { %v6108_v28 = vcombine.high %v312_v22, %v316_v9  ;;  %v6107_v63 = vcombine.low %v312_v22, %v316_v9  ;;  %v372_v22 = vld [vmem:[#allocation2 + $0x330] sm:$0xff]  ;;  %v369_v9 = vld [vmem:[#allocation2 + $0x318] sm:$0xff] }
 0x1c7   :  { %2865 = vmatpush1.bf16.msra.mxu0 %v6075_v3  ;;  %2988 = vmatpush1.bf16.msra.mxu1 %v6077_v29  ;;  %v6140_v3 = vcombine.high %v344_v58, %v348_v60  ;;  %v6142_v29 = vcombine.high %v345_v61, %v349_v0  ;;  %v6165_v34 = vcombine.low %v369_v9, %v373_v23  ;;  %v396_v48 = vld [vmem:[#allocation2 + $0x3f0] sm:$0xff]  ;;  %v405_v61 = vld [vmem:[#allocation2 + $0x438] sm:$0xff] }
 0x1c8   :  { %2866 = vmatprep.subr.bf16.mxu0 %v6084_v4  ;;  %2989 = vmatprep.subr.bf16.mxu1 %v6086_v8  ;;  %v352_v4 = vld [vmem:[#allocation2 + $0x290] sm:$0xff]  ;;  %v6139_v8 = vcombine.low %v344_v58, %v348_v60  ;;  %v401_v60 = vld [vmem:[#allocation2 + $0x418] sm:$0xff]  ;;  %v6189_v0 = vcombine.low %v393_v16, %v397_v50 }
 0x1c9   :  { %v404_v58 = vld [vmem:[#allocation2 + $0x430] sm:$0xff] }
 0x1cb   :  { %2867 = vmatpush1.bf16.msra.mxu0 %v6083_v11  ;;  %2990 = vmatpush1.bf16.msra.mxu1 %v6085_v12  ;;  %v6148_v11 = vcombine.high %v352_v4, %v356_v5  ;;  %v6150_v12 = vcombine.high %v353_v6, %v357_v7  ;;  %v6197_v7 = vcombine.low %v401_v60, %v405_v61 }
 0x1cc   :  { %2868 = vmatprep.subr.bf16.mxu0 %v6092_v13  ;;  %2991 = vmatprep.subr.bf16.mxu1 %v6094_v18  ;;  %v360_v13 = vld [vmem:[#allocation2 + $0x2d0] sm:$0xff]  ;;  %v6147_v18 = vcombine.low %v352_v4, %v356_v5  ;;  %v409_v4 = vld [vmem:[#allocation2 + $0x458] sm:$0xff] }
 0x1cd   :  { %v413_v5 = vld [vmem:[#allocation2 + $0x478] sm:$0xff] }
 0x1cf   :  { %2869 = vmatpush1.bf16.msra.mxu0 %v6091_v59  ;;  %2992 = vmatpush1.bf16.msra.mxu1 %v6093_v20  ;;  %v6156_v59 = vcombine.high %v360_v13, %v364_v14  ;;  %v6158_v20 = vcombine.high %v361_v15, %v365_v17  ;;  %v6205_v17 = vcombine.low %v409_v4, %v413_v5 }
 0x1d0   :  { %2870 = vmatprep.subr.bf16.mxu0 %v6100_v21  ;;  %2993 = vmatprep.subr.bf16.mxu1 %v6102_v24  ;;  %v368_v21 = vld [vmem:[#allocation2 + $0x310] sm:$0xff]  ;;  %v6155_v24 = vcombine.low %v360_v13, %v364_v14  ;;  %v417_v13 = vld [vmem:[#allocation2 + $0x498] sm:$0xff] }
 0x1d1   :  { %v421_v14 = vld [vmem:[#allocation2 + $0x4b8] sm:$0xff] }
 0x1d3   :  { %2871 = vmatpush1.bf16.msra.mxu0 %v6099_v26  ;;  %2994 = vmatpush1.bf16.msra.mxu1 %v6101_v27  ;;  %v6164_v26 = vcombine.high %v368_v21, %v372_v22  ;;  %v6166_v27 = vcombine.high %v369_v9, %v373_v23 }
 0x1d4   :  { %2872 = vmatprep.subr.bf16.mxu0 %v6108_v28  ;;  %2995 = vmatprep.subr.bf16.mxu1 %v6110_v33  ;;  %v376_v28 = vld [vmem:[#allocation2 + $0x350] sm:$0xff]  ;;  %v6163_v33 = vcombine.low %v368_v21, %v372_v22  ;;  %v425_v21 = vld [vmem:[#allocation2 + $0x4d8] sm:$0xff] }
 0x1d5   :  { %v429_v22 = vld [vmem:[#allocation2 + $0x4f8] sm:$0xff] }
 0x1d7   :  { %2873 = vmatpush1.bf16.msra.mxu0 %v6107_v63  ;;  %2996 = vmatpush1.bf16.msra.mxu1 %v6109_v36  ;;  %v6172_v63 = vcombine.high %v376_v28, %v380_v30  ;;  %v6174_v36 = vcombine.high %v377_v31, %v381_v32  ;;  %v6221_v31 = vcombine.low %v425_v21, %v429_v22 }
 0x1d8   :  { %2874 = vmatprep.subr.bf16.mxu0 %v6116_v37  ;;  %2997 = vmatprep.subr.bf16.mxu1 %v6118_v42  ;;  %v384_v37 = vld [vmem:[#allocation2 + $0x390] sm:$0xff]  ;;  %v6171_v42 = vcombine.low %v376_v28, %v380_v30  ;;  %v437_v28 = vld [vmem:[#allocation2 + $0x538] sm:$0xff] }
 0x1db   :  { %2875 = vmatpush1.bf16.msra.mxu0 %v6115_v45  ;;  %2998 = vmatpush1.bf16.msra.mxu1 %v6117_v46  ;;  %v6180_v45 = vcombine.high %v384_v37, %v388_v38  ;;  %v6182_v46 = vcombine.high %v385_v40, %v389_v41 }
 0x1dc   :  { %2876 = vmatprep.subr.bf16.mxu0 %v6124_v47  ;;  %2999 = vmatprep.subr.bf16.mxu1 %v6126_v51  ;;  %v392_v47 = vld [vmem:[#allocation2 + $0x3d0] sm:$0xff]  ;;  %v6179_v51 = vcombine.low %v384_v37, %v388_v38 }
 0x1df   :  { %2877 = vmatpush1.bf16.msra.mxu0 %v6123_v54  ;;  %3000 = vmatpush1.bf16.msra.mxu1 %v6125_v55  ;;  %v6188_v54 = vcombine.high %v392_v47, %v396_v48  ;;  %v6190_v55 = vcombine.high %v393_v16, %v397_v50 }
 0x1e0   :  { %2878 = vmatprep.subr.bf16.mxu0 %v6132_v57  ;;  %3001 = vmatprep.subr.bf16.mxu1 %v6134_v62  ;;  %v400_v57 = vld [vmem:[#allocation2 + $0x410] sm:$0xff]  ;;  %v6187_v62 = vcombine.low %v392_v47, %v396_v48 }
 0x1e1   :  { %v6195_v6 = vcombine.low %v400_v57, %v404_v58 }
 0x1e3   :  { %2879 = vmatpush1.bf16.msra.mxu0 %v6131_v1  ;;  %3002 = vmatpush1.bf16.msra.mxu1 %v6133_v2  ;;  %v6196_v1 = vcombine.high %v400_v57, %v404_v58  ;;  %v6198_v2 = vcombine.high %v401_v60, %v405_v61 }
 0x1e4   :  { %2880 = vmatprep.subr.bf16.mxu0 %v6140_v3  ;;  %3003 = vmatprep.subr.bf16.mxu1 %v6142_v29  ;;  %v408_v3 = vld [vmem:[#allocation2 + $0x450] sm:$0xff] }
 0x1e5   :  { %v412_v29 = vld [vmem:[#allocation2 + $0x470] sm:$0xff] }
 0x1e6   :  { %v6203_v15 = vcombine.low %v408_v3, %v412_v29 }
 0x1e7   :  { %2881 = vmatpush1.bf16.msra.mxu0 %v6139_v8  ;;  %3004 = vmatpush1.bf16.msra.mxu1 %v6141_v10  ;;  %v6204_v8 = vcombine.high %v408_v3, %v412_v29  ;;  %v6206_v10 = vcombine.high %v409_v4, %v413_v5 }
 0x1e8   :  { %2882 = vmatprep.subr.bf16.mxu0 %v6148_v11  ;;  %3005 = vmatprep.subr.bf16.mxu1 %v6150_v12  ;;  %v416_v11 = vld [vmem:[#allocation2 + $0x490] sm:$0xff] }
 0x1e9   :  { %v420_v12 = vld [vmem:[#allocation2 + $0x4b0] sm:$0xff] }
 0x1ea   :  { %v6211_v9 = vcombine.low %v416_v11, %v420_v12 }
 0x1eb   :  { %2883 = vmatpush1.bf16.msra.mxu0 %v6147_v18  ;;  %3006 = vmatpush1.bf16.msra.mxu1 %v6149_v19  ;;  %v6212_v18 = vcombine.high %v416_v11, %v420_v12  ;;  %v6214_v19 = vcombine.high %v417_v13, %v421_v14 }
 0x1ec   :  { %2884 = vmatprep.subr.bf16.mxu0 %v6156_v59  ;;  %3007 = vmatprep.subr.bf16.mxu1 %v6158_v20  ;;  %v424_v59 = vld [vmem:[#allocation2 + $0x4d0] sm:$0xff] }
 0x1ed   :  { %v428_v20 = vld [vmem:[#allocation2 + $0x4f0] sm:$0xff] }
 0x1ee   :  { %v6220_v23 = vcombine.high %v424_v59, %v428_v20  ;;  %v6219_v30 = vcombine.low %v424_v59, %v428_v20 }
 0x1ef   :  { %2885 = vmatpush1.bf16.msra.mxu0 %v6155_v24  ;;  %3008 = vmatpush1.bf16.msra.mxu1 %v6157_v53  ;;  %v6222_v24 = vcombine.high %v425_v21, %v429_v22  ;;  %v432_v53 = vld [vmem:[#allocation2 + $0x510] sm:$0xff] }
 0x1f0   :  { %2886 = vmatprep.subr.bf16.mxu0 %v6164_v26  ;;  %3009 = vmatprep.subr.bf16.mxu1 %v6166_v27  ;;  %v436_v26 = vld [vmem:[#allocation2 + $0x530] sm:$0xff]  ;;  %v433_v27 = vld [vmem:[#allocation2 + $0x518] sm:$0xff] }
 0x1f1   :  { %v6228_v32 = vcombine.high %v432_v53, %v436_v26  ;;  %v6227_v37 = vcombine.low %v432_v53, %v436_v26  ;;  %v6229_v38 = vcombine.low %v433_v27, %v437_v28 }
 0x1f3   :  { %2887 = vmatpush1.bf16.msra.mxu0 %v6163_v33  ;;  %3010 = vmatpush1.bf16.msra.mxu1 %v6165_v34  ;;  %v440_v33 = vld [vmem:[#allocation2 + $0x550] sm:$0xff] }
 0x1f4   :  { %2888 = vmatprep.subr.bf16.mxu0 %v6172_v63  ;;  %3011 = vmatprep.subr.bf16.mxu1 %v6174_v36  ;;  %v444_v34 = vld [vmem:[#allocation2 + $0x570] sm:$0xff]  ;;  %v441_v63 = vld [vmem:[#allocation2 + $0x558] sm:$0xff] }
 0x1f5   :  { %v445_v36 = vld [vmem:[#allocation2 + $0x578] sm:$0xff]  ;;  %v6236_v40 = vcombine.high %v440_v33, %v444_v34  ;;  %v6235_v47 = vcombine.low %v440_v33, %v444_v34 }
 0x1f6   :  { %v6238_v41 = vcombine.high %v441_v63, %v445_v36  ;;  %v6237_v48 = vcombine.low %v441_v63, %v445_v36 }
 0x1f7   :  { %2889 = vmatpush1.bf16.msra.mxu0 %v6171_v42  ;;  %3012 = vmatpush1.bf16.msra.mxu1 %v6173_v43  ;;  %v448_v42 = vld [vmem:[#allocation2 + $0x590] sm:$0xff] }
 0x1f8   :  { %2890 = vmatprep.subr.bf16.mxu0 %v6180_v45  ;;  %3013 = vmatprep.subr.bf16.mxu1 %v6182_v46  ;;  %v452_v43 = vld [vmem:[#allocation2 + $0x5b0] sm:$0xff]  ;;  %v449_v45 = vld [vmem:[#allocation2 + $0x598] sm:$0xff] }
 0x1f9   :  { %v453_v46 = vld [vmem:[#allocation2 + $0x5b8] sm:$0xff]  ;;  %v6244_v16 = vcombine.high %v448_v42, %v452_v43  ;;  %v6243_v57 = vcombine.low %v448_v42, %v452_v43 }
 0x1fa   :  { %v6246_v50 = vcombine.high %v449_v45, %v453_v46  ;;  %v6245_v58 = vcombine.low %v449_v45, %v453_v46 }
 0x1fb   :  { %2891 = vmatpush1.bf16.msra.mxu0 %v6179_v51  ;;  %3014 = vmatpush1.bf16.msra.mxu1 %v6181_v52  ;;  %v456_v51 = vld [vmem:[#allocation2 + $0x5d0] sm:$0xff] }
 0x1fc   :  { %2892 = vmatprep.subr.bf16.mxu0 %v6188_v54  ;;  %3015 = vmatprep.subr.bf16.mxu1 %v6190_v55  ;;  %v460_v52 = vld [vmem:[#allocation2 + $0x5f0] sm:$0xff]  ;;  %v457_v54 = vld [vmem:[#allocation2 + $0x5d8] sm:$0xff] }
 0x1fd   :  { %v461_v55 = vld [vmem:[#allocation2 + $0x5f8] sm:$0xff]  ;;  %v6252_v60 = vcombine.high %v456_v51, %v460_v52  ;;  %v6251_v3 = vcombine.low %v456_v51, %v460_v52 }
 0x1fe   :  { %v6254_v61 = vcombine.high %v457_v54, %v461_v55  ;;  %v6253_v29 = vcombine.low %v457_v54, %v461_v55 }
 0x1ff   :  { %2893 = vmatpush1.bf16.msra.mxu0 %v6187_v62  ;;  %3016 = vmatpush1.bf16.msra.mxu1 %v6189_v0  ;;  %v464_v62 = vld [vmem:[#allocation2 + $0x610] sm:$0xff] }
 0x200   :  { %2903 = vmatprep.subr.bf16.mxu0 %v6196_v1  ;;  %3026 = vmatprep.subr.bf16.mxu1 %v6198_v2  ;;  %v468_v0 = vld [vmem:[#allocation2 + $0x630] sm:$0xff]  ;;  %v465_v1 = vld [vmem:[#allocation2 + $0x618] sm:$0xff] }
 0x201   :  { %v469_v2 = vld [vmem:[#allocation2 + $0x638] sm:$0xff]  ;;  %v6260_v4 = vcombine.high %v464_v62, %v468_v0  ;;  %v6259_v11 = vcombine.low %v464_v62, %v468_v0 }
 0x202   :  { %2895 = vmatmul.mubr.bf16.vlgmr.msra.gmra.mrb[4].mxu0 %v8107_v25  ;;  %3018 = vmatmul.mubr.bf16.vlgmr.msra.gmra.mrb[4].mxu1 %v8107_v25  ;;  %v6213_v25 = vcombine.low %v417_v13, %v421_v14  ;;  %v6262_v5 = vcombine.high %v465_v1, %v469_v2  ;;  %v6261_v12 = vcombine.low %v465_v1, %v469_v2 }
 0x203   :  { %2904 = vmatpush1.bf16.msra.mxu0 %v6195_v6  ;;  %3027 = vmatpush1.bf16.msra.mxu1 %v6197_v7  ;;  %v472_v6 = vld [vmem:[#allocation2 + $0x650] sm:$0xff] }
 0x204   :  { %2905 = vmatprep.subr.bf16.mxu0 %v6204_v8  ;;  %3028 = vmatprep.subr.bf16.mxu1 %v6206_v10  ;;  %v476_v7 = vld [vmem:[#allocation2 + $0x670] sm:$0xff]  ;;  %v473_v8 = vld [vmem:[#allocation2 + $0x658] sm:$0xff] }
 0x205   :  { %2935 = vmatprep.mubr.bf16.mxu0 %v8109_v35  ;;  %3058 = vmatprep.mubr.bf16.mxu1 %v8109_v35  ;;  %v6230_v35 = vcombine.high %v433_v27, %v437_v28  ;;  %v477_v10 = vld [vmem:[#allocation2 + $0x678] sm:$0xff]  ;;  %v6268_v13 = vcombine.high %v472_v6, %v476_v7  ;;  %v6267_v59 = vcombine.low %v472_v6, %v476_v7 }
 0x206   :  { %v6270_v14 = vcombine.high %v473_v8, %v477_v10  ;;  %v6269_v20 = vcombine.low %v473_v8, %v477_v10 }
 0x207   :  { %2906 = vmatpush1.bf16.msra.mxu0 %v6203_v15  ;;  %3029 = vmatpush1.bf16.msra.mxu1 %v6205_v17  ;;  %v480_v15 = vld [vmem:[#allocation2 + $0x690] sm:$0xff] }
 0x208   :  { %2907 = vmatprep.subr.bf16.mxu0 %v6212_v18  ;;  %3030 = vmatprep.subr.bf16.mxu1 %v6214_v19  ;;  %v484_v17 = vld [vmem:[#allocation2 + $0x6b0] sm:$0xff]  ;;  %v481_v18 = vld [vmem:[#allocation2 + $0x698] sm:$0xff] }
 0x209   :  { %v485_v19 = vld [vmem:[#allocation2 + $0x6b8] sm:$0xff]  ;;  %v6276_v21 = vcombine.high %v480_v15, %v484_v17  ;;  %v6275_v53 = vcombine.low %v480_v15, %v484_v17 }
 0x20a   :  { %v6278_v22 = vcombine.high %v481_v18, %v485_v19  ;;  %v6277_v26 = vcombine.low %v481_v18, %v485_v19 }
 0x20b   :  { %2908 = vmatpush1.bf16.msra.mxu0 %v6211_v9  ;;  %3031 = vmatpush1.bf16.msra.mxu1 %v6213_v25  ;;  %v488_v9 = vld [vmem:[#allocation2 + $0x6d0] sm:$0xff] }
 0x20c   :  { %2909 = vmatprep.subr.bf16.mxu0 %v6220_v23  ;;  %3032 = vmatprep.subr.bf16.mxu1 %v6222_v24  ;;  %v492_v25 = vld [vmem:[#allocation2 + $0x6f0] sm:$0xff]  ;;  %v489_v23 = vld [vmem:[#allocation2 + $0x6d8] sm:$0xff] }
 0x20d   :  { %v493_v24 = vld [vmem:[#allocation2 + $0x6f8] sm:$0xff]  ;;  %v6284_v27 = vcombine.high %v488_v9, %v492_v25  ;;  %v6283_v33 = vcombine.low %v488_v9, %v492_v25 }
 0x20e   :  { %v6286_v28 = vcombine.high %v489_v23, %v493_v24  ;;  %v6285_v34 = vcombine.low %v489_v23, %v493_v24 }
 0x20f   :  { %2910 = vmatpush1.bf16.msra.mxu0 %v6219_v30  ;;  %3033 = vmatpush1.bf16.msra.mxu1 %v6221_v31  ;;  %v496_v30 = vld [vmem:[#allocation2 + $0x710] sm:$0xff] }
 0x210   :  { %2911 = vmatprep.subr.bf16.mxu0 %v6228_v32  ;;  %3034 = vmatprep.subr.bf16.mxu1 %v6230_v35  ;;  %v500_v31 = vld [vmem:[#allocation2 + $0x730] sm:$0xff]  ;;  %v497_v32 = vld [vmem:[#allocation2 + $0x718] sm:$0xff] }
 0x211   :  { %v501_v35 = vld [vmem:[#allocation2 + $0x738] sm:$0xff]  ;;  %v6292_v63 = vcombine.high %v496_v30, %v500_v31  ;;  %v6291_v42 = vcombine.low %v496_v30, %v500_v31 }
 0x212   :  { %v6294_v36 = vcombine.high %v497_v32, %v501_v35  ;;  %v6293_v43 = vcombine.low %v497_v32, %v501_v35  ;;  %v560_v35 = vld [vmem:[#allocation2 + $0x910] sm:$0xff] }
 0x213   :  { %2912 = vmatpush1.bf16.msra.mxu0 %v6227_v37  ;;  %3035 = vmatpush1.bf16.msra.mxu1 %v6229_v38  ;;  %v504_v37 = vld [vmem:[#allocation2 + $0x750] sm:$0xff] }
 0x214   :  { %2913 = vmatprep.subr.bf16.mxu0 %v6236_v40  ;;  %3036 = vmatprep.subr.bf16.mxu1 %v6238_v41  ;;  %v508_v38 = vld [vmem:[#allocation2 + $0x770] sm:$0xff]  ;;  %v505_v40 = vld [vmem:[#allocation2 + $0x758] sm:$0xff] }
 0x215   :  { %v509_v41 = vld [vmem:[#allocation2 + $0x778] sm:$0xff]  ;;  %v6300_v45 = vcombine.high %v504_v37, %v508_v38  ;;  %v6299_v51 = vcombine.low %v504_v37, %v508_v38 }
 0x216   :  { %v6302_v46 = vcombine.high %v505_v40, %v509_v41  ;;  %v6301_v52 = vcombine.low %v505_v40, %v509_v41  ;;  %v568_v40 = vld [vmem:[#allocation2 + $0x950] sm:$0xff] }
 0x217   :  { %2914 = vmatpush1.bf16.msra.mxu0 %v6235_v47  ;;  %3037 = vmatpush1.bf16.msra.mxu1 %v6237_v48  ;;  %v512_v47 = vld [vmem:[#allocation2 + $0x790] sm:$0xff] }
 0x218   :  { %2915 = vmatprep.subr.bf16.mxu0 %v6244_v16  ;;  %3038 = vmatprep.subr.bf16.mxu1 %v6246_v50  ;;  %v516_v48 = vld [vmem:[#allocation2 + $0x7b0] sm:$0xff]  ;;  %v513_v16 = vld [vmem:[#allocation2 + $0x798] sm:$0xff] }
 0x219   :  { %v517_v50 = vld [vmem:[#allocation2 + $0x7b8] sm:$0xff]  ;;  %v6308_v54 = vcombine.high %v512_v47, %v516_v48  ;;  %v6307_v62 = vcombine.low %v512_v47, %v516_v48  ;;  %v572_v41 = vld [vmem:[#allocation2 + $0x970] sm:$0xff] }
 0x21a   :  { %v6310_v55 = vcombine.high %v513_v16, %v517_v50  ;;  %v6309_v0 = vcombine.low %v513_v16, %v517_v50  ;;  %v6364_v47 = vcombine.high %v568_v40, %v572_v41  ;;  %v576_v16 = vld [vmem:[#allocation2 + $0x990] sm:$0xff] }
 0x21b   :  { %2916 = vmatpush1.bf16.msra.mxu0 %v6243_v57  ;;  %3039 = vmatpush1.bf16.msra.mxu1 %v6245_v58  ;;  %v520_v57 = vld [vmem:[#allocation2 + $0x7d0] sm:$0xff] }
 0x21c   :  { %2917 = vmatprep.subr.bf16.mxu0 %v6252_v60  ;;  %3040 = vmatprep.subr.bf16.mxu1 %v6254_v61  ;;  %v524_v58 = vld [vmem:[#allocation2 + $0x7f0] sm:$0xff]  ;;  %v521_v60 = vld [vmem:[#allocation2 + $0x7d8] sm:$0xff] }
 0x21d   :  { %v525_v61 = vld [vmem:[#allocation2 + $0x7f8] sm:$0xff]  ;;  %v6316_v1 = vcombine.high %v520_v57, %v524_v58  ;;  %v6315_v6 = vcombine.low %v520_v57, %v524_v58  ;;  %v580_v50 = vld [vmem:[#allocation2 + $0x9b0] sm:$0xff] }
 0x21e   :  { %v6318_v2 = vcombine.high %v521_v60, %v525_v61  ;;  %v6317_v7 = vcombine.low %v521_v60, %v525_v61  ;;  %v6372_v57 = vcombine.high %v576_v16, %v580_v50  ;;  %v584_v60 = vld [vmem:[#allocation2 + $0x9d0] sm:$0xff] }
 0x21f   :  { %2918 = vmatpush1.bf16.msra.mxu0 %v6251_v3  ;;  %3041 = vmatpush1.bf16.msra.mxu1 %v6253_v29  ;;  %v528_v3 = vld [vmem:[#allocation2 + $0x810] sm:$0xff] }
 0x220   :  { %2919 = vmatprep.subr.bf16.mxu0 %v6260_v4  ;;  %3042 = vmatprep.subr.bf16.mxu1 %v6262_v5  ;;  %v532_v29 = vld [vmem:[#allocation2 + $0x830] sm:$0xff]  ;;  %v529_v4 = vld [vmem:[#allocation2 + $0x818] sm:$0xff] }
 0x221   :  { %v533_v5 = vld [vmem:[#allocation2 + $0x838] sm:$0xff]  ;;  %v6324_v8 = vcombine.high %v528_v3, %v532_v29  ;;  %v6323_v15 = vcombine.low %v528_v3, %v532_v29  ;;  %v588_v61 = vld [vmem:[#allocation2 + $0x9f0] sm:$0xff] }
 0x222   :  { %v6326_v10 = vcombine.high %v529_v4, %v533_v5  ;;  %v6325_v17 = vcombine.low %v529_v4, %v533_v5  ;;  %v6380_v3 = vcombine.high %v584_v60, %v588_v61  ;;  %v592_v4 = vld [vmem:[#allocation2 + $0xa10] sm:$0xff] }
 0x223   :  { %2920 = vmatpush1.bf16.msra.mxu0 %v6259_v11  ;;  %3043 = vmatpush1.bf16.msra.mxu1 %v6261_v12  ;;  %v536_v11 = vld [vmem:[#allocation2 + $0x850] sm:$0xff] }
 0x224   :  { %2921 = vmatprep.subr.bf16.mxu0 %v6268_v13  ;;  %3044 = vmatprep.subr.bf16.mxu1 %v6270_v14  ;;  %v540_v12 = vld [vmem:[#allocation2 + $0x870] sm:$0xff]  ;;  %v537_v13 = vld [vmem:[#allocation2 + $0x858] sm:$0xff] }
 0x225   :  { %v541_v14 = vld [vmem:[#allocation2 + $0x878] sm:$0xff]  ;;  %v6332_v18 = vcombine.high %v536_v11, %v540_v12  ;;  %v6331_v9 = vcombine.low %v536_v11, %v540_v12  ;;  %v596_v5 = vld [vmem:[#allocation2 + $0xa30] sm:$0xff] }
 0x226   :  { %v6334_v19 = vcombine.high %v537_v13, %v541_v14  ;;  %v6333_v25 = vcombine.low %v537_v13, %v541_v14  ;;  %v6388_v11 = vcombine.high %v592_v4, %v596_v5  ;;  %v600_v13 = vld [vmem:[#allocation2 + $0xa50] sm:$0xff] }
 0x227   :  { %2922 = vmatpush1.bf16.msra.mxu0 %v6267_v59  ;;  %3045 = vmatpush1.bf16.msra.mxu1 %v6269_v20  ;;  %v544_v59 = vld [vmem:[#allocation2 + $0x890] sm:$0xff] }
 0x228   :  { %2923 = vmatprep.subr.bf16.mxu0 %v6276_v21  ;;  %3046 = vmatprep.subr.bf16.mxu1 %v6278_v22  ;;  %v548_v20 = vld [vmem:[#allocation2 + $0x8b0] sm:$0xff]  ;;  %v545_v21 = vld [vmem:[#allocation2 + $0x898] sm:$0xff] }
 0x229   :  { %v549_v22 = vld [vmem:[#allocation2 + $0x8b8] sm:$0xff]  ;;  %v6340_v23 = vcombine.high %v544_v59, %v548_v20  ;;  %v6339_v30 = vcombine.low %v544_v59, %v548_v20  ;;  %v604_v14 = vld [vmem:[#allocation2 + $0xa70] sm:$0xff] }
 0x22a   :  { %v6342_v24 = vcombine.high %v545_v21, %v549_v22  ;;  %v6396_v59 = vcombine.high %v600_v13, %v604_v14 }
 0x22b   :  { %2924 = vmatpush1.bf16.msra.mxu0 %v6275_v53  ;;  %3047 = vmatpush1.bf16.msra.mxu1 %v6277_v26  ;;  %v552_v53 = vld [vmem:[#allocation2 + $0x8d0] sm:$0xff] }
 0x22c   :  { %2925 = vmatprep.subr.bf16.mxu0 %v6284_v27  ;;  %3048 = vmatprep.subr.bf16.mxu1 %v6286_v28  ;;  %v556_v26 = vld [vmem:[#allocation2 + $0x8f0] sm:$0xff]  ;;  %v553_v27 = vld [vmem:[#allocation2 + $0x8d8] sm:$0xff] }
 0x22d   :  { %v557_v28 = vld [vmem:[#allocation2 + $0x8f8] sm:$0xff]  ;;  %v6348_v31 = vcombine.high %v552_v53, %v556_v26 }
 0x22e   :  { %v6350_v32 = vcombine.high %v553_v27, %v557_v28  ;;  %v6349_v37 = vcombine.low %v553_v27, %v557_v28  ;;  %v616_v27 = vld [vmem:[#allocation2 + $0xad0] sm:$0xff] }
 0x22f   :  { %2926 = vmatpush1.bf16.msra.mxu0 %v6283_v33  ;;  %3049 = vmatpush1.bf16.msra.mxu1 %v6285_v34  ;;  %v564_v33 = vld [vmem:[#allocation2 + $0x930] sm:$0xff]  ;;  %v561_v34 = vld [vmem:[#allocation2 + $0x918] sm:$0xff] }
 0x230   :  { %2927 = vmatprep.subr.bf16.mxu0 %v6292_v63  ;;  %3050 = vmatprep.subr.bf16.mxu1 %v6294_v36  ;;  %v565_v63 = vld [vmem:[#allocation2 + $0x938] sm:$0xff]  ;;  %v6347_v36 = vcombine.low %v552_v53, %v556_v26  ;;  %v6356_v38 = vcombine.high %v560_v35, %v564_v33  ;;  %v620_v28 = vld [vmem:[#allocation2 + $0xaf0] sm:$0xff] }
 0x233   :  { %2928 = vmatpush1.bf16.msra.mxu0 %v6291_v42  ;;  %3051 = vmatpush1.bf16.msra.mxu1 %v6293_v43  ;;  %v569_v42 = vld [vmem:[#allocation2 + $0x958] sm:$0xff] }
 0x234   :  { %2929 = vmatprep.subr.bf16.mxu0 %v6300_v45  ;;  %3052 = vmatprep.subr.bf16.mxu1 %v6302_v46  ;;  %v573_v43 = vld [vmem:[#allocation2 + $0x978] sm:$0xff]  ;;  %v6355_v45 = vcombine.low %v560_v35, %v564_v33  ;;  %v6357_v46 = vcombine.low %v561_v34, %v565_v63  ;;  %v6412_v35 = vcombine.high %v616_v27, %v620_v28 }
 0x235   :  { %v6366_v48 = vcombine.high %v569_v42, %v573_v43 }
 0x237   :  { %2930 = vmatpush1.bf16.msra.mxu0 %v6299_v51  ;;  %3053 = vmatpush1.bf16.msra.mxu1 %v6301_v52  ;;  %v577_v51 = vld [vmem:[#allocation2 + $0x998] sm:$0xff] }
 0x238   :  { %2931 = vmatprep.subr.bf16.mxu0 %v6308_v54  ;;  %3054 = vmatprep.subr.bf16.mxu1 %v6310_v55  ;;  %v581_v52 = vld [vmem:[#allocation2 + $0x9b8] sm:$0xff]  ;;  %v6363_v54 = vcombine.low %v568_v40, %v572_v41  ;;  %v6365_v55 = vcombine.low %v569_v42, %v573_v43  ;;  %v632_v42 = vld [vmem:[#allocation2 + $0xb50] sm:$0xff] }
 0x239   :  { %v6374_v58 = vcombine.high %v577_v51, %v581_v52  ;;  %v636_v43 = vld [vmem:[#allocation2 + $0xb70] sm:$0xff] }
 0x23b   :  { %2932 = vmatpush1.bf16.msra.mxu0 %v6307_v62  ;;  %3055 = vmatpush1.bf16.msra.mxu1 %v6309_v0  ;;  %v585_v62 = vld [vmem:[#allocation2 + $0x9d8] sm:$0xff] }
 0x23c   :  { %2933 = vmatprep.subr.bf16.mxu0 %v6316_v1  ;;  %3056 = vmatprep.subr.bf16.mxu1 %v6318_v2  ;;  %v589_v0 = vld [vmem:[#allocation2 + $0x9f8] sm:$0xff]  ;;  %v6371_v1 = vcombine.low %v576_v16, %v580_v50  ;;  %v6373_v2 = vcombine.low %v577_v51, %v581_v52  ;;  %v6428_v16 = vcombine.high %v632_v42, %v636_v43  ;;  %v640_v51 = vld [vmem:[#allocation2 + $0xb90] sm:$0xff] }
 0x23d   :  { %v6382_v29 = vcombine.high %v585_v62, %v589_v0  ;;  %v644_v52 = vld [vmem:[#allocation2 + $0xbb0] sm:$0xff] }
 0x23f   :  { %2934 = vmatpush1.bf16.msra.mxu0 %v6315_v6  ;;  %3057 = vmatpush1.bf16.msra.mxu1 %v6317_v7  ;;  %v593_v6 = vld [vmem:[#allocation2 + $0xa18] sm:$0xff] }
 0x240   :  { %2944 = vmatprep.subr.bf16.mxu0 %v6324_v8  ;;  %3067 = vmatprep.subr.bf16.mxu1 %v6326_v10  ;;  %v597_v7 = vld [vmem:[#allocation2 + $0xa38] sm:$0xff]  ;;  %v6379_v8 = vcombine.low %v584_v60, %v588_v61  ;;  %v6381_v10 = vcombine.low %v585_v62, %v589_v0  ;;  %v6436_v60 = vcombine.high %v640_v51, %v644_v52  ;;  %v648_v62 = vld [vmem:[#allocation2 + $0xbd0] sm:$0xff] }
 0x241   :  { %v6390_v12 = vcombine.high %v593_v6, %v597_v7  ;;  %v652_v0 = vld [vmem:[#allocation2 + $0xbf0] sm:$0xff] }
 0x242   :  { %2936 = vmatmul.mubr.bf16.vlgmr.msra.gmra.mrb[4].mxu0 %v8124_v39  ;;  %3059 = vmatmul.mubr.bf16.vlgmr.msra.gmra.mrb[4].mxu1 %v8124_v39  ;;  %v6341_v39 = vcombine.low %v545_v21, %v549_v22  ;;  %v608_v21 = vld [vmem:[#allocation2 + $0xa90] sm:$0xff] }
 0x243   :  { %2945 = vmatpush1.bf16.msra.mxu0 %v6323_v15  ;;  %3068 = vmatpush1.bf16.msra.mxu1 %v6325_v17  ;;  %v601_v15 = vld [vmem:[#allocation2 + $0xa58] sm:$0xff]  ;;  %v612_v22 = vld [vmem:[#allocation2 + $0xab0] sm:$0xff] }
 0x244   :  { %2946 = vmatprep.subr.bf16.mxu0 %v6332_v18  ;;  %3069 = vmatprep.subr.bf16.mxu1 %v6334_v19  ;;  %v605_v17 = vld [vmem:[#allocation2 + $0xa78] sm:$0xff]  ;;  %v6387_v18 = vcombine.low %v592_v4, %v596_v5  ;;  %v6389_v19 = vcombine.low %v593_v6, %v597_v7  ;;  %v6404_v53 = vcombine.high %v608_v21, %v612_v22 }
 0x245   :  { %2976 = vmatprep.mubr.bf16.mxu0 %v8126_v49  ;;  %3099 = vmatprep.mubr.bf16.mxu1 %v8126_v49  ;;  %v6358_v49 = vcombine.high %v561_v34, %v565_v63  ;;  %v6398_v20 = vcombine.high %v601_v15, %v605_v17  ;;  %v624_v34 = vld [vmem:[#allocation2 + $0xb10] sm:$0xff]  ;;  %v6444_v4 = vcombine.high %v648_v62, %v652_v0 }
 0x246   :  { %v628_v63 = vld [vmem:[#allocation2 + $0xb30] sm:$0xff]  ;;  %v6443_v6 = vcombine.low %v648_v62, %v652_v0  ;;  %v7089_v0 = vld [vmem:[#allocation6 + $0x144] ss:$16 sps:$4 sm:$0xff]  }
 0x247   :  { %2947 = vmatpush1.bf16.msra.mxu0 %v6331_v9  ;;  %3070 = vmatpush1.bf16.msra.mxu1 %v6333_v25  ;;  %v609_v9 = vld [vmem:[#allocation2 + $0xa98] sm:$0xff]  ;;  %v6420_v40 = vcombine.high %v624_v34, %v628_v63  ;;  %v7084_v62 = vld [vmem:[#allocation6 + $0x128] ss:$16 sps:$4 sm:$0xff]  }
 0x248   :  { %2948 = vmatprep.subr.bf16.mxu0 %v6340_v23  ;;  %3071 = vmatprep.subr.bf16.mxu1 %v6342_v24  ;;  %v613_v25 = vld [vmem:[#allocation2 + $0xab8] sm:$0xff]  ;;  %v6395_v23 = vcombine.low %v600_v13, %v604_v14  ;;  %v6397_v24 = vcombine.low %v601_v15, %v605_v17  ;;  %v7038_v14 = vld [vmem:[#allocation6 + $0x2c] ss:$16 sps:$4 sm:$0xff]   ;;  %v7036_v17 = vld [vmem:[#allocation6 + $0x28] ss:$16 sps:$4 sm:$0xff]  }
 0x249   :  { %v6406_v26 = vcombine.high %v609_v9, %v613_v25  ;;  %v7035_v13 = vld [vmem:[#allocation6 + $0x24] ss:$16 sps:$4 sm:$0xff]   ;;  %v7033_v15 = vld [vmem:[#allocation6 + $0x20] ss:$16 sps:$4 sm:$0xff]  }
 0x24b   :  { %2949 = vmatpush1.bf16.msra.mxu0 %v6339_v30  ;;  %3072 = vmatpush1.bf16.msra.mxu1 %v6341_v39  ;;  %v617_v30 = vld [vmem:[#allocation2 + $0xad8] sm:$0xff] }
 0x24c   :  { %2950 = vmatprep.subr.bf16.mxu0 %v6348_v31  ;;  %3073 = vmatprep.subr.bf16.mxu1 %v6350_v32  ;;  %v621_v39 = vld [vmem:[#allocation2 + $0xaf8] sm:$0xff]  ;;  %v6403_v31 = vcombine.low %v608_v21, %v612_v22  ;;  %v6405_v32 = vcombine.low %v609_v9, %v613_v25  ;;  %v7050_v22 = vld [vmem:[#allocation6 + $0x6c] ss:$16 sps:$4 sm:$0xff]  }
 0x24d   :  { %v6414_v33 = vcombine.high %v617_v30, %v621_v39  ;;  %v7047_v21 = vld [vmem:[#allocation6 + $0x64] ss:$16 sps:$4 sm:$0xff]   ;;  %v7045_v9 = vld [vmem:[#allocation6 + $0x60] ss:$16 sps:$4 sm:$0xff]  }
 0x24e   :  { %v7053_v25 = vld [vmem:[#allocation6 + $0x84] ss:$16 sps:$4 sm:$0xff]  }
 0x24f   :  { %2951 = vmatpush1.bf16.msra.mxu0 %v6347_v36  ;;  %3074 = vmatpush1.bf16.msra.mxu1 %v6349_v37  ;;  %v625_v36 = vld [vmem:[#allocation2 + $0xb18] sm:$0xff] }
 0x250   :  { %2952 = vmatprep.subr.bf16.mxu0 %v6356_v38  ;;  %3075 = vmatprep.subr.bf16.mxu1 %v6358_v49  ;;  %v629_v37 = vld [vmem:[#allocation2 + $0xb38] sm:$0xff]  ;;  %v6411_v38 = vcombine.low %v616_v27, %v620_v28  ;;  %v6413_v49 = vcombine.low %v617_v30, %v621_v39  ;;  %v8151_v27 = vld [vmem:[#allocation4] sm:$0xff] }
 0x251   :  { %v6422_v41 = vcombine.high %v625_v36, %v629_v37  ;;  %v7059_v28 = vld [vmem:[#allocation6 + $0xa4] ss:$16 sps:$4 sm:$0xff]   ;;  %v7062_v30 = vld [vmem:[#allocation6 + $0xac] ss:$16 sps:$4 sm:$0xff]  }
 0x253   :  { %2953 = vmatpush1.bf16.msra.mxu0 %v6355_v45  ;;  %3076 = vmatpush1.bf16.msra.mxu1 %v6357_v46  ;;  %v633_v45 = vld [vmem:[#allocation2 + $0xb58] sm:$0xff] }
 0x254   :  { %2954 = vmatprep.subr.bf16.mxu0 %v6364_v47  ;;  %3077 = vmatprep.subr.bf16.mxu1 %v6366_v48  ;;  %v637_v46 = vld [vmem:[#allocation2 + $0xb78] sm:$0xff]  ;;  %v6419_v47 = vcombine.low %v624_v34, %v628_v63  ;;  %v6421_v48 = vcombine.low %v625_v36, %v629_v37  ;;  %v7068_v34 = vld [vmem:[#allocation6 + $0xcc] ss:$16 sps:$4 sm:$0xff]  }
 0x255   :  { %v6430_v50 = vcombine.high %v633_v45, %v637_v46 }
 0x257   :  { %2955 = vmatpush1.bf16.msra.mxu0 %v6363_v54  ;;  %3078 = vmatpush1.bf16.msra.mxu1 %v6365_v55  ;;  %v641_v54 = vld [vmem:[#allocation2 + $0xb98] sm:$0xff] }
 0x258   :  { %2956 = vmatprep.subr.bf16.mxu0 %v6372_v57  ;;  %3079 = vmatprep.subr.bf16.mxu1 %v6374_v58  ;;  %v645_v55 = vld [vmem:[#allocation2 + $0xbb8] sm:$0xff]  ;;  %v6427_v57 = vcombine.low %v632_v42, %v636_v43  ;;  %v6429_v58 = vcombine.low %v633_v45, %v637_v46  ;;  %v7066_v43 = vld [vmem:[#allocation6 + $0xc8] ss:$16 sps:$4 sm:$0xff]  }
 0x259   :  { %v6438_v61 = vcombine.high %v641_v54, %v645_v55  ;;  %v7071_v45 = vld [vmem:[#allocation6 + $0xe4] ss:$16 sps:$4 sm:$0xff]  }
 0x25b   :  { %2957 = vmatpush1.bf16.msra.mxu0 %v6371_v1  ;;  %3080 = vmatpush1.bf16.msra.mxu1 %v6373_v2  ;;  %v649_v1 = vld [vmem:[#allocation2 + $0xbd8] sm:$0xff] }
 0x25c   :  { %2958 = vmatprep.subr.bf16.mxu0 %v6380_v3  ;;  %3081 = vmatprep.subr.bf16.mxu1 %v6382_v29  ;;  %v653_v2 = vld [vmem:[#allocation2 + $0xbf8] sm:$0xff]  ;;  %v6435_v3 = vcombine.low %v640_v51, %v644_v52  ;;  %v6437_v29 = vcombine.low %v641_v54, %v645_v55  ;;  %v7072_v51 = vld [vmem:[#allocation6 + $0xe8] ss:$16 sps:$4 sm:$0xff]   ;;  %v7080_v54 = vld [vmem:[#allocation6 + $0x10c] ss:$16 sps:$4 sm:$0xff]  }
 0x25d   :  { %v6446_v5 = vcombine.high %v649_v1, %v653_v2  ;;  %v6445_v7 = vcombine.low %v649_v1, %v653_v2  ;;  %v7077_v52 = vld [vmem:[#allocation6 + $0x104] ss:$16 sps:$4 sm:$0xff]   ;;  %v7075_v55 = vld [vmem:[#allocation6 + $0x100] ss:$16 sps:$4 sm:$0xff]   ;;  %v7092_v1 = vld [vmem:[#allocation6 + $0x14c] ss:$16 sps:$4 sm:$0xff]  }
 0x25e   :  { %v7087_v2 = vld [vmem:[#allocation6 + $0x140] ss:$16 sps:$4 sm:$0xff]  }
 0x25f   :  { %2959 = vmatpush1.bf16.msra.mxu0 %v6379_v8  ;;  %3082 = vmatpush1.bf16.msra.mxu1 %v6381_v10  ;;  %v7029_v8 = vld [vmem:[#allocation6 + $0x4] ss:$16 sps:$4 sm:$0xff]   ;;  %v7032_v10 = vld [vmem:[#allocation6 + $0xc] ss:$16 sps:$4 sm:$0xff]  }
 0x260   :  { %2960 = vmatprep.subr.bf16.mxu0 %v6388_v11  ;;  %3083 = vmatprep.subr.bf16.mxu1 %v6390_v12  ;;  %v7027_v11 = vld [vmem:[#allocation6] ss:$16 sps:$4 sm:$0xff]   ;;  %v7030_v12 = vld [vmem:[#allocation6 + $0x8] ss:$16 sps:$4 sm:$0xff]  }
 0x263   :  { %2961 = vmatpush1.bf16.msra.mxu0 %v6387_v18  ;;  %3084 = vmatpush1.bf16.msra.mxu1 %v6389_v19  ;;  %v7041_v18 = vld [vmem:[#allocation6 + $0x44] ss:$16 sps:$4 sm:$0xff]   ;;  %v7044_v19 = vld [vmem:[#allocation6 + $0x4c] ss:$16 sps:$4 sm:$0xff]  }
 0x264   :  { %2962 = vmatprep.subr.bf16.mxu0 %v6396_v59  ;;  %3085 = vmatprep.subr.bf16.mxu1 %v6398_v20  ;;  %v7039_v59 = vld [vmem:[#allocation6 + $0x40] ss:$16 sps:$4 sm:$0xff]   ;;  %v7042_v20 = vld [vmem:[#allocation6 + $0x48] ss:$16 sps:$4 sm:$0xff]  }
 0x267   :  { %2963 = vmatpush1.bf16.msra.mxu0 %v6395_v23  ;;  %3086 = vmatpush1.bf16.msra.mxu1 %v6397_v24  ;;  %v7056_v23 = vld [vmem:[#allocation6 + $0x8c] ss:$16 sps:$4 sm:$0xff]   ;;  %v7051_v24 = vld [vmem:[#allocation6 + $0x80] ss:$16 sps:$4 sm:$0xff]  }
 0x268   :  { %2964 = vmatprep.subr.bf16.mxu0 %v6404_v53  ;;  %3087 = vmatprep.subr.bf16.mxu1 %v6406_v26  ;;  %v662_v53 = vsub.s32 1, %v8078_v44  ;;  %v7054_v26 = vld [vmem:[#allocation6 + $0x88] ss:$16 sps:$4 sm:$0xff]  }
 0x26a   :  { %v663_v39 = vrot.slane %v8151_v27, %v662_v53 }
 0x26b   :  { %2965 = vmatpush1.bf16.msra.mxu0 %v6403_v31  ;;  %3088 = vmatpush1.bf16.msra.mxu1 %v6405_v32  ;;  %v7057_v31 = vld [vmem:[#allocation6 + $0xa0] ss:$16 sps:$4 sm:$0xff]   ;;  %v7060_v32 = vld [vmem:[#allocation6 + $0xa8] ss:$16 sps:$4 sm:$0xff]  }
 0x26c   :  { %2966 = vmatprep.subr.bf16.mxu0 %v6412_v35  ;;  %3089 = vmatprep.subr.bf16.mxu1 %v6414_v33  ;;  %v7065_v35 = vld [vmem:[#allocation6 + $0xc4] ss:$16 sps:$4 sm:$0xff]  }
 0x26f   :  { %2967 = vmatpush1.bf16.msra.mxu0 %v6411_v38  ;;  %3090 = vmatpush1.bf16.msra.mxu1 %v6413_v49 }
 0x270   :  { %2968 = vmatprep.subr.bf16.mxu0 %v6420_v40  ;;  %3091 = vmatprep.subr.bf16.mxu1 %v6422_v41  ;;  %v7063_v40 = vld [vmem:[#allocation6 + $0xc0] ss:$16 sps:$4 sm:$0xff]  }
 0x273   :  { %2969 = vmatpush1.bf16.msra.mxu0 %v6419_v47  ;;  %3092 = vmatpush1.bf16.msra.mxu1 %v6421_v48  ;;  %v7074_v48 = vld [vmem:[#allocation6 + $0xec] ss:$16 sps:$4 sm:$0xff]  }
 0x274   :  { %2970 = vmatprep.subr.bf16.mxu0 %v6428_v16  ;;  %3093 = vmatprep.subr.bf16.mxu1 %v6430_v50  ;;  %v7069_v50 = vld [vmem:[#allocation6 + $0xe0] ss:$16 sps:$4 sm:$0xff]  }
 0x277   :  { %2971 = vmatpush1.bf16.msra.mxu0 %v6427_v57  ;;  %3094 = vmatpush1.bf16.msra.mxu1 %v6429_v58  ;;  %v7078_v57 = vld [vmem:[#allocation6 + $0x108] ss:$16 sps:$4 sm:$0xff]   ;;  %v7083_v58 = vld [vmem:[#allocation6 + $0x124] ss:$16 sps:$4 sm:$0xff]  }
 0x278   :  { %2972 = vmatprep.subr.bf16.mxu0 %v6436_v60  ;;  %3095 = vmatprep.subr.bf16.mxu1 %v6438_v61  ;;  %v7086_v60 = vld [vmem:[#allocation6 + $0x12c] ss:$16 sps:$4 sm:$0xff]   ;;  %v7081_v61 = vld [vmem:[#allocation6 + $0x120] ss:$16 sps:$4 sm:$0xff]  }
 0x27b   :  { %2973 = vmatpush1.bf16.msra.mxu0 %v6435_v3  ;;  %3096 = vmatpush1.bf16.msra.mxu1 %v6437_v29  ;;  %v7090_v3 = vld [vmem:[#allocation6 + $0x148] ss:$16 sps:$4 sm:$0xff]   ;;  %v7095_v29 = vld [vmem:[#allocation6 + $0x164] ss:$16 sps:$4 sm:$0xff]  }
 0x27c   :  { %2974 = vmatprep.subr.bf16.mxu0 %v6444_v4  ;;  %3097 = vmatprep.subr.bf16.mxu1 %v6446_v5  ;;  %v7098_v4 = vld [vmem:[#allocation6 + $0x16c] ss:$16 sps:$4 sm:$0xff]   ;;  %v7093_v5 = vld [vmem:[#allocation6 + $0x160] ss:$16 sps:$4 sm:$0xff]  }
 0x27f   :  { %2975 = vmatpush1.bf16.msra.mxu0 %v6443_v6  ;;  %3098 = vmatpush1.bf16.msra.mxu1 %v6445_v7  ;;  %v7096_v6 = vld [vmem:[#allocation6 + $0x168] ss:$16 sps:$4 sm:$0xff]   ;;  %v7101_v7 = vld [vmem:[#allocation6 + $0x184] ss:$16 sps:$4 sm:$0xff]  }
 0x280   :  { %4682 = vmatprep.subr.bf16.mxu0 %v7029_v8  ;;  %4846 = vmatprep.subr.bf16.mxu1 %v7032_v10  ;;  %v7104_v8 = vld [vmem:[#allocation6 + $0x18c] ss:$16 sps:$4 sm:$0xff]   ;;  %v7099_v10 = vld [vmem:[#allocation6 + $0x180] ss:$16 sps:$4 sm:$0xff]  }
 0x282   :  { %2977 = vmatmul.mubr.bf16.vlgmr.msra.gmra.mrb[4].mxu0 %v8134_v56  ;;  %3100 = vmatmul.mubr.bf16.vlgmr.msra.gmra.mrb[4].mxu1 %v8134_v56  ;;  %v7048_v56 = vld [vmem:[#allocation6 + $0x68] ss:$16 sps:$4 sm:$0xff]  }
 0x283   :  { %4683 = vmatpush1.bf16.msra.mxu0 %v7027_v11  ;;  %4847 = vmatpush1.bf16.msra.mxu1 %v7030_v12  ;;  %v658_v11 = vsub.s32 0, %v8078_v44  ;;  %v7102_v12 = vld [vmem:[#allocation6 + $0x188] ss:$16 sps:$4 sm:$0xff]  }
 0x284   :  { %4684 = vmatprep.subr.bf16.mxu0 %v7035_v13  ;;  %4848 = vmatprep.subr.bf16.mxu1 %v7038_v14  ;;  %v7107_v13 = vld [vmem:[#allocation6 + $0x1a4] ss:$16 sps:$4 sm:$0xff]   ;;  %v7110_v14 = vld [vmem:[#allocation6 + $0x1ac] ss:$16 sps:$4 sm:$0xff]  }
 0x287   :  { %4685 = vmatpush1.bf16.msra.mxu0 %v7033_v15  ;;  %4849 = vmatpush1.bf16.msra.mxu1 %v7036_v17  ;;  %v670_v15 = vsub.s32 3, %v8078_v44  ;;  %v7105_v17 = vld [vmem:[#allocation6 + $0x1a0] ss:$16 sps:$4 sm:$0xff]  }
 0x288   :  { %4686 = vmatprep.subr.bf16.mxu0 %v7041_v18  ;;  %4850 = vmatprep.subr.bf16.mxu1 %v7044_v19  ;;  %v659_v18 = vrot.slane %v8151_v27, %v658_v11  ;;  %v7108_v19 = vld [vmem:[#allocation6 + $0x1a8] ss:$16 sps:$4 sm:$0xff]  }
 0x28b   :  { %4687 = vmatpush1.bf16.msra.mxu0 %v7039_v59  ;;  %4851 = vmatpush1.bf16.msra.mxu1 %v7042_v20  ;;  %v7113_v59 = vld [vmem:[#allocation6 + $0x1c4] ss:$16 sps:$4 sm:$0xff]   ;;  %v7116_v20 = vld [vmem:[#allocation6 + $0x1cc] ss:$16 sps:$4 sm:$0xff]  }
 0x28c   :  { %4688 = vmatprep.subr.bf16.mxu0 %v7047_v21  ;;  %4852 = vmatprep.subr.bf16.mxu1 %v7050_v22  ;;  %v671_v21 = vrot.slane %v8151_v27, %v670_v15  ;;  %v7111_v22 = vld [vmem:[#allocation6 + $0x1c0] ss:$16 sps:$4 sm:$0xff]  }
 0x28f   :  { %4689 = vmatpush1.bf16.msra.mxu0 %v7045_v9  ;;  %4853 = vmatpush1.bf16.msra.mxu1 %v7048_v56  ;;  %v7114_v56 = vld [vmem:[#allocation6 + $0x1c8] ss:$16 sps:$4 sm:$0xff]  }
 0x290   :  { %4690 = vmatprep.subr.bf16.mxu0 %v7053_v25  ;;  %4854 = vmatprep.subr.bf16.mxu1 %v7056_v23  ;;  %v7119_v25 = vld [vmem:[#allocation6 + $0x1e4] ss:$16 sps:$4 sm:$0xff]   ;;  %v7122_v23 = vld [vmem:[#allocation6 + $0x1ec] ss:$16 sps:$4 sm:$0xff]  }
 0x293   :  { %4691 = vmatpush1.bf16.msra.mxu0 %v7051_v24  ;;  %4855 = vmatpush1.bf16.msra.mxu1 %v7054_v26  ;;  %v7117_v26 = vld [vmem:[#allocation6 + $0x1e0] ss:$16 sps:$4 sm:$0xff]  }
 0x294   :  { %4692 = vmatprep.subr.bf16.mxu0 %v7059_v28  ;;  %4856 = vmatprep.subr.bf16.mxu1 %v7062_v30  ;;  %v7120_v30 = vld [vmem:[#allocation6 + $0x1e8] ss:$16 sps:$4 sm:$0xff]  }
 0x295   :  { %v8156_v33 = vpop.f32.mrb[0].mxu0  ;;  %v8158_v63 = vpop.f32.mrb[0].mxu1 }
 0x296   :  { %v2734_v36 = vpop.f32.mrb[1].mxu0  ;;  %v8160_v38 = vpop.f32.mrb[1].mxu1  ;;  %v6919_v9 = vadd.f32 %v8156_v33, %v659_v18  ;;  %v7188_v18 = vld [vmem:[#allocation6 + $0x34c] ss:$16 sps:$4 sm:$0xff]  }
 0x297   :  { %v6920_v37 = vadd.f32 %v2734_v36, %v663_v39  ;;  %v2736_v49 = vpop.f32.mrb[2].mxu0  ;;  %4693 = vmatpush1.bf16.msra.mxu0 %v7057_v31  ;;  %v2859_v41 = vpop.f32.mrb[2].mxu1  ;;  %4857 = vmatpush1.bf16.msra.mxu1 %v7060_v32  ;;  %v6922_v24 = vadd.f32 %v8160_v38, %v671_v21  ;;  %v7125_v39 = vld [vmem:[#allocation6 + $0x204] ss:$16 sps:$4 sm:$0xff]   ;;  %v7128_v31 = vld [vmem:[#allocation6 + $0x20c] ss:$16 sps:$4 sm:$0xff]  }
 0x298   :  { %v2737_v42 = vpop.f32.mrb[3].mxu0  ;;  %4694 = vmatprep.subr.bf16.mxu0 %v7065_v35  ;;  %v2860_v47 = vpop.f32.mrb[3].mxu1  ;;  %4858 = vmatprep.subr.bf16.mxu1 %v7068_v34  ;;  %v3108_v28 = vmax.f32 %v6919_v9, 0.0  ;;  %v7123_v35 = vld [vmem:[#allocation6 + $0x200] ss:$16 sps:$4 sm:$0xff]  }
 0x299   :  { %v3109_v46 = vmax.f32 %v6920_v37, 0.0  ;;  %v3111_v32 = vmax.f32 %v6922_v24, 0.0  ;;  %v7126_v34 = vld [vmem:[#allocation6 + $0x208] ss:$16 sps:$4 sm:$0xff]   ;;  %v7131_v36 = vld [vmem:[#allocation6 + $0x224] ss:$16 sps:$4 sm:$0xff]  }
 0x29a   :  { %v3116_v33 = vpack.c.bf16 %v3108_v28, %v3108_v28  ;;  %v7134_v38 = vld [vmem:[#allocation6 + $0x22c] ss:$16 sps:$4 sm:$0xff]   ;;  %v7129_v49 = vld [vmem:[#allocation6 + $0x220] ss:$16 sps:$4 sm:$0xff]   ;;  %v7137_v41 = vld [vmem:[#allocation6 + $0x244] ss:$16 sps:$4 sm:$0xff]  }
 0x29b   :  { %v3117_v16 = vpack.c.bf16 %v3109_v46, %v3109_v46  ;;  %4695 = vmatpush1.bf16.msra.mxu0 %v7063_v40  ;;  %4859 = vmatpush1.bf16.msra.mxu1 %v7066_v43  ;;  %v3119_v37 = vpack.c.bf16 %v3111_v32, %v3111_v32  ;;  %v7132_v40 = vld [vmem:[#allocation6 + $0x228] ss:$16 sps:$4 sm:$0xff]   ;;  %v7140_v42 = vld [vmem:[#allocation6 + $0x24c] ss:$16 sps:$4 sm:$0xff]   ;;  %v7135_v43 = vld [vmem:[#allocation6 + $0x240] ss:$16 sps:$4 sm:$0xff]  }
 0x29c   :  { %4696 = vmatprep.subr.bf16.mxu0 %v7071_v45  ;;  %4860 = vmatprep.subr.bf16.mxu1 %v7074_v48  ;;  %v7138_v45 = vld [vmem:[#allocation6 + $0x248] ss:$16 sps:$4 sm:$0xff]   ;;  %v7143_v46 = vld [vmem:[#allocation6 + $0x264] ss:$16 sps:$4 sm:$0xff]   ;;  %v7146_v47 = vld [vmem:[#allocation6 + $0x26c] ss:$16 sps:$4 sm:$0xff]  }
 0x29d   :  { %4714 = vmatprep.mubr.bf16.mxu0 %v3117_v16  ;;  %4878 = vmatprep.mubr.bf16.mxu1 %v3117_v16  ;;  %v7141_v48 = vld [vmem:[#allocation6 + $0x260] ss:$16 sps:$4 sm:$0xff]   ;;  %v7144_v16 = vld [vmem:[#allocation6 + $0x268] ss:$16 sps:$4 sm:$0xff]   ;;  %v7194_v21 = vld [vmem:[#allocation6 + $0x36c] ss:$16 sps:$4 sm:$0xff]  }
 0x29e   :  { %v7192_v9 = vld [vmem:[#allocation6 + $0x368] ss:$16 sps:$4 sm:$0xff]   ;;  %v666_v24 = vsub.s32 2, %v8078_v44  ;;  %v7203_v28 = vld [vmem:[#allocation6 + $0x3a4] ss:$16 sps:$4 sm:$0xff]  }
 0x29f   :  { %4697 = vmatpush1.bf16.msra.mxu0 %v7069_v50  ;;  %4861 = vmatpush1.bf16.msra.mxu1 %v7072_v51  ;;  %v7149_v50 = vld [vmem:[#allocation6 + $0x284] ss:$16 sps:$4 sm:$0xff]   ;;  %v7152_v51 = vld [vmem:[#allocation6 + $0x28c] ss:$16 sps:$4 sm:$0xff]   ;;  %v7204_v32 = vld [vmem:[#allocation6 + $0x3a8] ss:$16 sps:$4 sm:$0xff]  }
 0x2a0   :  { %4698 = vmatprep.subr.bf16.mxu0 %v7077_v52  ;;  %4862 = vmatprep.subr.bf16.mxu1 %v7080_v54  ;;  %v7147_v52 = vld [vmem:[#allocation6 + $0x280] ss:$16 sps:$4 sm:$0xff]   ;;  %v7150_v54 = vld [vmem:[#allocation6 + $0x288] ss:$16 sps:$4 sm:$0xff]  }
 0x2a3   :  { %4699 = vmatpush1.bf16.msra.mxu0 %v7075_v55  ;;  %4863 = vmatpush1.bf16.msra.mxu1 %v7078_v57  ;;  %v7155_v55 = vld [vmem:[#allocation6 + $0x2a4] ss:$16 sps:$4 sm:$0xff]   ;;  %v7158_v57 = vld [vmem:[#allocation6 + $0x2ac] ss:$16 sps:$4 sm:$0xff]  }
 0x2a4   :  { %4700 = vmatprep.subr.bf16.mxu0 %v7083_v58  ;;  %4864 = vmatprep.subr.bf16.mxu1 %v7086_v60  ;;  %v7153_v58 = vld [vmem:[#allocation6 + $0x2a0] ss:$16 sps:$4 sm:$0xff]   ;;  %v7156_v60 = vld [vmem:[#allocation6 + $0x2a8] ss:$16 sps:$4 sm:$0xff]  }
 0x2a7   :  { %4701 = vmatpush1.bf16.msra.mxu0 %v7081_v61  ;;  %4865 = vmatpush1.bf16.msra.mxu1 %v7084_v62  ;;  %v7161_v61 = vld [vmem:[#allocation6 + $0x2c4] ss:$16 sps:$4 sm:$0xff]   ;;  %v7164_v62 = vld [vmem:[#allocation6 + $0x2cc] ss:$16 sps:$4 sm:$0xff]  }
 0x2a8   :  { %4702 = vmatprep.subr.bf16.mxu0 %v7089_v0  ;;  %4866 = vmatprep.subr.bf16.mxu1 %v7092_v1  ;;  %v7159_v0 = vld [vmem:[#allocation6 + $0x2c0] ss:$16 sps:$4 sm:$0xff]   ;;  %v7162_v1 = vld [vmem:[#allocation6 + $0x2c8] ss:$16 sps:$4 sm:$0xff]  }
 0x2ab   :  { %4703 = vmatpush1.bf16.msra.mxu0 %v7087_v2  ;;  %4867 = vmatpush1.bf16.msra.mxu1 %v7090_v3  ;;  %v7167_v2 = vld [vmem:[#allocation6 + $0x2e4] ss:$16 sps:$4 sm:$0xff]   ;;  %v7170_v3 = vld [vmem:[#allocation6 + $0x2ec] ss:$16 sps:$4 sm:$0xff]  }
 0x2ac   :  { %4704 = vmatprep.subr.bf16.mxu0 %v7095_v29  ;;  %4868 = vmatprep.subr.bf16.mxu1 %v7098_v4  ;;  %v7165_v29 = vld [vmem:[#allocation6 + $0x2e0] ss:$16 sps:$4 sm:$0xff]   ;;  %v7168_v4 = vld [vmem:[#allocation6 + $0x2e8] ss:$16 sps:$4 sm:$0xff]  }
 0x2af   :  { %4705 = vmatpush1.bf16.msra.mxu0 %v7093_v5  ;;  %4869 = vmatpush1.bf16.msra.mxu1 %v7096_v6  ;;  %v7173_v5 = vld [vmem:[#allocation6 + $0x304] ss:$16 sps:$4 sm:$0xff]   ;;  %v7176_v6 = vld [vmem:[#allocation6 + $0x30c] ss:$16 sps:$4 sm:$0xff]  }
 0x2b0   :  { %4706 = vmatprep.subr.bf16.mxu0 %v7101_v7  ;;  %4870 = vmatprep.subr.bf16.mxu1 %v7104_v8  ;;  %v7171_v7 = vld [vmem:[#allocation6 + $0x300] ss:$16 sps:$4 sm:$0xff]   ;;  %v7174_v8 = vld [vmem:[#allocation6 + $0x308] ss:$16 sps:$4 sm:$0xff]  }
 0x2b3   :  { %4707 = vmatpush1.bf16.msra.mxu0 %v7099_v10  ;;  %4871 = vmatpush1.bf16.msra.mxu1 %v7102_v12  ;;  %v7179_v10 = vld [vmem:[#allocation6 + $0x324] ss:$16 sps:$4 sm:$0xff]   ;;  %v7182_v12 = vld [vmem:[#allocation6 + $0x32c] ss:$16 sps:$4 sm:$0xff]  }
 0x2b4   :  { %4708 = vmatprep.subr.bf16.mxu0 %v7107_v13  ;;  %4872 = vmatprep.subr.bf16.mxu1 %v7110_v14  ;;  %v7177_v13 = vld [vmem:[#allocation6 + $0x320] ss:$16 sps:$4 sm:$0xff]   ;;  %v7180_v14 = vld [vmem:[#allocation6 + $0x328] ss:$16 sps:$4 sm:$0xff]  }
 0x2b7   :  { %4709 = vmatpush1.bf16.msra.mxu0 %v7105_v17  ;;  %4873 = vmatpush1.bf16.msra.mxu1 %v7108_v19  ;;  %v7185_v17 = vld [vmem:[#allocation6 + $0x344] ss:$16 sps:$4 sm:$0xff]   ;;  %v7183_v19 = vld [vmem:[#allocation6 + $0x340] ss:$16 sps:$4 sm:$0xff]  }
 0x2b8   :  { %4710 = vmatprep.subr.bf16.mxu0 %v7113_v59  ;;  %4874 = vmatprep.subr.bf16.mxu1 %v7116_v20  ;;  %v7186_v59 = vld [vmem:[#allocation6 + $0x348] ss:$16 sps:$4 sm:$0xff]   ;;  %v7191_v20 = vld [vmem:[#allocation6 + $0x364] ss:$16 sps:$4 sm:$0xff]  }
 0x2bb   :  { %4711 = vmatpush1.bf16.msra.mxu0 %v7111_v22  ;;  %4875 = vmatpush1.bf16.msra.mxu1 %v7114_v56  ;;  %v7189_v22 = vld [vmem:[#allocation6 + $0x360] ss:$16 sps:$4 sm:$0xff]   ;;  %v7197_v56 = vld [vmem:[#allocation6 + $0x384] ss:$16 sps:$4 sm:$0xff]  }
 0x2bc   :  { %4712 = vmatprep.subr.bf16.mxu0 %v7119_v25  ;;  %4876 = vmatprep.subr.bf16.mxu1 %v7122_v23  ;;  %v7200_v25 = vld [vmem:[#allocation6 + $0x38c] ss:$16 sps:$4 sm:$0xff]   ;;  %v7195_v23 = vld [vmem:[#allocation6 + $0x380] ss:$16 sps:$4 sm:$0xff]  }
 0x2bf   :  { %4713 = vmatpush1.bf16.msra.mxu0 %v7117_v26  ;;  %4877 = vmatpush1.bf16.msra.mxu1 %v7120_v30  ;;  %v7198_v26 = vld [vmem:[#allocation6 + $0x388] ss:$16 sps:$4 sm:$0xff]   ;;  %v7206_v30 = vld [vmem:[#allocation6 + $0x3ac] ss:$16 sps:$4 sm:$0xff]  }
 0x2c0   :  { %4723 = vmatprep.subr.bf16.mxu0 %v7125_v39  ;;  %4887 = vmatprep.subr.bf16.mxu1 %v7128_v31  ;;  %v7201_v39 = vld [vmem:[#allocation6 + $0x3a0] ss:$16 sps:$4 sm:$0xff]   ;;  %v667_v31 = vrot.slane %v8151_v27, %v666_v24 }
 0x2c2   :  { %4715 = vmatmul.mubr.bf16.vlgmr.msra.gmra.mrb[8].mxu0 %v3116_v33  ;;  %4879 = vmatmul.mubr.bf16.vlgmr.msra.gmra.mrb[8].mxu1 %v3116_v33  ;;  %v7212_v33 = vld [vmem:[#allocation6 + $0x3cc] ss:$16 sps:$4 sm:$0xff]  }
 0x2c3   :  { %4724 = vmatpush1.bf16.msra.mxu0 %v7123_v35  ;;  %4755 = vmatprep.mubr.bf16.mxu0 %v3119_v37  ;;  %v7209_v35 = vld [vmem:[#allocation6 + $0x3c4] ss:$16 sps:$4 sm:$0xff]  }
 0x2c4   :  { %4888 = vmatpush1.bf16.msra.mxu1 %v7126_v34  ;;  %4919 = vmatprep.mubr.bf16.mxu1 %v3119_v37  ;;  %v7207_v34 = vld [vmem:[#allocation6 + $0x3c0] ss:$16 sps:$4 sm:$0xff]   ;;  %v7210_v37 = vld [vmem:[#allocation6 + $0x3c8] ss:$16 sps:$4 sm:$0xff]  }
 0x2c5   :  { %4725 = vmatprep.subr.bf16.mxu0 %v7131_v36  ;;  %4889 = vmatprep.subr.bf16.mxu1 %v7134_v38  ;;  %v6921_v36 = vadd.f32 %v8158_v63, %v667_v31  ;;  %v7215_v38 = vld [vmem:[#allocation6 + $0x3e4] ss:$16 sps:$4 sm:$0xff]   ;;  %v7222_v63 = vld [vmem:[#allocation6 + $0x408] ss:$16 sps:$4 sm:$0xff]   ;;  %v7290_v31 = vld [vmem:[#allocation6 + $0x56c] ss:$16 sps:$4 sm:$0xff]  }
 0x2c7   :  { %4726 = vmatpush1.bf16.msra.mxu0 %v7129_v49  ;;  %v7218_v49 = vld [vmem:[#allocation6 + $0x3ec] ss:$16 sps:$4 sm:$0xff]  }
 0x2c8   :  { %4890 = vmatpush1.bf16.msra.mxu1 %v7132_v40  ;;  %4727 = vmatprep.subr.bf16.mxu0 %v7137_v41  ;;  %v7213_v40 = vld [vmem:[#allocation6 + $0x3e0] ss:$16 sps:$4 sm:$0xff]   ;;  %v3110_v41 = vmax.f32 %v6921_v36, 0.0 }
 0x2c9   :  { %4891 = vmatprep.subr.bf16.mxu1 %v7140_v42  ;;  %v7216_v42 = vld [vmem:[#allocation6 + $0x3e8] ss:$16 sps:$4 sm:$0xff]   ;;  %v7291_v36 = vld [vmem:[#allocation6 + $0x580] ss:$16 sps:$4 sm:$0xff]  }
 0x2cb   :  { %4728 = vmatpush1.bf16.msra.mxu0 %v7135_v43  ;;  %v7221_v43 = vld [vmem:[#allocation6 + $0x404] ss:$16 sps:$4 sm:$0xff]  }
 0x2cc   :  { %4892 = vmatpush1.bf16.msra.mxu1 %v7138_v45  ;;  %4729 = vmatprep.subr.bf16.mxu0 %v7143_v46  ;;  %v7224_v45 = vld [vmem:[#allocation6 + $0x40c] ss:$16 sps:$4 sm:$0xff]   ;;  %v7219_v46 = vld [vmem:[#allocation6 + $0x400] ss:$16 sps:$4 sm:$0xff]  }
 0x2cd   :  { %4893 = vmatprep.subr.bf16.mxu1 %v7146_v47  ;;  %v3118_v47 = vpack.c.bf16 %v3110_v41, %v3110_v41  ;;  %v7300_v41 = vld [vmem:[#allocation6 + $0x5a8] ss:$16 sps:$4 sm:$0xff]  }
 0x2cf   :  { %4730 = vmatpush1.bf16.msra.mxu0 %v7141_v48  ;;  %v7227_v48 = vld [vmem:[#allocation6 + $0x424] ss:$16 sps:$4 sm:$0xff]  }
 0x2d0   :  { %4894 = vmatpush1.bf16.msra.mxu1 %v7144_v16  ;;  %4731 = vmatprep.subr.bf16.mxu0 %v7149_v50  ;;  %v7230_v16 = vld [vmem:[#allocation6 + $0x42c] ss:$16 sps:$4 sm:$0xff]   ;;  %v7225_v50 = vld [vmem:[#allocation6 + $0x420] ss:$16 sps:$4 sm:$0xff]  }
 0x2d1   :  { %4895 = vmatprep.subr.bf16.mxu1 %v7152_v51  ;;  %v7228_v51 = vld [vmem:[#allocation6 + $0x428] ss:$16 sps:$4 sm:$0xff]  }
 0x2d3   :  { %4732 = vmatpush1.bf16.msra.mxu0 %v7147_v52  ;;  %v7233_v52 = vld [vmem:[#allocation6 + $0x444] ss:$16 sps:$4 sm:$0xff]  }
 0x2d4   :  { %4896 = vmatpush1.bf16.msra.mxu1 %v7150_v54  ;;  %4733 = vmatprep.subr.bf16.mxu0 %v7155_v55  ;;  %v7236_v54 = vld [vmem:[#allocation6 + $0x44c] ss:$16 sps:$4 sm:$0xff]   ;;  %v7231_v55 = vld [vmem:[#allocation6 + $0x440] ss:$16 sps:$4 sm:$0xff]  }
 0x2d5   :  { %4897 = vmatprep.subr.bf16.mxu1 %v7158_v57  ;;  %v7234_v57 = vld [vmem:[#allocation6 + $0x448] ss:$16 sps:$4 sm:$0xff]  }
 0x2d7   :  { %4734 = vmatpush1.bf16.msra.mxu0 %v7153_v58  ;;  %v7239_v58 = vld [vmem:[#allocation6 + $0x464] ss:$16 sps:$4 sm:$0xff]  }
 0x2d8   :  { %4898 = vmatpush1.bf16.msra.mxu1 %v7156_v60  ;;  %4735 = vmatprep.subr.bf16.mxu0 %v7161_v61  ;;  %v7242_v60 = vld [vmem:[#allocation6 + $0x46c] ss:$16 sps:$4 sm:$0xff]   ;;  %v7237_v61 = vld [vmem:[#allocation6 + $0x460] ss:$16 sps:$4 sm:$0xff]  }
 0x2d9   :  { %4899 = vmatprep.subr.bf16.mxu1 %v7164_v62  ;;  %v7240_v62 = vld [vmem:[#allocation6 + $0x468] ss:$16 sps:$4 sm:$0xff]  }
 0x2db   :  { %4736 = vmatpush1.bf16.msra.mxu0 %v7159_v0  ;;  %v7245_v0 = vld [vmem:[#allocation6 + $0x484] ss:$16 sps:$4 sm:$0xff]  }
 0x2dc   :  { %4900 = vmatpush1.bf16.msra.mxu1 %v7162_v1  ;;  %4737 = vmatprep.subr.bf16.mxu0 %v7167_v2  ;;  %v7248_v1 = vld [vmem:[#allocation6 + $0x48c] ss:$16 sps:$4 sm:$0xff]   ;;  %v7243_v2 = vld [vmem:[#allocation6 + $0x480] ss:$16 sps:$4 sm:$0xff]  }
 0x2dd   :  { %4901 = vmatprep.subr.bf16.mxu1 %v7170_v3  ;;  %v7246_v3 = vld [vmem:[#allocation6 + $0x488] ss:$16 sps:$4 sm:$0xff]  }
 0x2df   :  { %4738 = vmatpush1.bf16.msra.mxu0 %v7165_v29  ;;  %v7251_v29 = vld [vmem:[#allocation6 + $0x4a4] ss:$16 sps:$4 sm:$0xff]  }
 0x2e0   :  { %4902 = vmatpush1.bf16.msra.mxu1 %v7168_v4  ;;  %4739 = vmatprep.subr.bf16.mxu0 %v7173_v5  ;;  %v7254_v4 = vld [vmem:[#allocation6 + $0x4ac] ss:$16 sps:$4 sm:$0xff]   ;;  %v7249_v5 = vld [vmem:[#allocation6 + $0x4a0] ss:$16 sps:$4 sm:$0xff]  }
 0x2e1   :  { %4903 = vmatprep.subr.bf16.mxu1 %v7176_v6  ;;  %v7252_v6 = vld [vmem:[#allocation6 + $0x4a8] ss:$16 sps:$4 sm:$0xff]  }
 0x2e3   :  { %4740 = vmatpush1.bf16.msra.mxu0 %v7171_v7  ;;  %v7257_v7 = vld [vmem:[#allocation6 + $0x4c4] ss:$16 sps:$4 sm:$0xff]  }
 0x2e4   :  { %4904 = vmatpush1.bf16.msra.mxu1 %v7174_v8  ;;  %4741 = vmatprep.subr.bf16.mxu0 %v7179_v10  ;;  %v7260_v8 = vld [vmem:[#allocation6 + $0x4cc] ss:$16 sps:$4 sm:$0xff]   ;;  %v7255_v10 = vld [vmem:[#allocation6 + $0x4c0] ss:$16 sps:$4 sm:$0xff]  }
 0x2e5   :  { %4905 = vmatprep.subr.bf16.mxu1 %v7182_v12  ;;  %v7258_v12 = vld [vmem:[#allocation6 + $0x4c8] ss:$16 sps:$4 sm:$0xff]  }
 0x2e7   :  { %4742 = vmatpush1.bf16.msra.mxu0 %v7177_v13  ;;  %v7263_v13 = vld [vmem:[#allocation6 + $0x4e4] ss:$16 sps:$4 sm:$0xff]  }
 0x2e8   :  { %4906 = vmatpush1.bf16.msra.mxu1 %v7180_v14  ;;  %4743 = vmatprep.subr.bf16.mxu0 %v7185_v17  ;;  %v7266_v14 = vld [vmem:[#allocation6 + $0x4ec] ss:$16 sps:$4 sm:$0xff]   ;;  %v7261_v17 = vld [vmem:[#allocation6 + $0x4e0] ss:$16 sps:$4 sm:$0xff]  }
 0x2e9   :  { %4907 = vmatprep.subr.bf16.mxu1 %v7188_v18  ;;  %v7264_v18 = vld [vmem:[#allocation6 + $0x4e8] ss:$16 sps:$4 sm:$0xff]  }
 0x2eb   :  { %4744 = vmatpush1.bf16.msra.mxu0 %v7183_v19  ;;  %v7269_v19 = vld [vmem:[#allocation6 + $0x504] ss:$16 sps:$4 sm:$0xff]  }
 0x2ec   :  { %4908 = vmatpush1.bf16.msra.mxu1 %v7186_v59  ;;  %4745 = vmatprep.subr.bf16.mxu0 %v7191_v20  ;;  %v7272_v59 = vld [vmem:[#allocation6 + $0x50c] ss:$16 sps:$4 sm:$0xff]   ;;  %v7267_v20 = vld [vmem:[#allocation6 + $0x500] ss:$16 sps:$4 sm:$0xff]  }
 0x2ed   :  { %4909 = vmatprep.subr.bf16.mxu1 %v7194_v21  ;;  %v7270_v21 = vld [vmem:[#allocation6 + $0x508] ss:$16 sps:$4 sm:$0xff]  }
 0x2ef   :  { %4746 = vmatpush1.bf16.msra.mxu0 %v7189_v22  ;;  %v7275_v22 = vld [vmem:[#allocation6 + $0x524] ss:$16 sps:$4 sm:$0xff]  }
 0x2f0   :  { %4910 = vmatpush1.bf16.msra.mxu1 %v7192_v9  ;;  %4747 = vmatprep.subr.bf16.mxu0 %v7197_v56  ;;  %v7278_v9 = vld [vmem:[#allocation6 + $0x52c] ss:$16 sps:$4 sm:$0xff]   ;;  %v7273_v56 = vld [vmem:[#allocation6 + $0x520] ss:$16 sps:$4 sm:$0xff]  }
 0x2f1   :  { %4911 = vmatprep.subr.bf16.mxu1 %v7200_v25  ;;  %v7276_v25 = vld [vmem:[#allocation6 + $0x528] ss:$16 sps:$4 sm:$0xff]  }
 0x2f3   :  { %4748 = vmatpush1.bf16.msra.mxu0 %v7195_v23  ;;  %v7281_v23 = vld [vmem:[#allocation6 + $0x544] ss:$16 sps:$4 sm:$0xff]  }
 0x2f4   :  { %4912 = vmatpush1.bf16.msra.mxu1 %v7198_v26  ;;  %4749 = vmatprep.subr.bf16.mxu0 %v7203_v28  ;;  %v7284_v26 = vld [vmem:[#allocation6 + $0x54c] ss:$16 sps:$4 sm:$0xff]   ;;  %v7279_v28 = vld [vmem:[#allocation6 + $0x540] ss:$16 sps:$4 sm:$0xff]  }
 0x2f5   :  { %4913 = vmatprep.subr.bf16.mxu1 %v7206_v30  ;;  %v7282_v30 = vld [vmem:[#allocation6 + $0x548] ss:$16 sps:$4 sm:$0xff]  }
 0x2f7   :  { %4750 = vmatpush1.bf16.msra.mxu0 %v7201_v39  ;;  %v7287_v39 = vld [vmem:[#allocation6 + $0x564] ss:$16 sps:$4 sm:$0xff]  }
 0x2f8   :  { %4914 = vmatpush1.bf16.msra.mxu1 %v7204_v32  ;;  %4751 = vmatprep.subr.bf16.mxu0 %v7209_v35  ;;  %v7285_v32 = vld [vmem:[#allocation6 + $0x560] ss:$16 sps:$4 sm:$0xff]   ;;  %v7288_v35 = vld [vmem:[#allocation6 + $0x568] ss:$16 sps:$4 sm:$0xff]  }
 0x2f9   :  { %4915 = vmatprep.subr.bf16.mxu1 %v7212_v33  ;;  %v7293_v33 = vld [vmem:[#allocation6 + $0x584] ss:$16 sps:$4 sm:$0xff]  }
 0x2fb   :  { %4752 = vmatpush1.bf16.msra.mxu0 %v7207_v34  ;;  %v7296_v34 = vld [vmem:[#allocation6 + $0x58c] ss:$16 sps:$4 sm:$0xff]  }
 0x2fc   :  { %4916 = vmatpush1.bf16.msra.mxu1 %v7210_v37  ;;  %4753 = vmatprep.subr.bf16.mxu0 %v7215_v38  ;;  %v7294_v37 = vld [vmem:[#allocation6 + $0x588] ss:$16 sps:$4 sm:$0xff]   ;;  %v7299_v38 = vld [vmem:[#allocation6 + $0x5a4] ss:$16 sps:$4 sm:$0xff]  }
 0x2fd   :  { %4917 = vmatprep.subr.bf16.mxu1 %v7218_v49  ;;  %v7302_v49 = vld [vmem:[#allocation6 + $0x5ac] ss:$16 sps:$4 sm:$0xff]  }
 0x2ff   :  { %4754 = vmatpush1.bf16.msra.mxu0 %v7213_v40  ;;  %v7297_v40 = vld [vmem:[#allocation6 + $0x5a0] ss:$16 sps:$4 sm:$0xff]  }
 0x300   :  { %4918 = vmatpush1.bf16.msra.mxu1 %v7216_v42  ;;  %4764 = vmatprep.subr.bf16.mxu0 %v7221_v43  ;;  %v7305_v42 = vld [vmem:[#allocation6 + $0x5c4] ss:$16 sps:$4 sm:$0xff]   ;;  %v7308_v43 = vld [vmem:[#allocation6 + $0x5cc] ss:$16 sps:$4 sm:$0xff]  }
 0x301   :  { %4928 = vmatprep.subr.bf16.mxu1 %v7224_v45  ;;  %v7303_v45 = vld [vmem:[#allocation6 + $0x5c0] ss:$16 sps:$4 sm:$0xff]  }
 0x302   :  { %4756 = vmatmul.mubr.bf16.vlgmr.msra.gmra.mrb[8].mxu0 %v3118_v47 }
 0x303   :  { %4920 = vmatmul.mubr.bf16.vlgmr.msra.gmra.mrb[8].mxu1 %v3118_v47  ;;  %4765 = vmatpush1.bf16.msra.mxu0 %v7219_v46  ;;  %v7306_v46 = vld [vmem:[#allocation6 + $0x5c8] ss:$16 sps:$4 sm:$0xff]   ;;  %v7311_v47 = vld [vmem:[#allocation6 + $0x5e4] ss:$16 sps:$4 sm:$0xff]  }
 0x304   :  { %4929 = vmatpush1.bf16.msra.mxu1 %v7222_v63  ;;  %4766 = vmatprep.subr.bf16.mxu0 %v7227_v48  ;;  %v7314_v63 = vld [vmem:[#allocation6 + $0x5ec] ss:$16 sps:$4 sm:$0xff]   ;;  %v7309_v48 = vld [vmem:[#allocation6 + $0x5e0] ss:$16 sps:$4 sm:$0xff]  }
 0x305   :  { %4930 = vmatprep.subr.bf16.mxu1 %v7230_v16  ;;  %v7312_v16 = vld [vmem:[#allocation6 + $0x5e8] ss:$16 sps:$4 sm:$0xff]  }
 0x307   :  { %4767 = vmatpush1.bf16.msra.mxu0 %v7225_v50  ;;  %v7317_v50 = vld [vmem:[#allocation6 + $0x604] ss:$16 sps:$4 sm:$0xff]  }
 0x308   :  { %4931 = vmatpush1.bf16.msra.mxu1 %v7228_v51  ;;  %4768 = vmatprep.subr.bf16.mxu0 %v7233_v52  ;;  %v7320_v51 = vld [vmem:[#allocation6 + $0x60c] ss:$16 sps:$4 sm:$0xff]   ;;  %v674_v52 = vsub.s32 4, %v8078_v44 }
 0x309   :  { %4932 = vmatprep.subr.bf16.mxu1 %v7236_v54  ;;  %v678_v54 = vsub.s32 5, %v8078_v44 }
 0x30b   :  { %4769 = vmatpush1.bf16.msra.mxu0 %v7231_v55  ;;  %v686_v55 = vsub.s32 7, %v8078_v44 }
 0x30c   :  { %4933 = vmatpush1.bf16.msra.mxu1 %v7234_v57  ;;  %4770 = vmatprep.subr.bf16.mxu0 %v7239_v58  ;;  %v675_v57 = vrot.slane %v8151_v27, %v674_v52  ;;  %v679_v58 = vrot.slane %v8151_v27, %v678_v54  ;;  %v7369_v52 = vld [vmem:[#allocation6 + $0x720] ss:$16 sps:$4 sm:$0xff]   ;;  %v7372_v54 = vld [vmem:[#allocation6 + $0x728] ss:$16 sps:$4 sm:$0xff]  }
 0x30d   :  { %4934 = vmatprep.subr.bf16.mxu1 %v7242_v60  ;;  %v687_v60 = vrot.slane %v8151_v27, %v686_v55  ;;  %v7323_v27 = vld [vmem:[#allocation6 + $0x624] ss:$16 sps:$4 sm:$0xff]  }
 0x30e   :  { %v7377_v55 = vld [vmem:[#allocation6 + $0x744] ss:$16 sps:$4 sm:$0xff]  }
 0x30f   :  { %4771 = vmatpush1.bf16.msra.mxu0 %v7237_v61 }
 0x310   :  { %4935 = vmatpush1.bf16.msra.mxu1 %v7240_v62  ;;  %4772 = vmatprep.subr.bf16.mxu0 %v7245_v0 }
 0x311   :  { %4936 = vmatprep.subr.bf16.mxu1 %v7248_v1 }
 0x313   :  { %4773 = vmatpush1.bf16.msra.mxu0 %v7243_v2 }
 0x314   :  { %4937 = vmatpush1.bf16.msra.mxu1 %v7246_v3  ;;  %4774 = vmatprep.subr.bf16.mxu0 %v7251_v29 }
 0x315   :  { %4938 = vmatprep.subr.bf16.mxu1 %v7254_v4 }
 0x317   :  { %4775 = vmatpush1.bf16.msra.mxu0 %v7249_v5 }
 0x318   :  { %4939 = vmatpush1.bf16.msra.mxu1 %v7252_v6  ;;  %4776 = vmatprep.subr.bf16.mxu0 %v7257_v7 }
 0x319   :  { %4940 = vmatprep.subr.bf16.mxu1 %v7260_v8 }
 0x31b   :  { %4777 = vmatpush1.bf16.msra.mxu0 %v7255_v10 }
 0x31c   :  { %4941 = vmatpush1.bf16.msra.mxu1 %v7258_v12  ;;  %4778 = vmatprep.subr.bf16.mxu0 %v7263_v13 }
 0x31d   :  { %4942 = vmatprep.subr.bf16.mxu1 %v7266_v14  ;;  %v7315_v14 = vld [vmem:[#allocation6 + $0x600] ss:$16 sps:$4 sm:$0xff]  }
 0x31f   :  { %4779 = vmatpush1.bf16.msra.mxu0 %v7261_v17  ;;  %v7318_v17 = vld [vmem:[#allocation6 + $0x608] ss:$16 sps:$4 sm:$0xff]  }
 0x320   :  { %4943 = vmatpush1.bf16.msra.mxu1 %v7264_v18  ;;  %4780 = vmatprep.subr.bf16.mxu0 %v7269_v19  ;;  %v7326_v19 = vld [vmem:[#allocation6 + $0x62c] ss:$16 sps:$4 sm:$0xff]  }
 0x321   :  { %4944 = vmatprep.subr.bf16.mxu1 %v7272_v59 }
 0x323   :  { %4781 = vmatpush1.bf16.msra.mxu0 %v7267_v20  ;;  %v7321_v20 = vld [vmem:[#allocation6 + $0x620] ss:$16 sps:$4 sm:$0xff]  }
 0x324   :  { %4945 = vmatpush1.bf16.msra.mxu1 %v7270_v21  ;;  %4782 = vmatprep.subr.bf16.mxu0 %v7275_v22  ;;  %v7324_v21 = vld [vmem:[#allocation6 + $0x628] ss:$16 sps:$4 sm:$0xff]   ;;  %v7329_v22 = vld [vmem:[#allocation6 + $0x644] ss:$16 sps:$4 sm:$0xff]  }
 0x325   :  { %4946 = vmatprep.subr.bf16.mxu1 %v7278_v9  ;;  %v7332_v9 = vld [vmem:[#allocation6 + $0x64c] ss:$16 sps:$4 sm:$0xff]  }
 0x327   :  { %4783 = vmatpush1.bf16.msra.mxu0 %v7273_v56  ;;  %v7327_v56 = vld [vmem:[#allocation6 + $0x640] ss:$16 sps:$4 sm:$0xff]  }
 0x328   :  { %4947 = vmatpush1.bf16.msra.mxu1 %v7276_v25  ;;  %4784 = vmatprep.subr.bf16.mxu0 %v7281_v23  ;;  %v7330_v25 = vld [vmem:[#allocation6 + $0x648] ss:$16 sps:$4 sm:$0xff]   ;;  %v7335_v23 = vld [vmem:[#allocation6 + $0x664] ss:$16 sps:$4 sm:$0xff]  }
 0x329   :  { %4948 = vmatprep.subr.bf16.mxu1 %v7284_v26  ;;  %v7338_v26 = vld [vmem:[#allocation6 + $0x66c] ss:$16 sps:$4 sm:$0xff]  }
 0x32b   :  { %4785 = vmatpush1.bf16.msra.mxu0 %v7279_v28  ;;  %v7333_v28 = vld [vmem:[#allocation6 + $0x660] ss:$16 sps:$4 sm:$0xff]  }
 0x32c   :  { %4949 = vmatpush1.bf16.msra.mxu1 %v7282_v30  ;;  %4786 = vmatprep.subr.bf16.mxu0 %v7287_v39  ;;  %v7336_v30 = vld [vmem:[#allocation6 + $0x668] ss:$16 sps:$4 sm:$0xff]   ;;  %v7341_v39 = vld [vmem:[#allocation6 + $0x684] ss:$16 sps:$4 sm:$0xff]  }
 0x32d   :  { %4950 = vmatprep.subr.bf16.mxu1 %v7290_v31  ;;  %v7344_v31 = vld [vmem:[#allocation6 + $0x68c] ss:$16 sps:$4 sm:$0xff]  }
 0x32f   :  { %4787 = vmatpush1.bf16.msra.mxu0 %v7285_v32  ;;  %v7339_v32 = vld [vmem:[#allocation6 + $0x680] ss:$16 sps:$4 sm:$0xff]  }
 0x330   :  { %4951 = vmatpush1.bf16.msra.mxu1 %v7288_v35  ;;  %4788 = vmatprep.subr.bf16.mxu0 %v7293_v33  ;;  %v7342_v35 = vld [vmem:[#allocation6 + $0x688] ss:$16 sps:$4 sm:$0xff]   ;;  %v7347_v33 = vld [vmem:[#allocation6 + $0x6a4] ss:$16 sps:$4 sm:$0xff]  }
 0x331   :  { %4952 = vmatprep.subr.bf16.mxu1 %v7296_v34  ;;  %v7350_v34 = vld [vmem:[#allocation6 + $0x6ac] ss:$16 sps:$4 sm:$0xff]  }
 0x333   :  { %4789 = vmatpush1.bf16.msra.mxu0 %v7291_v36  ;;  %v7345_v36 = vld [vmem:[#allocation6 + $0x6a0] ss:$16 sps:$4 sm:$0xff]  }
 0x334   :  { %4953 = vmatpush1.bf16.msra.mxu1 %v7294_v37  ;;  %4790 = vmatprep.subr.bf16.mxu0 %v7299_v38  ;;  %v7348_v37 = vld [vmem:[#allocation6 + $0x6a8] ss:$16 sps:$4 sm:$0xff]   ;;  %v7353_v38 = vld [vmem:[#allocation6 + $0x6c4] ss:$16 sps:$4 sm:$0xff]  }
 0x335   :  { %4954 = vmatprep.subr.bf16.mxu1 %v7302_v49  ;;  %v7356_v49 = vld [vmem:[#allocation6 + $0x6cc] ss:$16 sps:$4 sm:$0xff]  }
 0x337   :  { %4791 = vmatpush1.bf16.msra.mxu0 %v7297_v40  ;;  %v7351_v40 = vld [vmem:[#allocation6 + $0x6c0] ss:$16 sps:$4 sm:$0xff]  }
 0x338   :  { %4955 = vmatpush1.bf16.msra.mxu1 %v7300_v41  ;;  %4792 = vmatprep.subr.bf16.mxu0 %v7305_v42  ;;  %v7354_v41 = vld [vmem:[#allocation6 + $0x6c8] ss:$16 sps:$4 sm:$0xff]   ;;  %v7359_v42 = vld [vmem:[#allocation6 + $0x6e4] ss:$16 sps:$4 sm:$0xff]  }
 0x339   :  { %4956 = vmatprep.subr.bf16.mxu1 %v7308_v43  ;;  %v7362_v43 = vld [vmem:[#allocation6 + $0x6ec] ss:$16 sps:$4 sm:$0xff]  }
 0x33b   :  { %4793 = vmatpush1.bf16.msra.mxu0 %v7303_v45  ;;  %v7357_v45 = vld [vmem:[#allocation6 + $0x6e0] ss:$16 sps:$4 sm:$0xff]  }
 0x33c   :  { %4957 = vmatpush1.bf16.msra.mxu1 %v7306_v46  ;;  %4794 = vmatprep.subr.bf16.mxu0 %v7311_v47  ;;  %v7360_v46 = vld [vmem:[#allocation6 + $0x6e8] ss:$16 sps:$4 sm:$0xff]   ;;  %v7365_v47 = vld [vmem:[#allocation6 + $0x704] ss:$16 sps:$4 sm:$0xff]  }
 0x33d   :  { %4958 = vmatprep.subr.bf16.mxu1 %v7314_v63  ;;  %v7368_v63 = vld [vmem:[#allocation6 + $0x70c] ss:$16 sps:$4 sm:$0xff]  }
 0x33f   :  { %4795 = vmatpush1.bf16.msra.mxu0 %v7309_v48  ;;  %v7363_v48 = vld [vmem:[#allocation6 + $0x700] ss:$16 sps:$4 sm:$0xff]  }
 0x340   :  { %4959 = vmatpush1.bf16.msra.mxu1 %v7312_v16  ;;  %4805 = vmatprep.subr.bf16.mxu0 %v7317_v50  ;;  %v7366_v16 = vld [vmem:[#allocation6 + $0x708] ss:$16 sps:$4 sm:$0xff]   ;;  %v7371_v50 = vld [vmem:[#allocation6 + $0x724] ss:$16 sps:$4 sm:$0xff]  }
 0x341   :  { %4969 = vmatprep.subr.bf16.mxu1 %v7320_v51  ;;  %v7374_v51 = vld [vmem:[#allocation6 + $0x72c] ss:$16 sps:$4 sm:$0xff]  }
 0x355   :  { %v2978_v61 = vpop.f32.mrb[4].mxu0  ;;  %v8183_v0 = vpop.f32.mrb[4].mxu1 }
 0x356   :  { %v6923_v62 = vadd.f32 %v2978_v61, %v675_v57  ;;  %v2980_v1 = vpop.f32.mrb[5].mxu0  ;;  %v3103_v3 = vpop.f32.mrb[5].mxu1  ;;  %v7380_v57 = vld [vmem:[#allocation6 + $0x74c] ss:$16 sps:$4 sm:$0xff]   ;;  %v7383_v61 = vld [vmem:[#allocation6 + $0x764] ss:$16 sps:$4 sm:$0xff]  }
 0x357   :  { %v6924_v2 = vadd.f32 %v2980_v1, %v679_v58  ;;  %v2982_v29 = vpop.f32.mrb[6].mxu0  ;;  %v6926_v5 = vadd.f32 %v3103_v3, %v687_v60  ;;  %v3105_v6 = vpop.f32.mrb[6].mxu1  ;;  %v7375_v58 = vld [vmem:[#allocation6 + $0x740] ss:$16 sps:$4 sm:$0xff]   ;;  %v7378_v60 = vld [vmem:[#allocation6 + $0x748] ss:$16 sps:$4 sm:$0xff]  }
 0x358   :  { %v3112_v4 = vmax.f32 %v6923_v62, 0.0  ;;  %v2983_v7 = vpop.f32.mrb[7].mxu0  ;;  %v3106_v10 = vpop.f32.mrb[7].mxu1  ;;  %v7386_v62 = vld [vmem:[#allocation6 + $0x76c] ss:$16 sps:$4 sm:$0xff]   ;;  %v682_v6 = vsub.s32 6, %v8078_v44 }
 0x359   :  { %v3113_v8 = vmax.f32 %v6924_v2, 0.0  ;;  %v3115_v12 = vmax.f32 %v6926_v5, 0.0  ;;  %v7381_v1 = vld [vmem:[#allocation6 + $0x760] ss:$16 sps:$4 sm:$0xff]   ;;  %v7384_v2 = vld [vmem:[#allocation6 + $0x768] ss:$16 sps:$4 sm:$0xff]  }
 0x35a   :  { %v3120_v18 = vpack.c.bf16 %v3112_v4, %v3112_v4  ;;  %v7389_v3 = vld [vmem:[#allocation6 + $0x784] ss:$16 sps:$4 sm:$0xff]   ;;  %v7392_v29 = vld [vmem:[#allocation6 + $0x78c] ss:$16 sps:$4 sm:$0xff]   ;;  %v7387_v4 = vld [vmem:[#allocation6 + $0x780] ss:$16 sps:$4 sm:$0xff]  }
 0x35b   :  { %v3121_v13 = vpack.c.bf16 %v3113_v8, %v3113_v8  ;;  %v3123_v59 = vpack.c.bf16 %v3115_v12, %v3115_v12  ;;  %v7390_v5 = vld [vmem:[#allocation6 + $0x788] ss:$16 sps:$4 sm:$0xff]   ;;  %v7395_v7 = vld [vmem:[#allocation6 + $0x7a4] ss:$16 sps:$4 sm:$0xff]   ;;  %v7398_v8 = vld [vmem:[#allocation6 + $0x7ac] ss:$16 sps:$4 sm:$0xff]  }
 0x35c   :  { %v7393_v10 = vld [vmem:[#allocation6 + $0x7a0] ss:$16 sps:$4 sm:$0xff]   ;;  %v7396_v12 = vld [vmem:[#allocation6 + $0x7a8] ss:$16 sps:$4 sm:$0xff]  }
 0x35d   :  { %4796 = vmatprep.mubr.bf16.mxu0 %v3121_v13  ;;  %4960 = vmatprep.mubr.bf16.mxu1 %v3121_v13  ;;  %v7459_v13 = vld [vmem:[#allocation4] sm:$0xff] }
 0x35e   :  { %4797 = vmatmul.mubr.bf16.vlgmr.msra.gmra.mrb[8].mxu0 %v3120_v18  ;;  %4961 = vmatmul.mubr.bf16.vlgmr.msra.gmra.mrb[8].mxu1 %v3120_v18  ;;  %v7404_v18 = vld [vmem:[#allocation6 + $0x7cc] ss:$16 sps:$4 sm:$0xff]  }
 0x35f   :  { %4806 = vmatpush1.bf16.msra.mxu0 %v7315_v14  ;;  %4970 = vmatpush1.bf16.msra.mxu1 %v7318_v17  ;;  %v683_v14 = vrot.slane %v7459_v13, %v682_v6  ;;  %v7401_v17 = vld [vmem:[#allocation6 + $0x7c4] ss:$16 sps:$4 sm:$0xff]  }
 0x360   :  { %4837 = vmatprep.mubr.bf16.mxu0 %v3123_v59  ;;  %5001 = vmatprep.mubr.bf16.mxu1 %v3123_v59 }
 0x361   :  { %4807 = vmatprep.subr.bf16.mxu0 %v7323_v27  ;;  %4971 = vmatprep.subr.bf16.mxu1 %v7326_v19  ;;  %v7399_v27 = vld [vmem:[#allocation6 + $0x7c0] ss:$16 sps:$4 sm:$0xff]   ;;  %v7402_v19 = vld [vmem:[#allocation6 + $0x7c8] ss:$16 sps:$4 sm:$0xff]   ;;  %v6925_v59 = vadd.f32 %v8183_v0, %v683_v14 }
 0x362   :  { %v7415_v0 = vld [vmem:[#allocation9 + $0x48] sm:$0xff]  }
 0x363   :  { %4808 = vmatpush1.bf16.msra.mxu0 %v7321_v20  ;;  %4972 = vmatpush1.bf16.msra.mxu1 %v7324_v21  ;;  %v7407_v20 = vld [vmem:[#allocation6 + $0x7e4] ss:$16 sps:$4 sm:$0xff]   ;;  %v7410_v21 = vld [vmem:[#allocation6 + $0x7ec] ss:$16 sps:$4 sm:$0xff]  }
 0x364   :  { %4809 = vmatprep.subr.bf16.mxu0 %v7329_v22  ;;  %4973 = vmatprep.subr.bf16.mxu1 %v7332_v9  ;;  %v7405_v22 = vld [vmem:[#allocation6 + $0x7e0] ss:$16 sps:$4 sm:$0xff]   ;;  %v7408_v9 = vld [vmem:[#allocation6 + $0x7e8] ss:$16 sps:$4 sm:$0xff]  }
 0x367   :  { %4810 = vmatpush1.bf16.msra.mxu0 %v7327_v56  ;;  %4974 = vmatpush1.bf16.msra.mxu1 %v7330_v25  ;;  %v3114_v56 = vmax.f32 %v6925_v59, 0.0  ;;  %v7411_v25 = vld [vmem:[#allocation9 + $0x40] sm:$0xff]  }
 0x368   :  { %4811 = vmatprep.subr.bf16.mxu0 %v7335_v23  ;;  %4975 = vmatprep.subr.bf16.mxu1 %v7338_v26  ;;  %v7412_v23 = vld [vmem:[#allocation9 + $0xc0] sm:$0xff]  }
 0x369   :  { %v7413_v26 = vld [vmem:[#allocation9] sm:$0xff]  }
 0x36b   :  { %4812 = vmatpush1.bf16.msra.mxu0 %v7333_v28  ;;  %4976 = vmatpush1.bf16.msra.mxu1 %v7336_v30  ;;  %v7414_v28 = vld [vmem:[#allocation9 + $0x80] sm:$0xff]   ;;  %v3122_v30 = vpack.c.bf16 %v3114_v56, %v3114_v56 }
 0x36c   :  { %4813 = vmatprep.subr.bf16.mxu0 %v7341_v39  ;;  %4977 = vmatprep.subr.bf16.mxu1 %v7344_v31  ;;  %v7416_v39 = vld [vmem:[#allocation9 + $0xc8] sm:$0xff]  }
 0x36d   :  { %v7417_v31 = vld [vmem:[#allocation9 + $0x8] sm:$0xff]  }
 0x36f   :  { %4814 = vmatpush1.bf16.msra.mxu0 %v7339_v32  ;;  %4978 = vmatpush1.bf16.msra.mxu1 %v7342_v35  ;;  %v7418_v32 = vld [vmem:[#allocation9 + $0x88] sm:$0xff]   ;;  %v7419_v35 = vld [vmem:[#allocation9 + $0x50] sm:$0xff]  }
 0x370   :  { %4815 = vmatprep.subr.bf16.mxu0 %v7347_v33  ;;  %4979 = vmatprep.subr.bf16.mxu1 %v7350_v34  ;;  %v7420_v33 = vld [vmem:[#allocation9 + $0xd0] sm:$0xff]  }
 0x371   :  { %v7421_v34 = vld [vmem:[#allocation9 + $0x10] sm:$0xff]  }
 0x373   :  { %4816 = vmatpush1.bf16.msra.mxu0 %v7345_v36  ;;  %4980 = vmatpush1.bf16.msra.mxu1 %v7348_v37  ;;  %v7422_v36 = vld [vmem:[#allocation9 + $0x90] sm:$0xff]   ;;  %v7423_v37 = vld [vmem:[#allocation9 + $0x58] sm:$0xff]  }
 0x374   :  { %4817 = vmatprep.subr.bf16.mxu0 %v7353_v38  ;;  %4981 = vmatprep.subr.bf16.mxu1 %v7356_v49  ;;  %v7424_v38 = vld [vmem:[#allocation9 + $0xd8] sm:$0xff]  }
 0x375   :  { %v7425_v49 = vld [vmem:[#allocation9 + $0x18] sm:$0xff]  }
 0x377   :  { %4818 = vmatpush1.bf16.msra.mxu0 %v7351_v40  ;;  %4982 = vmatpush1.bf16.msra.mxu1 %v7354_v41  ;;  %v7426_v40 = vld [vmem:[#allocation9 + $0x98] sm:$0xff]   ;;  %v7427_v41 = vld [vmem:[#allocation9 + $0x60] sm:$0xff]  }
 0x378   :  { %4819 = vmatprep.subr.bf16.mxu0 %v7359_v42  ;;  %4983 = vmatprep.subr.bf16.mxu1 %v7362_v43  ;;  %v7428_v42 = vld [vmem:[#allocation9 + $0xe0] sm:$0xff]  }
 0x379   :  { %v7429_v43 = vld [vmem:[#allocation9 + $0x20] sm:$0xff]  }
 0x37b   :  { %4820 = vmatpush1.bf16.msra.mxu0 %v7357_v45  ;;  %4984 = vmatpush1.bf16.msra.mxu1 %v7360_v46  ;;  %v7430_v45 = vld [vmem:[#allocation9 + $0xa0] sm:$0xff]   ;;  %v7431_v46 = vld [vmem:[#allocation9 + $0x68] sm:$0xff]  }
 0x37c   :  { %4821 = vmatprep.subr.bf16.mxu0 %v7365_v47  ;;  %4985 = vmatprep.subr.bf16.mxu1 %v7368_v63  ;;  %v7432_v47 = vld [vmem:[#allocation9 + $0xe8] sm:$0xff]  }
 0x37d   :  { %v7433_v63 = vld [vmem:[#allocation9 + $0x28] sm:$0xff]  }
 0x37f   :  { %4822 = vmatpush1.bf16.msra.mxu0 %v7363_v48  ;;  %4986 = vmatpush1.bf16.msra.mxu1 %v7366_v16  ;;  %v7434_v48 = vld [vmem:[#allocation9 + $0xa8] sm:$0xff]   ;;  %v7435_v16 = vld [vmem:[#allocation9 + $0x70] sm:$0xff]  }
 0x380   :  { %4823 = vmatprep.subr.bf16.mxu0 %v7371_v50  ;;  %4987 = vmatprep.subr.bf16.mxu1 %v7374_v51  ;;  %v7436_v50 = vld [vmem:[#allocation9 + $0xf0] sm:$0xff]  }
 0x381   :  { %v7437_v51 = vld [vmem:[#allocation9 + $0x30] sm:$0xff]  }
 0x383   :  { %4824 = vmatpush1.bf16.msra.mxu0 %v7369_v52  ;;  %4988 = vmatpush1.bf16.msra.mxu1 %v7372_v54  ;;  %v7438_v52 = vld [vmem:[#allocation9 + $0xb0] sm:$0xff]   ;;  %v7439_v54 = vld [vmem:[#allocation9 + $0x78] sm:$0xff]  }
 0x384   :  { %4825 = vmatprep.subr.bf16.mxu0 %v7377_v55  ;;  %4989 = vmatprep.subr.bf16.mxu1 %v7380_v57  ;;  %v7440_v55 = vld [vmem:[#allocation9 + $0xf8] sm:$0xff]  }
 0x385   :  { %v7441_v57 = vld [vmem:[#allocation9 + $0x38] sm:$0xff]  }
 0x387   :  { %4826 = vmatpush1.bf16.msra.mxu0 %v7375_v58  ;;  %4990 = vmatpush1.bf16.msra.mxu1 %v7378_v60  ;;  %v7442_v58 = vld [vmem:[#allocation9 + $0xb8] sm:$0xff]  }
 0x388   :  { %4827 = vmatprep.subr.bf16.mxu0 %v7383_v61  ;;  %4991 = vmatprep.subr.bf16.mxu1 %v7386_v62  ;;  %v3380_v60 = vld [vmem:[#allocation7] sm:$0xf] }
 0x389   :  { %v3385_v61 = vrot.slane %v3380_v60, %v658_v11  ;;  %v3393_v62 = vrot.slane %v3380_v60, %v666_v24 }
 0x38b   :  { %4828 = vmatpush1.bf16.msra.mxu0 %v7381_v1  ;;  %4992 = vmatpush1.bf16.msra.mxu1 %v7384_v2  ;;  %v3389_v1 = vrot.slane %v3380_v60, %v662_v53  ;;  %v3397_v2 = vrot.slane %v3380_v60, %v670_v15 }
 0x38c   :  { %4829 = vmatprep.subr.bf16.mxu0 %v7389_v3  ;;  %4993 = vmatprep.subr.bf16.mxu1 %v7392_v29 }
 0x38f   :  { %4830 = vmatpush1.bf16.msra.mxu0 %v7387_v4  ;;  %4994 = vmatpush1.bf16.msra.mxu1 %v7390_v5 }
 0x390   :  { %4831 = vmatprep.subr.bf16.mxu0 %v7395_v7  ;;  %4995 = vmatprep.subr.bf16.mxu1 %v7398_v8 }
 0x393   :  { %4832 = vmatpush1.bf16.msra.mxu0 %v7393_v10  ;;  %4996 = vmatpush1.bf16.msra.mxu1 %v7396_v12 }
 0x394   :  { %4833 = vmatprep.subr.bf16.mxu0 %v7401_v17  ;;  %4997 = vmatprep.subr.bf16.mxu1 %v7404_v18 }
 0x397   :  { %4834 = vmatpush1.bf16.msra.mxu0 %v7399_v27  ;;  %4998 = vmatpush1.bf16.msra.mxu1 %v7402_v19 }
 0x398   :  { %4835 = vmatprep.subr.bf16.mxu0 %v7407_v20  ;;  %4999 = vmatprep.subr.bf16.mxu1 %v7410_v21  ;;  %v6703_v21 = vld [vmem:[#allocation10] ss:$0 sm:$0xff] }
 0x39b   :  { %4836 = vmatpush1.bf16.msra.mxu0 %v7405_v22  ;;  %5000 = vmatpush1.bf16.msra.mxu1 %v7408_v9 }
 0x39c   :  { %6753 = vmatprep.subr.bf16.mxu0 %v7411_v25  ;;  %6775 = vmatprep.subr.bf16.mxu1 %v7412_v23 }
 0x39e   :  { %4838 = vmatmul.mubr.bf16.vlgmr.msra.gmra.mrb[8].mxu0 %v3122_v30  ;;  %5002 = vmatmul.mubr.bf16.vlgmr.msra.gmra.mrb[8].mxu1 %v3122_v30 }
 0x39f   :  { %6754 = vmatpush3.bf16.msra.mxu0 %v7413_v26  ;;  %6776 = vmatpush3.bf16.msra.mxu1 %v7414_v28 }
 0x3a0   :  { %6755 = vmatprep.subr.bf16.mxu0 %v7415_v0  ;;  %6777 = vmatprep.subr.bf16.mxu1 %v7416_v39 }
 0x3a3   :  { %6756 = vmatpush3.bf16.msra.mxu0 %v7417_v31  ;;  %6778 = vmatpush3.bf16.msra.mxu1 %v7418_v32 }
 0x3a4   :  { %6757 = vmatprep.subr.bf16.mxu0 %v7419_v35  ;;  %6779 = vmatprep.subr.bf16.mxu1 %v7420_v33 }
 0x3a7   :  { %6758 = vmatpush3.bf16.msra.mxu0 %v7421_v34  ;;  %6780 = vmatpush3.bf16.msra.mxu1 %v7422_v36 }
 0x3a8   :  { %6759 = vmatprep.subr.bf16.mxu0 %v7423_v37  ;;  %6781 = vmatprep.subr.bf16.mxu1 %v7424_v38 }
 0x3ab   :  { %6760 = vmatpush3.bf16.msra.mxu0 %v7425_v49  ;;  %6782 = vmatpush3.bf16.msra.mxu1 %v7426_v40 }
 0x3ac   :  { %6761 = vmatprep.subr.bf16.mxu0 %v7427_v41  ;;  %6783 = vmatprep.subr.bf16.mxu1 %v7428_v42 }
 0x3af   :  { %6762 = vmatpush3.bf16.msra.mxu0 %v7429_v43  ;;  %6784 = vmatpush3.bf16.msra.mxu1 %v7430_v45 }
 0x3b0   :  { %6763 = vmatprep.subr.bf16.mxu0 %v7431_v46  ;;  %6785 = vmatprep.subr.bf16.mxu1 %v7432_v47 }
 0x3b3   :  { %6764 = vmatpush3.bf16.msra.mxu0 %v7433_v63  ;;  %6786 = vmatpush3.bf16.msra.mxu1 %v7434_v48 }
 0x3b4   :  { %6765 = vmatprep.subr.bf16.mxu0 %v7435_v16  ;;  %6787 = vmatprep.subr.bf16.mxu1 %v7436_v50 }
 0x3b7   :  { %6766 = vmatpush3.bf16.msra.mxu0 %v7437_v51  ;;  %6788 = vmatpush3.bf16.msra.mxu1 %v7438_v52 }
 0x3b8   :  { %6767 = vmatprep.subr.bf16.mxu0 %v7439_v54  ;;  %6789 = vmatprep.subr.bf16.mxu1 %v7440_v55 }
 0x3bb   :  { %6768 = vmatpush3.bf16.msra.mxu0 %v7441_v57  ;;  %6790 = vmatpush3.bf16.msra.mxu1 %v7442_v58 }
 0x471   :  { %v4839_v3 = vpop.f32.mrb[8].mxu0  ;;  %v5003_v29 = vpop.f32.mrb[8].mxu1 }
 0x472   :  { %v6927_v4 = vadd.f32 %v4839_v3, %v3385_v61  ;;  %v6929_v5 = vadd.f32 %v5003_v29, %v3393_v62  ;;  %v4841_v6 = vpop.f32.mrb[9].mxu0  ;;  %v5005_v7 = vpop.f32.mrb[9].mxu1 }
 0x473   :  { %v6928_v8 = vadd.f32 %v4841_v6, %v3389_v1  ;;  %v6930_v10 = vadd.f32 %v5005_v7, %v3397_v2  ;;  %v4843_v12 = vpop.f32.mrb[10].mxu0  ;;  %v5007_v13 = vpop.f32.mrb[10].mxu1 }
 0x474   :  { %v5010_v11 = vmax.f32 %v6927_v4, 0.0  ;;  %v5012_v14 = vmax.f32 %v6929_v5, 0.0  ;;  %v4844_v17 = vpop.f32.mrb[11].mxu0  ;;  %v5008_v24 = vpop.f32.mrb[11].mxu1  ;;  %v5464_v12 = vld [vmem:[#allocation12] sm:$0xff]  ;;  %v5465_v13 = vld [vmem:[#allocation12 + $0x8] sm:$0xff] }
 0x475   :  { %v5011_v18 = vmax.f32 %v6928_v8, 0.0  ;;  %v5013_v27 = vmax.f32 %v6930_v10, 0.0 }
 0x476   :  { %v5014_v44 = vpack.c.bf16 %v5010_v11, %v5010_v11  ;;  %v5016_v15 = vpack.c.bf16 %v5012_v14, %v5012_v14  ;;  %v6881_v11 = vpack.c.bf16 %v5465_v13, %v5464_v12 }
 0x477   :  { %v5015_v53 = vpack.c.bf16 %v5011_v18, %v5011_v18  ;;  %v5017_v19 = vpack.c.bf16 %v5013_v27, %v5013_v27 }
 0x478   :  { %6882 = vmatprep.subr.bf16.mxu0 %v6881_v11 }
 0x479   :  { %5313 = vmatprep.mubr.bf16.mxu0 %v5015_v53  ;;  %5353 = vmatprep.mubr.bf16.mxu1 %v5017_v19 }
 0x47a   :  { %5314 = vmatmul.mubr.bf16.vlgmr.msra.gmra.mrb[12].mxu0 %v5014_v44  ;;  %5354 = vmatmul.mubr.bf16.vlgmr.msra.gmra.mrb[12].mxu1 %v5016_v15 }
 0x47b   :  { %6884 = vmatpush3.bf16.msra.mxu0 %v6881_v11 }
 0x54d   :  { %v6769_v59 = vpop.f32.mrb[12].mxu0  ;;  %v6791_v20 = vpop.f32.mrb[12].mxu1 }
 0x54e   :  { %v6770_v22 = vpop.f32.mrb[13].mxu0  ;;  %v6792_v9 = vpop.f32.mrb[13].mxu1 }
 0x54f   :  { %v6771_v56 = vadd.f32 %v6770_v22, %v6769_v59  ;;  %v6793_v25 = vadd.f32 %v6792_v9, %v6791_v20  ;;  %v6772_v23 = vpop.f32.mrb[14].mxu0  ;;  %v6794_v26 = vpop.f32.mrb[14].mxu1 }
 0x550   :  { %v6773_v28 = vpop.f32.mrb[15].mxu0  ;;  %v6795_v30 = vpop.f32.mrb[15].mxu1 }
 0x551   :  { %v5316_v0 = vadd.f32 %v6771_v56, %v6703_v21 }
 0x553   :  { %v5356_v39 = vadd.f32 %v6793_v25, %v5316_v0  ;;  %v6736_v0 = vld [vmem:[#allocation13] ss:$0 sm:$0xff] }
 0x555   :  { %5391 = vrot.lane.b32.xlu1 %v5356_v39, %s7807_s0  ;;  %v5362_v31 = vrot.slane %v5356_v39, 7  ;;  %v5370_v32 = vrot.slane %v5356_v39, 5  ;;  %v5366_v35 = vrot.slane %v5356_v39, 6  ;;  %v5374_v33 = vrot.slane %v5356_v39, 4 }
 0x556   :  { %v5378_v34 = vrot.slane %v5356_v39, 3  ;;  %v5382_v36 = vrot.slane %v5356_v39, 2  ;;  %v5386_v37 = vrot.slane %v5356_v39, 1 }
 0x557   :  { %5363 = vrot.lane.b32.xlu0 %v5362_v31, %s7807_s0 }
 0x559   :  { %5371 = vrot.lane.b32.xlu1 %v5370_v32, %s7808_s8 }
 0x55b   :  { %5367 = vrot.lane.b32.xlu0 %v5366_v35, %s7809_s30 }
 0x55d   :  { %5375 = vrot.lane.b32.xlu1 %v5374_v33, %s7799_s3 }
 0x55f   :  { %5394 = vrot.lane.b32.xlu0 %v5362_v31, %s7809_s30 }
 0x561   :  { %5379 = vrot.lane.b32.xlu1 %v5378_v34, %s7810_s1 }
 0x563   :  { %5397 = vrot.lane.b32.xlu0 %v5366_v35, %s7808_s8 }
 0x565   :  { %5383 = vrot.lane.b32.xlu1 %v5382_v36, %s7794_s18 }
 0x567   :  { %5400 = vrot.lane.b32.xlu0 %v5370_v32, %s7799_s3 }
 0x569   :  { %5387 = vrot.lane.b32.xlu1 %v5386_v37, %s7797_s22 }
 0x56b   :  { %5403 = vrot.lane.b32.xlu0 %v5374_v33, %s7810_s1 }
 0x56d   :  { %5409 = vrot.lane.b32.xlu1 %v5382_v36, %s7797_s22 }
 0x56f   :  { %5406 = vrot.lane.b32.xlu0 %v5378_v34, %s7794_s18 }
 0x5c7   :  { %v5392_v38 = vpop.permute.xlu1 %5391 }
 0x5c8   :  { %v5426_v58 = vsel %vm5412_vm1, %v5386_v37, %v5392_v38  ;;  %v5585_v38 = vld [vmem:[#allocation15] sm:$0xff] }
 0x5c9   :  { %v5364_v49 = vpop.permute.xlu0 %5363 }
 0x5ca   :  { %v5413_v45 = vsel %vm5412_vm1, %v5356_v39, %v5364_v49  ;;  %v5586_v49 = vld [vmem:[#allocation15 + $0x8] sm:$0xff]  ;;  %vm6894_vm1 = vmpackc.low %vm5435_vm7, %vm5435_vm7 }
 0x5cb   :  { %v5372_v40 = vpop.permute.xlu1 %5371 }
 0x5cd   :  { %v5368_v41 = vpop.permute.xlu0 %5367 }
 0x5ce   :  { %v5415_v46 = vsel %vm5414_vm0, %v5413_v45, %v5368_v41  ;;  %v6885_v41 = vpack.c.bf16 %v5586_v49, %v5585_v38 }
 0x5cf   :  { %v5376_v42 = vpop.permute.xlu1 %5375  ;;  %v5417_v48 = vsel %vm5416_vm2, %v5415_v46, %v5372_v40  ;;  %v5587_v40 = vld [vmem:[#allocation15 + $0x10] sm:$0xff] }
 0x5d0   :  { %v5419_v50 = vsel %vm5418_vm3, %v5417_v48, %v5376_v42  ;;  %v5588_v42 = vld [vmem:[#allocation15 + $0x18] sm:$0xff]  ;;  %6886 = vmatprep.subr.bf16.mxu0 %v6885_v41 }
 0x5d1   :  { %v5395_v43 = vpop.permute.xlu0 %5394 }
 0x5d2   :  { %v5427_v62 = vsel %vm5414_vm0, %v5426_v58, %v5395_v43  ;;  %v6889_v43 = vpack.c.bf16 %v5588_v42, %v5587_v40  ;;  %v5871_v40 = vld [vmem:[#allocation18 + $0x10] sm:$0xff] }
 0x5d3   :  { %v5380_v47 = vpop.permute.xlu1 %5379 }
 0x5d4   :  { %v5421_v52 = vsel %vm5420_vm4, %v5419_v50, %v5380_v47 }
 0x5d5   :  { %v5398_v63 = vpop.permute.xlu0 %5397 }
 0x5d6   :  { %v5428_v1 = vsel %vm5416_vm2, %v5427_v62, %v5398_v63 }
 0x5d7   :  { %v5384_v16 = vpop.permute.xlu1 %5383 }
 0x5d8   :  { %v5423_v54 = vsel %vm5422_vm5, %v5421_v52, %v5384_v16 }
 0x5d9   :  { %v5401_v51 = vpop.permute.xlu0 %5400 }
 0x5da   :  { %v5429_v3 = vsel %vm5418_vm3, %v5428_v1, %v5401_v51 }
 0x5db   :  { %v5388_v55 = vpop.permute.xlu1 %5387 }
 0x5dc   :  { %v5425_v57 = vsel %vm5424_vm6, %v5423_v54, %v5388_v55 }
 0x5dd   :  { %v5404_v60 = vpop.permute.xlu0 %5403  ;;  %v5433_v61 = vmul.f32 %v5425_v57, %v5425_v57 }
 0x5de   :  { %v5430_v29 = vsel %vm5420_vm4, %v5429_v3, %v5404_v60 }
 0x5df   :  { %v5436_v2 = vsel %vm5435_vm7, %v5433_v61, 0.0  ;;  %v5410_v5 = vpop.permute.xlu1 %5409 }
 0x5e0   :  { %5437 = vadd.xlane.f32.xlu0 %v5436_v2 }
 0x5e1   :  { %v5407_v4 = vpop.permute.xlu0 %5406 }
 0x5e2   :  { %v5431_v6 = vsel %vm5422_vm5, %v5430_v29, %v5407_v4  ;;  %v6739_v4 = vld [vmem:[#allocation16] ss:$0 sm:$0xff] }
 0x5e3   :  { %v5432_v7 = vsel %vm5424_vm6, %v5431_v6, %v5410_v5 }
 0x5e4   :  { %v5434_v8 = vmul.f32 %v5432_v7, %v5432_v7 }
 0x5e6   :  { %v5439_v10 = vsel %vm5435_vm7, %v5434_v8, 0.0 }
 0x5e7   :  { %5440 = vadd.xlane.f32.xlu1 %v5439_v10 }
 0x66d   :  { %v5438_v14 = vpop.xlane.xlu0 %5437 }
 0x66e   :  { %7443 = vrsqrt.f32 %v5438_v14  ;;  %vm5444_vm8 = vcmp.eq.f32.partialorder %v5438_v14, inf  ;;  %v5447_v27 = vand.u32 2147483648, %v5438_v14  ;;  %vm5446_vm9 = vcmp.eq.f32.partialorder %v5438_v14, 0.0 }
 0x674   :  { %v5441_v17 = vpop.xlane.xlu1 %5440 }
 0x675   :  { %7445 = vrsqrt.f32 %v5441_v17  ;;  %vm5451_vm10 = vcmp.eq.f32.partialorder %v5441_v17, inf  ;;  %v5454_v21 = vand.u32 2147483648, %v5441_v17  ;;  %vm5453_vm11 = vcmp.eq.f32.partialorder %v5441_v17, 0.0 }
 0x678   :  { %v7444_v24 = vpop.eup %7443 }
 0x679   :  { %v5443_v18 = vmul.f32 %v7444_v24, %v5438_v14 }
 0x67b   :  { %v5445_v53 = vsel %vm5444_vm8, %v5438_v14, %v5443_v18 }
 0x67c   :  { %v5448_v19 = vsel %vm5446_vm9, %v5447_v27, %v5445_v53 }
 0x67d   :  { %v5456_v44 = vmul.f32 0.25, %v5448_v19 }
 0x67f   :  { %v7446_v15 = vpop.eup %7445  ;;  %v5458_v59 = vmax.f32 %v5456_v44, 1e-05  ;;  %v5873_v44 = vld [vmem:[#allocation19] sm:$0xff] }
 0x680   :  { %v5450_v20 = vmul.f32 %v7446_v15, %v5441_v17  ;;  %v5874_v15 = vld [vmem:[#allocation19 + $0x8] sm:$0xff] }
 0x681   :  { %7447 = vrcp.f32 %v5458_v59  ;;  %v6903_v59 = vpack.c.bf16 %v5874_v15, %v5873_v44 }
 0x682   :  { %v5452_v22 = vsel %vm5451_vm10, %v5441_v17, %v5450_v20 }
 0x683   :  { %v5455_v9 = vsel %vm5453_vm11, %v5454_v21, %v5452_v22 }
 0x684   :  { %v5457_v56 = vmul.f32 0.25, %v5455_v9 }
 0x686   :  { %v5459_v25 = vmax.f32 %v5457_v56, 1e-05 }
 0x688   :  { %7449 = vrcp.f32 %v5459_v25 }
 0x68b   :  { %v7448_v23 = vpop.eup %7447 }
 0x68c   :  { %v5461_v26 = vmul.f32 %v7448_v23, %v5425_v57 }
 0x68e   :  { %6831 = vmatprep.mubr.msk.f32.mxu0 %vm5435_vm7, %v5461_v26  ;;  %v5776_v26 = vld [vmem:[#allocation22] sm:$0xff] }
 0x692   :  { %v7450_v28 = vpop.eup %7449 }
 0x693   :  { %v5463_v30 = vmul.f32 %v7450_v28, %v5432_v7  ;;  %v5777_v28 = vld [vmem:[#allocation22 + $0x8] sm:$0xff] }
 0x695   :  { %6832 = vmatmul.mubr.msk.f32.vlgmr.msra.gmra.mrb[16].mxu0 %vm5435_vm7, %v5463_v30 }
 0x696   :  { %6888 = vmatpush3.bf16.msra.mxu0 %v6885_v41  ;;  %v5872_v41 = vld [vmem:[#allocation18 + $0x18] sm:$0xff] }
 0x697   :  { %6890 = vmatprep.subr.bf16.mxu0 %v6889_v43 }
 0x69a   :  { %6892 = vmatpush3.bf16.msra.mxu0 %v6889_v43 }
 0x768   :  { %v6833_v39 = vpop.f32.mrb[16].mxu0 }
 0x769   :  { %v5545_v31 = vpop.f32.mrb[17].mxu0  ;;  %v8223_v32 = vadd.f32 %v6833_v39, %v6736_v0 }
 0x76a   :  { %v8225_v35 = vadd.f32 %v6736_v0, %v5545_v31  ;;  %v5875_v31 = vld [vmem:[#allocation19 + $0x10] sm:$0xff] }
 0x76b   :  { %v5555_v36 = vmul.f32 %v8223_v32, %v8223_v32 }
 0x76c   :  { %v5554_v33 = vmul.f32 %v8225_v35, %v8225_v35 }
 0x76d   :  { %v5560_v37 = vsel %vm5556_vm12, %v5555_v36, 0.0  ;;  %v5869_v36 = vld [vmem:[#allocation18] sm:$0xff] }
 0x76e   :  { %v5557_v34 = vsel %vm5556_vm12, %v5554_v33, 0.0  ;;  %v5876_v33 = vld [vmem:[#allocation19 + $0x18] sm:$0xff] }
 0x76f   :  { %5558 = vadd.xlane.f32.xlu0 %v5557_v34  ;;  %v6907_v34 = vpack.c.bf16 %v5876_v33, %v5875_v31 }
 0x773   :  { %5561 = vadd.xlane.f32.xlu0 %v5560_v37  ;;  %v5870_v37 = vld [vmem:[#allocation18 + $0x8] sm:$0xff] }
 0x774   :  { %v6911_v38 = vpack.c.bf16 %v5870_v37, %v5869_v36 }
 0x7fc   :  { %v5559_v45 = vpop.xlane.xlu0 %5558 }
 0x7fd   :  { %7451 = vrsqrt.f32 %v5559_v45  ;;  %vm5565_vm13 = vcmp.eq.f32.partialorder %v5559_v45, inf  ;;  %v5568_v48 = vand.u32 2147483648, %v5559_v45  ;;  %vm5567_vm14 = vcmp.eq.f32.partialorder %v5559_v45, 0.0 }
 0x800   :  { %v5562_v46 = vpop.xlane.xlu0 %5561 }
 0x801   :  { %7453 = vrsqrt.f32 %v5562_v46  ;;  %vm5572_vm15 = vcmp.eq.f32.partialorder %v5562_v46, inf  ;;  %v5575_v55 = vand.u32 2147483648, %v5562_v46  ;;  %vm5574_vm0 = vcmp.eq.f32.partialorder %v5562_v46, 0.0 }
 0x807   :  { %v7452_v47 = vpop.eup %7451 }
 0x808   :  { %v5564_v63 = vmul.f32 %v7452_v47, %v5559_v45  ;;  %v6752_v47 = vld [vmem:[#allocation21] ss:$0 sm:$0xff] }
 0x80a   :  { %v5566_v16 = vsel %vm5565_vm13, %v5559_v45, %v5564_v63 }
 0x80b   :  { %v7454_v50 = vpop.eup %7453  ;;  %v5569_v51 = vsel %vm5567_vm14, %v5568_v48, %v5566_v16 }
 0x80c   :  { %v5577_v52 = vmul.f32 0.17677669, %v5569_v51  ;;  %v5571_v54 = vmul.f32 %v7454_v50, %v5562_v46 }
 0x80e   :  { %v5579_v57 = vmax.f32 %v5577_v52, 1e-05  ;;  %v5573_v58 = vsel %vm5572_vm15, %v5562_v46, %v5571_v54  ;;  %v6915_v46 = vpack.c.bf16 %v5872_v41, %v5871_v40 }
 0x80f   :  { %v5576_v60 = vsel %vm5574_vm0, %v5575_v55, %v5573_v58 }
 0x810   :  { %7455 = vrcp.f32 %v5579_v57  ;;  %v5578_v61 = vmul.f32 0.17677669, %v5576_v60 }
 0x812   :  { %v5580_v62 = vmax.f32 %v5578_v61, 1e-05 }
 0x814   :  { %7457 = vrcp.f32 %v5580_v62 }
 0x81a   :  { %v7456_v1 = vpop.eup %7455 }
 0x81b   :  { %v5582_v2 = vmul.f32 %v7456_v1, %v8225_v35 }
 0x81d   :  { %6842 = vmatprep.mubr.msk.f32.mxu0 %vm5556_vm12, %v5582_v2 }
 0x81e   :  { %v7458_v3 = vpop.eup %7457 }
 0x81f   :  { %v5584_v29 = vmul.f32 %v7458_v3, %v8223_v32 }
 0x821   :  { %6843 = vmatmul.mubr.msk.f32.vlgmr.msra.gmra.mrb[18].mxu0 %vm5556_vm12, %v5584_v29 }
 0x8f4   :  { %v6844_v5 = vpop.f32.mrb[18].mxu0 }
 0x8f5   :  { %v5674_v6 = vadd.f32 %v6844_v5, %v6739_v4  ;;  %v5668_v7 = vpop.f32.mrb[19].mxu0 }
 0x8f6   :  { %v5669_v8 = vadd.f32 %v6739_v4, %v5668_v7 }
 0x8f8   :  { %5679 = vrot.lane.b32.xlu0 %v5669_v8, %s7799_s3  ;;  %v7016_v10 = vpack.i.bf16 %v5674_v6, %v5669_v8 }
 0x8fa   :  { %7017 = vrot.lane.b32.xlu1 %v7016_v10, %s7810_s1 }
 0x8fe   :  { %5681 = vrot.lane.b32.xlu1 %v5674_v6, %s7799_s3 }
 0x902   :  { %7022 = vrot.lane.b32.xlu1 %v7016_v10, %s7809_s30 }
 0x96a   :  { %v5680_v12 = vpop.permute.xlu0 %5679 }
 0x96b   :  { %6849 = vmatprep.mubr.msk.f32.mxu0 %vm5435_vm7, %v5680_v12 }
 0x96c   :  { %v7018_v13 = vpop.permute.xlu1 %7017 }
 0x96d   :  { %v7020_v11 = vunpack.i.h.bf16 %v7018_v13  ;;  %v7019_v14 = vunpack.i.l.bf16 %v7018_v13 }
 0x96f   :  { %v6893_v17 = vpack.c.bf16 %v7020_v11, %v7019_v14 }
 0x970   :  { %v5682_v24 = vpop.permute.xlu1 %5681 }
 0x971   :  { %6895 = vmatprep.subr.msk.bf16.mxu0 %vm6894_vm1, %v6893_v17 }
 0x972   :  { %6898 = vmatpush3.bf16.xpose.msk.msra.mxu0 %vm6894_vm1, %v6893_v17 }
 0x974   :  { %v7023_v18 = vpop.permute.xlu1 %7022 }
 0x975   :  { %v7025_v27 = vunpack.i.h.bf16 %v7023_v18  ;;  %v7024_v53 = vunpack.i.l.bf16 %v7023_v18 }
 0x977   :  { %v6899_v19 = vpack.c.bf16 %v7025_v27, %v7024_v53 }
 0x979   :  { %6850 = vmatmul.mubr.msk.f32.vlgmr.msra.gmra.mrb[20].mxu0 %vm5435_vm7, %v5682_v24  ;;  %6900 = vmatprep.subr.bf16.mxu1 %v6899_v19 }
 0x97a   :  { %6902 = vmatpush3.bf16.msra.mxu1 %v6899_v19 }
 0x97b   :  { %6904 = vmatprep.subr.bf16.mxu1 %v6903_v59 }
 0xa4c   :  { %v6851_v20 = vpop.f32.mrb[20].mxu0 }
 0xa4d   :  { %v5771_v21 = vmul.f32 0.25, %v6851_v20  ;;  %v5761_v22 = vpop.f32.mrb[21].mxu0 }
 0xa4e   :  { %v5770_v9 = vmul.f32 0.25, %v5761_v22 }
 0xa4f   :  { %v5773_v56 = vmax.f32 %v5771_v21, 0.0 }
 0xa50   :  { %v5772_v25 = vmax.f32 %v5770_v9, 0.0 }
 0xa51   :  { %v5775_v23 = vmul.f32 %v5773_v56, %v5773_v56 }
 0xa52   :  { %v5774_v30 = vmul.f32 %v5772_v25, %v5772_v25 }
 0xa53   :  { %v5779_v39 = vmul.f32 %v5777_v28, %v5775_v23 }
 0xa54   :  { %v5778_v0 = vmul.f32 %v5776_v26, %v5774_v30 }
 0xa56   :  { %6856 = vmatprep.mubr.msk.f32.mxu1 %vm5435_vm7, %v5778_v0 }
 0xa57   :  { %6857 = vmatmul.mubr.msk.f32.vlgmr.msra.gmra.mrb[16].mxu1 %vm5435_vm7, %v5779_v39 }
 0xa58   :  { %6906 = vmatpush3.bf16.msra.mxu1 %v6903_v59 }
 0xa59   :  { %6908 = vmatprep.subr.bf16.mxu1 %v6907_v34 }
 0xa5c   :  { %6910 = vmatpush3.bf16.msra.mxu1 %v6907_v34 }
 0xa5d   :  { %6912 = vmatprep.subr.bf16.mxu1 %v6911_v38 }
 0xb2a   :  { %v6858_v49 = vpop.f32.mrb[16].mxu1 }
 0xb2b   :  { %v5858_v42 = vpop.f32.mrb[17].mxu1  ;;  %v5868_v45 = vmul.f32 %v6858_v49, %v5674_v6 }
 0xb2c   :  { %v5867_v43 = vmul.f32 %v5858_v42, %v5669_v8 }
 0xb2e   :  { %6867 = vmatprep.mubr.msk.f32.mxu1 %vm5556_vm12, %v5867_v43 }
 0xb2f   :  { %6868 = vmatmul.mubr.msk.f32.vlgmr.msra.gmra.mrb[18].mxu1 %vm5556_vm12, %v5868_v45 }
 0xb30   :  { %6914 = vmatpush3.bf16.msra.mxu1 %v6911_v38  ;;  %6878 = vmatprep.mubr.msk.f32.mxu1 %vm5556_vm12, %v8225_v35 }
 0xb31   :  { %6916 = vmatprep.subr.bf16.mxu1 %v6915_v46 }
 0xb34   :  { %6918 = vmatpush3.bf16.msra.mxu1 %v6915_v46 }
 0xb37   :  { %6879 = vmatmul.mubr.msk.f32.vlgmr.msra.gmra.mrb[18].mxu1 %vm5556_vm12, %v8223_v32 }
 0xc0a   :  { %v6880_v63 = vpop.f32.mrb[18].mxu1 }
 0xc0b   :  { %v6047_v48 = vadd.f32 %v6880_v63, %v6752_v47  ;;  %v6030_v16 = vpop.f32.mrb[19].mxu1 }
 0xc0c   :  { %v6046_v50 = vadd.f32 %v6752_v47, %v6030_v16 }
 0xc0d   :  { %6049 = vst [vmem:[%s8274_s15 + $0x8] sm:$0xff] %v6047_v48 }
 0xc0e   :  { %6048 = vst [vmem:[%s8274_s15] sm:$0xff] %v6046_v50 }
 0xc0f   :  { %6054 = vsyncpa [#allocation3], 1 }
 0xc10   :  { %6055 = vsyncpa [#allocation5], 1 }
 0xc11   :  { %6056 = vsyncpa [#allocation8], 1 }
 0xc12   :  { %6057 = vsyncpa [#allocation11], 1 }
 0xc13   :  { %6058 = vsyncpa [#allocation14], 1 }
 0xc14   :  { %6059 = vsyncpa [#allocation17], 1 }
 0xc15   :  { %6060 = vsyncpa [#allocation20], 1 }
 0xc16   :  { %6061 = vsyncpa [#allocation23], 1 }

</bundles_post_ra>
